<compile_context>
chip_gen: v6e
topology: v6e:2x2x1
jax: 0.10.0
libtpu: 0.0.40
codegen_flags: <defaults>
</compile_context>

<pallas_src>
import functools

import numpy as np
import jax
import jax.numpy as jnp
from jax.experimental import pallas as pl
from jax.experimental.pallas import tpu as pltpu


# -----------------------------------------------------------------------------
# Single fused decoder kernel
# -----------------------------------------------------------------------------
def _decoder_kernel(dims, x_ref, w1_ref, b1_ref, w2_ref, b2_ref,
                    u1_ref, u2_ref, u3_ref,
                    wc1_ref, bc1_ref, wc2_ref, bc2_ref, wc3_ref, bc3_ref,
                    out_ref, h2_ref, act0_ref):
    batch, chid, h0, w0 = dims
    hw0 = h0 * w0
    f32 = jnp.float32

    # ---- fc1 / fc2 (kept on-chip; tiny MXU matmuls) --------------------------
    h1 = jnp.dot(x_ref[...], w1_ref[...], preferred_element_type=f32) + b1_ref[...]
    h1 = jnp.maximum(h1, 0.0)                                   # (B, conv_hid)
    h2 = jnp.dot(h1, w2_ref[...], preferred_element_type=f32) + b2_ref[...]
    h2 = jnp.maximum(h2, 0.0)                                   # (B, C*H0*W0)
    h2_ref[...] = h2

    # ---- torch.reshape(-1, C, H0, W0) -> lane-dense transposed layout --------
    # act0[c, b*H0*W0 + h*W0 + w] = h2[b, c*H0*W0 + h*W0 + w]
    # (B*C tiny masked VMEM window copies; happens once, arrays are 2x64 / 16x8)
    for c in range(chid):
        for b in range(batch):
            act0_ref[pl.ds(c, 1), pl.ds(b * hw0, hw0)] = (
                h2_ref[pl.ds(b, 1), pl.ds(c * hw0, hw0)])
    act = act0_ref[...]                                         # (C, B*H0*W0)

    # ---- fused nearest-x2 upsample + 3x3 "same" conv stage -------------------
    # u_ref[k] is a 0/1 matrix folding the upsample, the tap shift (ky,kx) and
    # its zero padding, so  slab_k = act @ u_ref[k]  is the (ky,kx) slab of the
    # transposed im2col of the upsampled activation.  Everything stays in VMEM.
    def up_conv(a, u_ref, w_ref, b_ref, activation):
        cout = w_ref.shape[1]
        n = u_ref.shape[2]
        acc = jnp.zeros((cout, n), f32)
        for k in range(9):
            slab = jnp.dot(a, u_ref[k], preferred_element_type=f32)      # (Cin, n)
            acc = acc + jnp.dot(w_ref[k], slab, preferred_element_type=f32)
        y = acc + b_ref[...]                                    # bias (Cout, 1)
        if activation == "relu":
            return jnp.maximum(y, 0.0)
        # sigmoid: exp + approximate reciprocal -> both on the EUP slot
        y = pl.reciprocal(1.0 + jnp.exp(-y), approx=True)
        return jnp.minimum(y, 1.0)

    act = up_conv(act, u1_ref, wc1_ref, bc1_ref, "relu")
    act = up_conv(act, u2_ref, wc2_ref, bc2_ref, "relu")
    act = up_conv(act, u3_ref, wc3_ref, bc3_ref, "sigmoid")

    out_ref[...] = act.astype(out_ref.dtype)                    # (n_channels, B*H*W)


# -----------------------------------------------------------------------------
# Decoder module (deterministic synthetic parameters, PyTorch-style init)
# -----------------------------------------------------------------------------
class DecoderPallas:
    def __init__(self, key, image_size=(16, 16), n_in=4, conv_hid=16, n_channels=3):
        # conv_kernel=(3,3), conv_stride=(1,1) => calculate_pad_same gives pad=(1,1)
        assert image_size[0] % 8 == 0 and image_size[1] % 8 == 0
        self.image_size = tuple(image_size)
        self.n_channels = n_channels
        self.convdim = (conv_hid, image_size[0] // 2 ** 3, image_size[1] // 2 ** 3)
        ks = jax.random.split(key, 10)

        def lin_init(kw, kb, fan_in, fan_out):
            bound = 1.0 / float(fan_in) ** 0.5
            w = jax.random.uniform(kw, (fan_in, fan_out), jnp.float32, -bound, bound)
            b = jax.random.uniform(kb, (1, fan_out), jnp.float32, -bound, bound)
            return w, b

        def conv_init(kw, kb, cin, cout):
            bound = 1.0 / float(cin * 9) ** 0.5
            w = jax.random.uniform(kw, (cout, cin, 3, 3), jnp.float32, -bound, bound)
            b = jax.random.uniform(kb, (cout, 1), jnp.float32, -bound, bound)
            # precompute the matmul layout once: (O, I, 3, 3) -> (9, O, I),
            # k = ky*3 + kx  (matches the in-kernel tap order)
            w9 = jnp.transpose(w, (2, 3, 0, 1)).reshape(9, cout, cin)
            return w9, b

        self.fc1_w, self.fc1_b = lin_init(ks[0], ks[1], n_in, conv_hid)
        self.fc2_w, self.fc2_b = lin_init(
            ks[2], ks[3], conv_hid,
            self.convdim[0] * self.convdim[1] * self.convdim[2])
        self.conv1_w, self.conv1_b = conv_init(ks[4], ks[5], conv_hid, conv_hid)
        self.conv2_w, self.conv2_b = conv_init(ks[6], ks[7], conv_hid, conv_hid)
        self.conv3_w, self.conv3_b = conv_init(ks[8], ks[9], conv_hid, n_channels)

        self._ucache = {}
        self._jit_forward = None

    # ---- host-side precompute: fused upsample+shift 0/1 selection matrices ----
    @staticmethod
    def _up_shift_matrices(batch, h, w):
        """(9, batch*h*w, batch*(2h)*(2w)) float32 0/1 matrices.  Matrix k fuses
        the nearest-x2 upsample with the 3x3 tap shift (dy,dx)=(k//3-1, k%3-1)
        and its zero padding, so `act @ U[k]` is the (ky,kx) im2col slab of the
        upsampled activation in the transposed (C, B*H*W) layout."""
        hh, ww = 2 * h, 2 * w
        m, n = batch * h * w, batch * hh * ww
        idx = np.arange(n)
        b = idx // (hh * ww)
        rem = idx % (hh * ww)
        y = rem // ww
        x = rem % ww
        mats = np.zeros((9, m, n), dtype=np.float32)
        for k in range(9):
            dy, dx = k // 3 - 1, k % 3 - 1
            yy, xx = y + dy, x + dx
            valid = (yy >= 0) & (yy < hh) & (xx >= 0) & (xx < ww)
            src = (b * h * w
                   + (np.clip(yy, 0, hh - 1) // 2) * w
                   + (np.clip(xx, 0, ww - 1) // 2))
            mats[k, src[valid], idx[valid]] = 1.0
        return jnp.asarray(mats)

    def _upsample_mats(self, batch):
        if batch not in self._ucache:
            _, h0, w0 = self.convdim
            self._ucache[batch] = (
                self._up_shift_matrices(batch, h0, w0),
                self._up_shift_matrices(batch, 2 * h0, 2 * w0),
                self._up_shift_matrices(batch, 4 * h0, 4 * w0),
            )
        return self._ucache[batch]

    # ---- forward ---------------------------------------------------------------
    def _forward(self, x, u1, u2, u3):
        batch = x.shape[0]
        chid, h0, w0 = self.convdim
        hh, ww = self.image_size

        kernel = functools.partial(_decoder_kernel, (batch, chid, h0, w0))
        vmem = pl.BlockSpec(memory_space=pltpu.MemorySpace.VMEM)
        out_t = pl.pallas_call(
            kernel,
            out_shape=jax.ShapeDtypeStruct((self.n_channels, batch * hh * ww),
                                           jnp.float32),
            in_specs=[vmem] * 14,
            out_specs=vmem,
            scratch_shapes=[
                pltpu.VMEM((batch, chid * h0 * w0), jnp.float32),   # fc2 output
                pltpu.VMEM((chid, batch * h0 * w0), jnp.float32),   # transposed act0
            ],
        )(x.astype(jnp.float32),
          self.fc1_w, self.fc1_b, self.fc2_w, self.fc2_b,
          u1, u2, u3,
          self.conv1_w, self.conv1_b,
          self.conv2_w, self.conv2_b,
          self.conv3_w, self.conv3_b)

        # single layout fix-up: (n_channels, B*H*W) -> NCHW, then torch .squeeze(0)
        out = jnp.transpose(out_t.reshape(self.n_channels, batch, hh, ww),
                            (1, 0, 2, 3))
        if batch == 1:
            out = out[0]
        return out

    def __call__(self, x):
        u1, u2, u3 = self._upsample_mats(x.shape[0])
        if self._jit_forward is None:
            self._jit_forward = jax.jit(self._forward)
        return self._jit_forward(x, u1, u2, u3)


if __name__ == "__main__":
    key = jax.random.PRNGKey(0)
    k_params, k_x = jax.random.split(key)

    # Small shapes consistent with the module: image 16x16 (divisible by 8),
    # latent n_in=4, conv_hid=16, 3 output channels, batch=2.
    dec = DecoderPallas(k_params, image_size=(16, 16), n_in=4, conv_hid=16,
                        n_channels=3)
    x = jax.random.normal(k_x, (2, 4), jnp.float32)

    out = jax.block_until_ready(dec(x))

    assert out.shape == (2, 3, 16, 16), out.shape
    assert out.dtype == jnp.float32
    assert bool(jnp.all(jnp.isfinite(out)))
    assert bool(jnp.all((out >= 0.0) & (out <= 1.0)))   # sigmoid output range
    print("KERNEL_OK")
</pallas_src>

<mosaic_0001>
module attributes {stable_mosaic.version = 11 : i64} {
  func.func @_decoder_kernel(%arg0: memref<2x4xf32, #tpu.memory_space<vmem>>, %arg1: memref<4x16xf32, #tpu.memory_space<vmem>>, %arg2: memref<1x16xf32, #tpu.memory_space<vmem>>, %arg3: memref<16x64xf32, #tpu.memory_space<vmem>>, %arg4: memref<1x64xf32, #tpu.memory_space<vmem>>, %arg5: memref<9x8x32xf32, #tpu.memory_space<vmem>>, %arg6: memref<9x32x128xf32, #tpu.memory_space<vmem>>, %arg7: memref<9x128x512xf32, #tpu.memory_space<vmem>>, %arg8: memref<9x16x16xf32, #tpu.memory_space<vmem>>, %arg9: memref<16x1xf32, #tpu.memory_space<vmem>>, %arg10: memref<9x16x16xf32, #tpu.memory_space<vmem>>, %arg11: memref<16x1xf32, #tpu.memory_space<vmem>>, %arg12: memref<9x3x16xf32, #tpu.memory_space<vmem>>, %arg13: memref<3x1xf32, #tpu.memory_space<vmem>>, %arg14: memref<3x512xf32, #tpu.memory_space<vmem>>, %arg15: memref<2x64xf32, #tpu.memory_space<vmem>>, %arg16: memref<16x8xf32, #tpu.memory_space<vmem>>) attributes {dimension_semantics = [], scalar_prefetch = 0 : i64, scratch_operands = 2 : i64, tpu.core_type = #tpu.core_type<tc>} {
    %c0 = arith.constant 0 : index
    %c0_0 = arith.constant 0 : index
    %0 = vector.load %arg0[%c0, %c0_0] : memref<2x4xf32, #tpu.memory_space<vmem>>, vector<2x4xf32>
    %c0_1 = arith.constant 0 : index
    %c0_2 = arith.constant 0 : index
    %1 = vector.load %arg1[%c0_1, %c0_2] : memref<4x16xf32, #tpu.memory_space<vmem>>, vector<4x16xf32>
    %cst = arith.constant dense<0.000000e+00> : vector<2x16xf32>
    %2 = tpu.matmul %0, %1, %cst {dimension_numbers = #tpu.dot_dimension_numbers<[1], [0], [0], [1], [0, 0, 1, 1], [], []>} : vector<2x4xf32>, vector<4x16xf32>, vector<2x16xf32> -> vector<2x16xf32>
    %c0_3 = arith.constant 0 : index
    %c0_4 = arith.constant 0 : index
    %3 = vector.load %arg2[%c0_3, %c0_4] : memref<1x16xf32, #tpu.memory_space<vmem>>, vector<1x16xf32>
    %4 = vector.broadcast %3 : vector<1x16xf32> to vector<2x16xf32>
    %5 = arith.addf %2, %4 : vector<2x16xf32>
    %cst_5 = arith.constant 0.000000e+00 : f32
    %6 = vector.broadcast %cst_5 : f32 to vector<2x16xf32>
    %7 = arith.maximumf %5, %6 : vector<2x16xf32>
    %c0_6 = arith.constant 0 : index
    %c0_7 = arith.constant 0 : index
    %8 = vector.load %arg3[%c0_6, %c0_7] : memref<16x64xf32, #tpu.memory_space<vmem>>, vector<16x64xf32>
    %cst_8 = arith.constant dense<0.000000e+00> : vector<2x64xf32>
    %9 = tpu.matmul %7, %8, %cst_8 {dimension_numbers = #tpu.dot_dimension_numbers<[1], [0], [0], [1], [0, 0, 1, 1], [], []>} : vector<2x16xf32>, vector<16x64xf32>, vector<2x64xf32> -> vector<2x64xf32>
    %c0_9 = arith.constant 0 : index
    %c0_10 = arith.constant 0 : index
    %10 = vector.load %arg4[%c0_9, %c0_10] : memref<1x64xf32, #tpu.memory_space<vmem>>, vector<1x64xf32>
    %11 = vector.broadcast %10 : vector<1x64xf32> to vector<2x64xf32>
    %12 = arith.addf %9, %11 : vector<2x64xf32>
    %cst_11 = arith.constant 0.000000e+00 : f32
    %13 = vector.broadcast %cst_11 : f32 to vector<2x64xf32>
    %14 = arith.maximumf %12, %13 : vector<2x64xf32>
    %c0_12 = arith.constant 0 : index
    %c0_13 = arith.constant 0 : index
    %15 = vector.load %arg15[%c0_12, %c0_13] : memref<2x64xf32, #tpu.memory_space<vmem>>, vector<2x64xf32>
    tpu.vector_store %arg15[%c0_12, %c0_13], %14 {strides = array<i32>} : memref<2x64xf32, #tpu.memory_space<vmem>>, vector<2x64xf32>,
    %c0_14 = arith.constant 0 : index
    %c0_15 = arith.constant 0 : index
    %16 = vector.load %arg15[%c0_14, %c0_15] : memref<2x64xf32, #tpu.memory_space<vmem>>, vector<1x4xf32>
    %c0_16 = arith.constant 0 : index
    %c0_17 = arith.constant 0 : index
    %17 = vector.load %arg16[%c0_16, %c0_17] : memref<16x8xf32, #tpu.memory_space<vmem>>, vector<1x4xf32>
    tpu.vector_store %arg16[%c0_16, %c0_17], %16 {strides = array<i32>} : memref<16x8xf32, #tpu.memory_space<vmem>>, vector<1x4xf32>,
    %c1 = arith.constant 1 : index
    %c0_18 = arith.constant 0 : index
    %18 = vector.load %arg15[%c1, %c0_18] : memref<2x64xf32, #tpu.memory_space<vmem>>, vector<1x4xf32>
    %c0_19 = arith.constant 0 : index
    %c4 = arith.constant 4 : index
    %19 = vector.load %arg16[%c0_19, %c4] : memref<16x8xf32, #tpu.memory_space<vmem>>, vector<1x4xf32>
    tpu.vector_store %arg16[%c0_19, %c4], %18 {strides = array<i32>} : memref<16x8xf32, #tpu.memory_space<vmem>>, vector<1x4xf32>,
    %c0_20 = arith.constant 0 : index
    %c4_21 = arith.constant 4 : index
    %20 = vector.load %arg15[%c0_20, %c4_21] : memref<2x64xf32, #tpu.memory_space<vmem>>, vector<1x4xf32>
    %c1_22 = arith.constant 1 : index
    %c0_23 = arith.constant 0 : index
    %21 = vector.load %arg16[%c1_22, %c0_23] : memref<16x8xf32, #tpu.memory_space<vmem>>, vector<1x4xf32>
    tpu.vector_store %arg16[%c1_22, %c0_23], %20 {strides = array<i32>} : memref<16x8xf32, #tpu.memory_space<vmem>>, vector<1x4xf32>,
    %c1_24 = arith.constant 1 : index
    %c4_25 = arith.constant 4 : index
    %22 = vector.load %arg15[%c1_24, %c4_25] : memref<2x64xf32, #tpu.memory_space<vmem>>, vector<1x4xf32>
    %c1_26 = arith.constant 1 : index
    %c4_27 = arith.constant 4 : index
    %23 = vector.load %arg16[%c1_26, %c4_27] : memref<16x8xf32, #tpu.memory_space<vmem>>, vector<1x4xf32>
    tpu.vector_store %arg16[%c1_26, %c4_27], %22 {strides = array<i32>} : memref<16x8xf32, #tpu.memory_space<vmem>>, vector<1x4xf32>,
    %c0_28 = arith.constant 0 : index
    %c8 = arith.constant 8 : index
    %24 = vector.load %arg15[%c0_28, %c8] : memref<2x64xf32, #tpu.memory_space<vmem>>, vector<1x4xf32>
    %c2 = arith.constant 2 : index
    %c0_29 = arith.constant 0 : index
    %25 = vector.load %arg16[%c2, %c0_29] : memref<16x8xf32, #tpu.memory_space<vmem>>, vector<1x4xf32>
    tpu.vector_store %arg16[%c2, %c0_29], %24 {strides = array<i32>} : memref<16x8xf32, #tpu.memory_space<vmem>>, vector<1x4xf32>,
    %c1_30 = arith.constant 1 : index
    %c8_31 = arith.constant 8 : index
    %26 = vector.load %arg15[%c1_30, %c8_31] : memref<2x64xf32, #tpu.memory_space<vmem>>, vector<1x4xf32>
    %c2_32 = arith.constant 2 : index
    %c4_33 = arith.constant 4 : index
    %27 = vector.load %arg16[%c2_32, %c4_33] : memref<16x8xf32, #tpu.memory_space<vmem>>, vector<1x4xf32>
    tpu.vector_store %arg16[%c2_32, %c4_33], %26 {strides = array<i32>} : memref<16x8xf32, #tpu.memory_space<vmem>>, vector<1x4xf32>,
    %c0_34 = arith.constant 0 : index
    %c12 = arith.constant 12 : index
    %28 = vector.load %arg15[%c0_34, %c12] : memref<2x64xf32, #tpu.memory_space<vmem>>, vector<1x4xf32>
    %c3 = arith.constant 3 : index
    %c0_35 = arith.constant 0 : index
    %29 = vector.load %arg16[%c3, %c0_35] : memref<16x8xf32, #tpu.memory_space<vmem>>, vector<1x4xf32>
    tpu.vector_store %arg16[%c3, %c0_35], %28 {strides = array<i32>} : memref<16x8xf32, #tpu.memory_space<vmem>>, vector<1x4xf32>,
    %c1_36 = arith.constant 1 : index
    %c12_37 = arith.constant 12 : index
    %30 = vector.load %arg15[%c1_36, %c12_37] : memref<2x64xf32, #tpu.memory_space<vmem>>, vector<1x4xf32>
    %c3_38 = arith.constant 3 : index
    %c4_39 = arith.constant 4 : index
    %31 = vector.load %arg16[%c3_38, %c4_39] : memref<16x8xf32, #tpu.memory_space<vmem>>, vector<1x4xf32>
    tpu.vector_store %arg16[%c3_38, %c4_39], %30 {strides = array<i32>} : memref<16x8xf32, #tpu.memory_space<vmem>>, vector<1x4xf32>,
    %c0_40 = arith.constant 0 : index
    %c16 = arith.constant 16 : index
    %32 = vector.load %arg15[%c0_40, %c16] : memref<2x64xf32, #tpu.memory_space<vmem>>, vector<1x4xf32>
    %c4_41 = arith.constant 4 : index
    %c0_42 = arith.constant 0 : index
    %33 = vector.load %arg16[%c4_41, %c0_42] : memref<16x8xf32, #tpu.memory_space<vmem>>, vector<1x4xf32>
    tpu.vector_store %arg16[%c4_41, %c0_42], %32 {strides = array<i32>} : memref<16x8xf32, #tpu.memory_space<vmem>>, vector<1x4xf32>,
    %c1_43 = arith.constant 1 : index
    %c16_44 = arith.constant 16 : index
    %34 = vector.load %arg15[%c1_43, %c16_44] : memref<2x64xf32, #tpu.memory_space<vmem>>, vector<1x4xf32>
    %c4_45 = arith.constant 4 : index
    %c4_46 = arith.constant 4 : index
    %35 = vector.load %arg16[%c4_45, %c4_46] : memref<16x8xf32, #tpu.memory_space<vmem>>, vector<1x4xf32>
    tpu.vector_store %arg16[%c4_45, %c4_46], %34 {strides = array<i32>} : memref<16x8xf32, #tpu.memory_space<vmem>>, vector<1x4xf32>,
    %c0_47 = arith.constant 0 : index
    %c20 = arith.constant 20 : index
    %36 = vector.load %arg15[%c0_47, %c20] : memref<2x64xf32, #tpu.memory_space<vmem>>, vector<1x4xf32>
    %c5 = arith.constant 5 : index
    %c0_48 = arith.constant 0 : index
    %37 = vector.load %arg16[%c5, %c0_48] : memref<16x8xf32, #tpu.memory_space<vmem>>, vector<1x4xf32>
    tpu.vector_store %arg16[%c5, %c0_48], %36 {strides = array<i32>} : memref<16x8xf32, #tpu.memory_space<vmem>>, vector<1x4xf32>,
    %c1_49 = arith.constant 1 : index
    %c20_50 = arith.constant 20 : index
    %38 = vector.load %arg15[%c1_49, %c20_50] : memref<2x64xf32, #tpu.memory_space<vmem>>, vector<1x4xf32>
    %c5_51 = arith.constant 5 : index
    %c4_52 = arith.constant 4 : index
    %39 = vector.load %arg16[%c5_51, %c4_52] : memref<16x8xf32, #tpu.memory_space<vmem>>, vector<1x4xf32>
    tpu.vector_store %arg16[%c5_51, %c4_52], %38 {strides = array<i32>} : memref<16x8xf32, #tpu.memory_space<vmem>>, vector<1x4xf32>,
    %c0_53 = arith.constant 0 : index
    %c24 = arith.constant 24 : index
    %40 = vector.load %arg15[%c0_53, %c24] : memref<2x64xf32, #tpu.memory_space<vmem>>, vector<1x4xf32>
    %c6 = arith.constant 6 : index
    %c0_54 = arith.constant 0 : index
    %41 = vector.load %arg16[%c6, %c0_54] : memref<16x8xf32, #tpu.memory_space<vmem>>, vector<1x4xf32>
    tpu.vector_store %arg16[%c6, %c0_54], %40 {strides = array<i32>} : memref<16x8xf32, #tpu.memory_space<vmem>>, vector<1x4xf32>,
    %c1_55 = arith.constant 1 : index
    %c24_56 = arith.constant 24 : index
    %42 = vector.load %arg15[%c1_55, %c24_56] : memref<2x64xf32, #tpu.memory_space<vmem>>, vector<1x4xf32>
    %c6_57 = arith.constant 6 : index
    %c4_58 = arith.constant 4 : index
    %43 = vector.load %arg16[%c6_57, %c4_58] : memref<16x8xf32, #tpu.memory_space<vmem>>, vector<1x4xf32>
    tpu.vector_store %arg16[%c6_57, %c4_58], %42 {strides = array<i32>} : memref<16x8xf32, #tpu.memory_space<vmem>>, vector<1x4xf32>,
    %c0_59 = arith.constant 0 : index
    %c28 = arith.constant 28 : index
    %44 = vector.load %arg15[%c0_59, %c28] : memref<2x64xf32, #tpu.memory_space<vmem>>, vector<1x4xf32>
    %c7 = arith.constant 7 : index
    %c0_60 = arith.constant 0 : index
    %45 = vector.load %arg16[%c7, %c0_60] : memref<16x8xf32, #tpu.memory_space<vmem>>, vector<1x4xf32>
    tpu.vector_store %arg16[%c7, %c0_60], %44 {strides = array<i32>} : memref<16x8xf32, #tpu.memory_space<vmem>>, vector<1x4xf32>,
    %c1_61 = arith.constant 1 : index
    %c28_62 = arith.constant 28 : index
    %46 = vector.load %arg15[%c1_61, %c28_62] : memref<2x64xf32, #tpu.memory_space<vmem>>, vector<1x4xf32>
    %c7_63 = arith.constant 7 : index
    %c4_64 = arith.constant 4 : index
    %47 = vector.load %arg16[%c7_63, %c4_64] : memref<16x8xf32, #tpu.memory_space<vmem>>, vector<1x4xf32>
    tpu.vector_store %arg16[%c7_63, %c4_64], %46 {strides = array<i32>} : memref<16x8xf32, #tpu.memory_space<vmem>>, vector<1x4xf32>,
    %c0_65 = arith.constant 0 : index
    %c32 = arith.constant 32 : index
    %48 = vector.load %arg15[%c0_65, %c32] : memref<2x64xf32, #tpu.memory_space<vmem>>, vector<1x4xf32>
    %c8_66 = arith.constant 8 : index
    %c0_67 = arith.constant 0 : index
    %49 = vector.load %arg16[%c8_66, %c0_67] : memref<16x8xf32, #tpu.memory_space<vmem>>, vector<1x4xf32>
    tpu.vector_store %arg16[%c8_66, %c0_67], %48 {strides = array<i32>} : memref<16x8xf32, #tpu.memory_space<vmem>>, vector<1x4xf32>,
    %c1_68 = arith.constant 1 : index
    %c32_69 = arith.constant 32 : index
    %50 = vector.load %arg15[%c1_68, %c32_69] : memref<2x64xf32, #tpu.memory_space<vmem>>, vector<1x4xf32>
    %c8_70 = arith.constant 8 : index
    %c4_71 = arith.constant 4 : index
    %51 = vector.load %arg16[%c8_70, %c4_71] : memref<16x8xf32, #tpu.memory_space<vmem>>, vector<1x4xf32>
    tpu.vector_store %arg16[%c8_70, %c4_71], %50 {strides = array<i32>} : memref<16x8xf32, #tpu.memory_space<vmem>>, vector<1x4xf32>,
    %c0_72 = arith.constant 0 : index
    %c36 = arith.constant 36 : index
    %52 = vector.load %arg15[%c0_72, %c36] : memref<2x64xf32, #tpu.memory_space<vmem>>, vector<1x4xf32>
    %c9 = arith.constant 9 : index
    %c0_73 = arith.constant 0 : index
    %53 = vector.load %arg16[%c9, %c0_73] : memref<16x8xf32, #tpu.memory_space<vmem>>, vector<1x4xf32>
    tpu.vector_store %arg16[%c9, %c0_73], %52 {strides = array<i32>} : memref<16x8xf32, #tpu.memory_space<vmem>>, vector<1x4xf32>,
    %c1_74 = arith.constant 1 : index
    %c36_75 = arith.constant 36 : index
    %54 = vector.load %arg15[%c1_74, %c36_75] : memref<2x64xf32, #tpu.memory_space<vmem>>, vector<1x4xf32>
    %c9_76 = arith.constant 9 : index
    %c4_77 = arith.constant 4 : index
    %55 = vector.load %arg16[%c9_76, %c4_77] : memref<16x8xf32, #tpu.memory_space<vmem>>, vector<1x4xf32>
    tpu.vector_store %arg16[%c9_76, %c4_77], %54 {strides = array<i32>} : memref<16x8xf32, #tpu.memory_space<vmem>>, vector<1x4xf32>,
    %c0_78 = arith.constant 0 : index
    %c40 = arith.constant 40 : index
    %56 = vector.load %arg15[%c0_78, %c40] : memref<2x64xf32, #tpu.memory_space<vmem>>, vector<1x4xf32>
    %c10 = arith.constant 10 : index
    %c0_79 = arith.constant 0 : index
    %57 = vector.load %arg16[%c10, %c0_79] : memref<16x8xf32, #tpu.memory_space<vmem>>, vector<1x4xf32>
    tpu.vector_store %arg16[%c10, %c0_79], %56 {strides = array<i32>} : memref<16x8xf32, #tpu.memory_space<vmem>>, vector<1x4xf32>,
    %c1_80 = arith.constant 1 : index
    %c40_81 = arith.constant 40 : index
    %58 = vector.load %arg15[%c1_80, %c40_81] : memref<2x64xf32, #tpu.memory_space<vmem>>, vector<1x4xf32>
    %c10_82 = arith.constant 10 : index
    %c4_83 = arith.constant 4 : index
    %59 = vector.load %arg16[%c10_82, %c4_83] : memref<16x8xf32, #tpu.memory_space<vmem>>, vector<1x4xf32>
    tpu.vector_store %arg16[%c10_82, %c4_83], %58 {strides = array<i32>} : memref<16x8xf32, #tpu.memory_space<vmem>>, vector<1x4xf32>,
    %c0_84 = arith.constant 0 : index
    %c44 = arith.constant 44 : index
    %60 = vector.load %arg15[%c0_84, %c44] : memref<2x64xf32, #tpu.memory_space<vmem>>, vector<1x4xf32>
    %c11 = arith.constant 11 : index
    %c0_85 = arith.constant 0 : index
    %61 = vector.load %arg16[%c11, %c0_85] : memref<16x8xf32, #tpu.memory_space<vmem>>, vector<1x4xf32>
    tpu.vector_store %arg16[%c11, %c0_85], %60 {strides = array<i32>} : memref<16x8xf32, #tpu.memory_space<vmem>>, vector<1x4xf32>,
    %c1_86 = arith.constant 1 : index
    %c44_87 = arith.constant 44 : index
    %62 = vector.load %arg15[%c1_86, %c44_87] : memref<2x64xf32, #tpu.memory_space<vmem>>, vector<1x4xf32>
    %c11_88 = arith.constant 11 : index
    %c4_89 = arith.constant 4 : index
    %63 = vector.load %arg16[%c11_88, %c4_89] : memref<16x8xf32, #tpu.memory_space<vmem>>, vector<1x4xf32>
    tpu.vector_store %arg16[%c11_88, %c4_89], %62 {strides = array<i32>} : memref<16x8xf32, #tpu.memory_space<vmem>>, vector<1x4xf32>,
    %c0_90 = arith.constant 0 : index
    %c48 = arith.constant 48 : index
    %64 = vector.load %arg15[%c0_90, %c48] : memref<2x64xf32, #tpu.memory_space<vmem>>, vector<1x4xf32>
    %c12_91 = arith.constant 12 : index
    %c0_92 = arith.constant 0 : index
    %65 = vector.load %arg16[%c12_91, %c0_92] : memref<16x8xf32, #tpu.memory_space<vmem>>, vector<1x4xf32>
    tpu.vector_store %arg16[%c12_91, %c0_92], %64 {strides = array<i32>} : memref<16x8xf32, #tpu.memory_space<vmem>>, vector<1x4xf32>,
    %c1_93 = arith.constant 1 : index
    %c48_94 = arith.constant 48 : index
    %66 = vector.load %arg15[%c1_93, %c48_94] : memref<2x64xf32, #tpu.memory_space<vmem>>, vector<1x4xf32>
    %c12_95 = arith.constant 12 : index
    %c4_96 = arith.constant 4 : index
    %67 = vector.load %arg16[%c12_95, %c4_96] : memref<16x8xf32, #tpu.memory_space<vmem>>, vector<1x4xf32>
    tpu.vector_store %arg16[%c12_95, %c4_96], %66 {strides = array<i32>} : memref<16x8xf32, #tpu.memory_space<vmem>>, vector<1x4xf32>,
    %c0_97 = arith.constant 0 : index
    %c52 = arith.constant 52 : index
    %68 = vector.load %arg15[%c0_97, %c52] : memref<2x64xf32, #tpu.memory_space<vmem>>, vector<1x4xf32>
    %c13 = arith.constant 13 : index
    %c0_98 = arith.constant 0 : index
    %69 = vector.load %arg16[%c13, %c0_98] : memref<16x8xf32, #tpu.memory_space<vmem>>, vector<1x4xf32>
    tpu.vector_store %arg16[%c13, %c0_98], %68 {strides = array<i32>} : memref<16x8xf32, #tpu.memory_space<vmem>>, vector<1x4xf32>,
    %c1_99 = arith.constant 1 : index
    %c52_100 = arith.constant 52 : index
    %70 = vector.load %arg15[%c1_99, %c52_100] : memref<2x64xf32, #tpu.memory_space<vmem>>, vector<1x4xf32>
    %c13_101 = arith.constant 13 : index
    %c4_102 = arith.constant 4 : index
    %71 = vector.load %arg16[%c13_101, %c4_102] : memref<16x8xf32, #tpu.memory_space<vmem>>, vector<1x4xf32>
    tpu.vector_store %arg16[%c13_101, %c4_102], %70 {strides = array<i32>} : memref<16x8xf32, #tpu.memory_space<vmem>>, vector<1x4xf32>,
    %c0_103 = arith.constant 0 : index
    %c56 = arith.constant 56 : index
    %72 = vector.load %arg15[%c0_103, %c56] : memref<2x64xf32, #tpu.memory_space<vmem>>, vector<1x4xf32>
    %c14 = arith.constant 14 : index
    %c0_104 = arith.constant 0 : index
    %73 = vector.load %arg16[%c14, %c0_104] : memref<16x8xf32, #tpu.memory_space<vmem>>, vector<1x4xf32>
    tpu.vector_store %arg16[%c14, %c0_104], %72 {strides = array<i32>} : memref<16x8xf32, #tpu.memory_space<vmem>>, vector<1x4xf32>,
    %c1_105 = arith.constant 1 : index
    %c56_106 = arith.constant 56 : index
    %74 = vector.load %arg15[%c1_105, %c56_106] : memref<2x64xf32, #tpu.memory_space<vmem>>, vector<1x4xf32>
    %c14_107 = arith.constant 14 : index
    %c4_108 = arith.constant 4 : index
    %75 = vector.load %arg16[%c14_107, %c4_108] : memref<16x8xf32, #tpu.memory_space<vmem>>, vector<1x4xf32>
    tpu.vector_store %arg16[%c14_107, %c4_108], %74 {strides = array<i32>} : memref<16x8xf32, #tpu.memory_space<vmem>>, vector<1x4xf32>,
    %c0_109 = arith.constant 0 : index
    %c60 = arith.constant 60 : index
    %76 = vector.load %arg15[%c0_109, %c60] : memref<2x64xf32, #tpu.memory_space<vmem>>, vector<1x4xf32>
    %c15 = arith.constant 15 : index
    %c0_110 = arith.constant 0 : index
    %77 = vector.load %arg16[%c15, %c0_110] : memref<16x8xf32, #tpu.memory_space<vmem>>, vector<1x4xf32>
    tpu.vector_store %arg16[%c15, %c0_110], %76 {strides = array<i32>} : memref<16x8xf32, #tpu.memory_space<vmem>>, vector<1x4xf32>,
    %c1_111 = arith.constant 1 : index
    %c60_112 = arith.constant 60 : index
    %78 = vector.load %arg15[%c1_111, %c60_112] : memref<2x64xf32, #tpu.memory_space<vmem>>, vector<1x4xf32>
    %c15_113 = arith.constant 15 : index
    %c4_114 = arith.constant 4 : index
    %79 = vector.load %arg16[%c15_113, %c4_114] : memref<16x8xf32, #tpu.memory_space<vmem>>, vector<1x4xf32>
    tpu.vector_store %arg16[%c15_113, %c4_114], %78 {strides = array<i32>} : memref<16x8xf32, #tpu.memory_space<vmem>>, vector<1x4xf32>,
    %c0_115 = arith.constant 0 : index
    %c0_116 = arith.constant 0 : index
    %80 = vector.load %arg16[%c0_115, %c0_116] : memref<16x8xf32, #tpu.memory_space<vmem>>, vector<16x8xf32>
    %cst_117 = arith.constant 0.000000e+00 : f32
    %81 = vector.broadcast %cst_117 : f32 to vector<16x32xf32>
    %c0_118 = arith.constant 0 : index
    %c0_119 = arith.constant 0 : index
    %c0_120 = arith.constant 0 : index
    %82 = vector.load %arg5[%c0_118, %c0_119, %c0_120] : memref<9x8x32xf32, #tpu.memory_space<vmem>>, vector<1x8x32xf32>
    %83 = vector.shape_cast %82 : vector<1x8x32xf32> to vector<8x32xf32>
    %cst_121 = arith.constant dense<0.000000e+00> : vector<16x32xf32>
    %84 = tpu.matmul %80, %83, %cst_121 {dimension_numbers = #tpu.dot_dimension_numbers<[1], [0], [0], [1], [0, 0, 1, 1], [], []>} : vector<16x8xf32>, vector<8x32xf32>, vector<16x32xf32> -> vector<16x32xf32>
    %c0_122 = arith.constant 0 : index
    %c0_123 = arith.constant 0 : index
    %c0_124 = arith.constant 0 : index
    %85 = vector.load %arg8[%c0_122, %c0_123, %c0_124] : memref<9x16x16xf32, #tpu.memory_space<vmem>>, vector<1x16x16xf32>
    %86 = vector.shape_cast %85 : vector<1x16x16xf32> to vector<16x16xf32>
    %cst_125 = arith.constant dense<0.000000e+00> : vector<16x32xf32>
    %87 = tpu.matmul %86, %84, %cst_125 {dimension_numbers = #tpu.dot_dimension_numbers<[1], [0], [0], [1], [0, 0, 1, 1], [], []>} : vector<16x16xf32>, vector<16x32xf32>, vector<16x32xf32> -> vector<16x32xf32>
    %88 = arith.addf %81, %87 : vector<16x32xf32>
    %c1_126 = arith.constant 1 : index
    %c0_127 = arith.constant 0 : index
    %c0_128 = arith.constant 0 : index
    %89 = vector.load %arg5[%c1_126, %c0_127, %c0_128] : memref<9x8x32xf32, #tpu.memory_space<vmem>>, vector<1x8x32xf32>
    %90 = vector.shape_cast %89 : vector<1x8x32xf32> to vector<8x32xf32>
    %cst_129 = arith.constant dense<0.000000e+00> : vector<16x32xf32>
    %91 = tpu.matmul %80, %90, %cst_129 {dimension_numbers = #tpu.dot_dimension_numbers<[1], [0], [0], [1], [0, 0, 1, 1], [], []>} : vector<16x8xf32>, vector<8x32xf32>, vector<16x32xf32> -> vector<16x32xf32>
    %c1_130 = arith.constant 1 : index
    %c0_131 = arith.constant 0 : index
    %c0_132 = arith.constant 0 : index
    %92 = vector.load %arg8[%c1_130, %c0_131, %c0_132] : memref<9x16x16xf32, #tpu.memory_space<vmem>>, vector<1x16x16xf32>
    %93 = vector.shape_cast %92 : vector<1x16x16xf32> to vector<16x16xf32>
    %cst_133 = arith.constant dense<0.000000e+00> : vector<16x32xf32>
    %94 = tpu.matmul %93, %91, %cst_133 {dimension_numbers = #tpu.dot_dimension_numbers<[1], [0], [0], [1], [0, 0, 1, 1], [], []>} : vector<16x16xf32>, vector<16x32xf32>, vector<16x32xf32> -> vector<16x32xf32>
    %95 = arith.addf %88, %94 : vector<16x32xf32>
    %c2_134 = arith.constant 2 : index
    %c0_135 = arith.constant 0 : index
    %c0_136 = arith.constant 0 : index
    %96 = vector.load %arg5[%c2_134, %c0_135, %c0_136] : memref<9x8x32xf32, #tpu.memory_space<vmem>>, vector<1x8x32xf32>
    %97 = vector.shape_cast %96 : vector<1x8x32xf32> to vector<8x32xf32>
    %cst_137 = arith.constant dense<0.000000e+00> : vector<16x32xf32>
    %98 = tpu.matmul %80, %97, %cst_137 {dimension_numbers = #tpu.dot_dimension_numbers<[1], [0], [0], [1], [0, 0, 1, 1], [], []>} : vector<16x8xf32>, vector<8x32xf32>, vector<16x32xf32> -> vector<16x32xf32>
    %c2_138 = arith.constant 2 : index
    %c0_139 = arith.constant 0 : index
    %c0_140 = arith.constant 0 : index
    %99 = vector.load %arg8[%c2_138, %c0_139, %c0_140] : memref<9x16x16xf32, #tpu.memory_space<vmem>>, vector<1x16x16xf32>
    %100 = vector.shape_cast %99 : vector<1x16x16xf32> to vector<16x16xf32>
    %cst_141 = arith.constant dense<0.000000e+00> : vector<16x32xf32>
    %101 = tpu.matmul %100, %98, %cst_141 {dimension_numbers = #tpu.dot_dimension_numbers<[1], [0], [0], [1], [0, 0, 1, 1], [], []>} : vector<16x16xf32>, vector<16x32xf32>, vector<16x32xf32> -> vector<16x32xf32>
    %102 = arith.addf %95, %101 : vector<16x32xf32>
    %c3_142 = arith.constant 3 : index
    %c0_143 = arith.constant 0 : index
    %c0_144 = arith.constant 0 : index
    %103 = vector.load %arg5[%c3_142, %c0_143, %c0_144] : memref<9x8x32xf32, #tpu.memory_space<vmem>>, vector<1x8x32xf32>
    %104 = vector.shape_cast %103 : vector<1x8x32xf32> to vector<8x32xf32>
    %cst_145 = arith.constant dense<0.000000e+00> : vector<16x32xf32>
    %105 = tpu.matmul %80, %104, %cst_145 {dimension_numbers = #tpu.dot_dimension_numbers<[1], [0], [0], [1], [0, 0, 1, 1], [], []>} : vector<16x8xf32>, vector<8x32xf32>, vector<16x32xf32> -> vector<16x32xf32>
    %c3_146 = arith.constant 3 : index
    %c0_147 = arith.constant 0 : index
    %c0_148 = arith.constant 0 : index
    %106 = vector.load %arg8[%c3_146, %c0_147, %c0_148] : memref<9x16x16xf32, #tpu.memory_space<vmem>>, vector<1x16x16xf32>
    %107 = vector.shape_cast %106 : vector<1x16x16xf32> to vector<16x16xf32>
    %cst_149 = arith.constant dense<0.000000e+00> : vector<16x32xf32>
    %108 = tpu.matmul %107, %105, %cst_149 {dimension_numbers = #tpu.dot_dimension_numbers<[1], [0], [0], [1], [0, 0, 1, 1], [], []>} : vector<16x16xf32>, vector<16x32xf32>, vector<16x32xf32> -> vector<16x32xf32>
    %109 = arith.addf %102, %108 : vector<16x32xf32>
    %c4_150 = arith.constant 4 : index
    %c0_151 = arith.constant 0 : index
    %c0_152 = arith.constant 0 : index
    %110 = vector.load %arg5[%c4_150, %c0_151, %c0_152] : memref<9x8x32xf32, #tpu.memory_space<vmem>>, vector<1x8x32xf32>
    %111 = vector.shape_cast %110 : vector<1x8x32xf32> to vector<8x32xf32>
    %cst_153 = arith.constant dense<0.000000e+00> : vector<16x32xf32>
    %112 = tpu.matmul %80, %111, %cst_153 {dimension_numbers = #tpu.dot_dimension_numbers<[1], [0], [0], [1], [0, 0, 1, 1], [], []>} : vector<16x8xf32>, vector<8x32xf32>, vector<16x32xf32> -> vector<16x32xf32>
    %c4_154 = arith.constant 4 : index
    %c0_155 = arith.constant 0 : index
    %c0_156 = arith.constant 0 : index
    %113 = vector.load %arg8[%c4_154, %c0_155, %c0_156] : memref<9x16x16xf32, #tpu.memory_space<vmem>>, vector<1x16x16xf32>
    %114 = vector.shape_cast %113 : vector<1x16x16xf32> to vector<16x16xf32>
    %cst_157 = arith.constant dense<0.000000e+00> : vector<16x32xf32>
    %115 = tpu.matmul %114, %112, %cst_157 {dimension_numbers = #tpu.dot_dimension_numbers<[1], [0], [0], [1], [0, 0, 1, 1], [], []>} : vector<16x16xf32>, vector<16x32xf32>, vector<16x32xf32> -> vector<16x32xf32>
    %116 = arith.addf %109, %115 : vector<16x32xf32>
    %c5_158 = arith.constant 5 : index
    %c0_159 = arith.constant 0 : index
    %c0_160 = arith.constant 0 : index
    %117 = vector.load %arg5[%c5_158, %c0_159, %c0_160] : memref<9x8x32xf32, #tpu.memory_space<vmem>>, vector<1x8x32xf32>
    %118 = vector.shape_cast %117 : vector<1x8x32xf32> to vector<8x32xf32>
    %cst_161 = arith.constant dense<0.000000e+00> : vector<16x32xf32>
    %119 = tpu.matmul %80, %118, %cst_161 {dimension_numbers = #tpu.dot_dimension_numbers<[1], [0], [0], [1], [0, 0, 1, 1], [], []>} : vector<16x8xf32>, vector<8x32xf32>, vector<16x32xf32> -> vector<16x32xf32>
    %c5_162 = arith.constant 5 : index
    %c0_163 = arith.constant 0 : index
    %c0_164 = arith.constant 0 : index
    %120 = vector.load %arg8[%c5_162, %c0_163, %c0_164] : memref<9x16x16xf32, #tpu.memory_space<vmem>>, vector<1x16x16xf32>
    %121 = vector.shape_cast %120 : vector<1x16x16xf32> to vector<16x16xf32>
    %cst_165 = arith.constant dense<0.000000e+00> : vector<16x32xf32>
    %122 = tpu.matmul %121, %119, %cst_165 {dimension_numbers = #tpu.dot_dimension_numbers<[1], [0], [0], [1], [0, 0, 1, 1], [], []>} : vector<16x16xf32>, vector<16x32xf32>, vector<16x32xf32> -> vector<16x32xf32>
    %123 = arith.addf %116, %122 : vector<16x32xf32>
    %c6_166 = arith.constant 6 : index
    %c0_167 = arith.constant 0 : index
    %c0_168 = arith.constant 0 : index
    %124 = vector.load %arg5[%c6_166, %c0_167, %c0_168] : memref<9x8x32xf32, #tpu.memory_space<vmem>>, vector<1x8x32xf32>
    %125 = vector.shape_cast %124 : vector<1x8x32xf32> to vector<8x32xf32>
    %cst_169 = arith.constant dense<0.000000e+00> : vector<16x32xf32>
    %126 = tpu.matmul %80, %125, %cst_169 {dimension_numbers = #tpu.dot_dimension_numbers<[1], [0], [0], [1], [0, 0, 1, 1], [], []>} : vector<16x8xf32>, vector<8x32xf32>, vector<16x32xf32> -> vector<16x32xf32>
    %c6_170 = arith.constant 6 : index
    %c0_171 = arith.constant 0 : index
    %c0_172 = arith.constant 0 : index
    %127 = vector.load %arg8[%c6_170, %c0_171, %c0_172] : memref<9x16x16xf32, #tpu.memory_space<vmem>>, vector<1x16x16xf32>
    %128 = vector.shape_cast %127 : vector<1x16x16xf32> to vector<16x16xf32>
    %cst_173 = arith.constant dense<0.000000e+00> : vector<16x32xf32>
    %129 = tpu.matmul %128, %126, %cst_173 {dimension_numbers = #tpu.dot_dimension_numbers<[1], [0], [0], [1], [0, 0, 1, 1], [], []>} : vector<16x16xf32>, vector<16x32xf32>, vector<16x32xf32> -> vector<16x32xf32>
    %130 = arith.addf %123, %129 : vector<16x32xf32>
    %c7_174 = arith.constant 7 : index
    %c0_175 = arith.constant 0 : index
    %c0_176 = arith.constant 0 : index
    %131 = vector.load %arg5[%c7_174, %c0_175, %c0_176] : memref<9x8x32xf32, #tpu.memory_space<vmem>>, vector<1x8x32xf32>
    %132 = vector.shape_cast %131 : vector<1x8x32xf32> to vector<8x32xf32>
    %cst_177 = arith.constant dense<0.000000e+00> : vector<16x32xf32>
    %133 = tpu.matmul %80, %132, %cst_177 {dimension_numbers = #tpu.dot_dimension_numbers<[1], [0], [0], [1], [0, 0, 1, 1], [], []>} : vector<16x8xf32>, vector<8x32xf32>, vector<16x32xf32> -> vector<16x32xf32>
    %c7_178 = arith.constant 7 : index
    %c0_179 = arith.constant 0 : index
    %c0_180 = arith.constant 0 : index
    %134 = vector.load %arg8[%c7_178, %c0_179, %c0_180] : memref<9x16x16xf32, #tpu.memory_space<vmem>>, vector<1x16x16xf32>
    %135 = vector.shape_cast %134 : vector<1x16x16xf32> to vector<16x16xf32>
    %cst_181 = arith.constant dense<0.000000e+00> : vector<16x32xf32>
    %136 = tpu.matmul %135, %133, %cst_181 {dimension_numbers = #tpu.dot_dimension_numbers<[1], [0], [0], [1], [0, 0, 1, 1], [], []>} : vector<16x16xf32>, vector<16x32xf32>, vector<16x32xf32> -> vector<16x32xf32>
    %137 = arith.addf %130, %136 : vector<16x32xf32>
    %c8_182 = arith.constant 8 : index
    %c0_183 = arith.constant 0 : index
    %c0_184 = arith.constant 0 : index
    %138 = vector.load %arg5[%c8_182, %c0_183, %c0_184] : memref<9x8x32xf32, #tpu.memory_space<vmem>>, vector<1x8x32xf32>
    %139 = vector.shape_cast %138 : vector<1x8x32xf32> to vector<8x32xf32>
    %cst_185 = arith.constant dense<0.000000e+00> : vector<16x32xf32>
    %140 = tpu.matmul %80, %139, %cst_185 {dimension_numbers = #tpu.dot_dimension_numbers<[1], [0], [0], [1], [0, 0, 1, 1], [], []>} : vector<16x8xf32>, vector<8x32xf32>, vector<16x32xf32> -> vector<16x32xf32>
    %c8_186 = arith.constant 8 : index
    %c0_187 = arith.constant 0 : index
    %c0_188 = arith.constant 0 : index
    %141 = vector.load %arg8[%c8_186, %c0_187, %c0_188] : memref<9x16x16xf32, #tpu.memory_space<vmem>>, vector<1x16x16xf32>
    %142 = vector.shape_cast %141 : vector<1x16x16xf32> to vector<16x16xf32>
    %cst_189 = arith.constant dense<0.000000e+00> : vector<16x32xf32>
    %143 = tpu.matmul %142, %140, %cst_189 {dimension_numbers = #tpu.dot_dimension_numbers<[1], [0], [0], [1], [0, 0, 1, 1], [], []>} : vector<16x16xf32>, vector<16x32xf32>, vector<16x32xf32> -> vector<16x32xf32>
    %144 = arith.addf %137, %143 : vector<16x32xf32>
    %c0_190 = arith.constant 0 : index
    %c0_191 = arith.constant 0 : index
    %145 = vector.load %arg9[%c0_190, %c0_191] : memref<16x1xf32, #tpu.memory_space<vmem>>, vector<16x1xf32>
    %146 = vector.broadcast %145 : vector<16x1xf32> to vector<16x32xf32>
    %147 = arith.addf %144, %146 : vector<16x32xf32>
    %cst_192 = arith.constant 0.000000e+00 : f32
    %148 = vector.broadcast %cst_192 : f32 to vector<16x32xf32>
    %149 = arith.maximumf %147, %148 : vector<16x32xf32>
    %cst_193 = arith.constant 0.000000e+00 : f32
    %150 = vector.broadcast %cst_193 : f32 to vector<16x128xf32>
    %c0_194 = arith.constant 0 : index
    %c0_195 = arith.constant 0 : index
    %c0_196 = arith.constant 0 : index
    %151 = vector.load %arg6[%c0_194, %c0_195, %c0_196] : memref<9x32x128xf32, #tpu.memory_space<vmem>>, vector<1x32x128xf32>
    %152 = vector.shape_cast %151 : vector<1x32x128xf32> to vector<32x128xf32>
    %cst_197 = arith.constant dense<0.000000e+00> : vector<16x128xf32>
    %153 = tpu.matmul %149, %152, %cst_197 {dimension_numbers = #tpu.dot_dimension_numbers<[1], [0], [0], [1], [0, 0, 1, 1], [], []>} : vector<16x32xf32>, vector<32x128xf32>, vector<16x128xf32> -> vector<16x128xf32>
    %c0_198 = arith.constant 0 : index
    %c0_199 = arith.constant 0 : index
    %c0_200 = arith.constant 0 : index
    %154 = vector.load %arg10[%c0_198, %c0_199, %c0_200] : memref<9x16x16xf32, #tpu.memory_space<vmem>>, vector<1x16x16xf32>
    %155 = vector.shape_cast %154 : vector<1x16x16xf32> to vector<16x16xf32>
    %cst_201 = arith.constant dense<0.000000e+00> : vector<16x128xf32>
    %156 = tpu.matmul %155, %153, %cst_201 {dimension_numbers = #tpu.dot_dimension_numbers<[1], [0], [0], [1], [0, 0, 1, 1], [], []>} : vector<16x16xf32>, vector<16x128xf32>, vector<16x128xf32> -> vector<16x128xf32>
    %157 = arith.addf %150, %156 : vector<16x128xf32>
    %c1_202 = arith.constant 1 : index
    %c0_203 = arith.constant 0 : index
    %c0_204 = arith.constant 0 : index
    %158 = vector.load %arg6[%c1_202, %c0_203, %c0_204] : memref<9x32x128xf32, #tpu.memory_space<vmem>>, vector<1x32x128xf32>
    %159 = vector.shape_cast %158 : vector<1x32x128xf32> to vector<32x128xf32>
    %cst_205 = arith.constant dense<0.000000e+00> : vector<16x128xf32>
    %160 = tpu.matmul %149, %159, %cst_205 {dimension_numbers = #tpu.dot_dimension_numbers<[1], [0], [0], [1], [0, 0, 1, 1], [], []>} : vector<16x32xf32>, vector<32x128xf32>, vector<16x128xf32> -> vector<16x128xf32>
    %c1_206 = arith.constant 1 : index
    %c0_207 = arith.constant 0 : index
    %c0_208 = arith.constant 0 : index
    %161 = vector.load %arg10[%c1_206, %c0_207, %c0_208] : memref<9x16x16xf32, #tpu.memory_space<vmem>>, vector<1x16x16xf32>
    %162 = vector.shape_cast %161 : vector<1x16x16xf32> to vector<16x16xf32>
    %cst_209 = arith.constant dense<0.000000e+00> : vector<16x128xf32>
    %163 = tpu.matmul %162, %160, %cst_209 {dimension_numbers = #tpu.dot_dimension_numbers<[1], [0], [0], [1], [0, 0, 1, 1], [], []>} : vector<16x16xf32>, vector<16x128xf32>, vector<16x128xf32> -> vector<16x128xf32>
    %164 = arith.addf %157, %163 : vector<16x128xf32>
    %c2_210 = arith.constant 2 : index
    %c0_211 = arith.constant 0 : index
    %c0_212 = arith.constant 0 : index
    %165 = vector.load %arg6[%c2_210, %c0_211, %c0_212] : memref<9x32x128xf32, #tpu.memory_space<vmem>>, vector<1x32x128xf32>
    %166 = vector.shape_cast %165 : vector<1x32x128xf32> to vector<32x128xf32>
    %cst_213 = arith.constant dense<0.000000e+00> : vector<16x128xf32>
    %167 = tpu.matmul %149, %166, %cst_213 {dimension_numbers = #tpu.dot_dimension_numbers<[1], [0], [0], [1], [0, 0, 1, 1], [], []>} : vector<16x32xf32>, vector<32x128xf32>, vector<16x128xf32> -> vector<16x128xf32>
    %c2_214 = arith.constant 2 : index
    %c0_215 = arith.constant 0 : index
    %c0_216 = arith.constant 0 : index
    %168 = vector.load %arg10[%c2_214, %c0_215, %c0_216] : memref<9x16x16xf32, #tpu.memory_space<vmem>>, vector<1x16x16xf32>
    %169 = vector.shape_cast %168 : vector<1x16x16xf32> to vector<16x16xf32>
    %cst_217 = arith.constant dense<0.000000e+00> : vector<16x128xf32>
    %170 = tpu.matmul %169, %167, %cst_217 {dimension_numbers = #tpu.dot_dimension_numbers<[1], [0], [0], [1], [0, 0, 1, 1], [], []>} : vector<16x16xf32>, vector<16x128xf32>, vector<16x128xf32> -> vector<16x128xf32>
    %171 = arith.addf %164, %170 : vector<16x128xf32>
    %c3_218 = arith.constant 3 : index
    %c0_219 = arith.constant 0 : index
    %c0_220 = arith.constant 0 : index
    %172 = vector.load %arg6[%c3_218, %c0_219, %c0_220] : memref<9x32x128xf32, #tpu.memory_space<vmem>>, vector<1x32x128xf32>
    %173 = vector.shape_cast %172 : vector<1x32x128xf32> to vector<32x128xf32>
    %cst_221 = arith.constant dense<0.000000e+00> : vector<16x128xf32>
    %174 = tpu.matmul %149, %173, %cst_221 {dimension_numbers = #tpu.dot_dimension_numbers<[1], [0], [0], [1], [0, 0, 1, 1], [], []>} : vector<16x32xf32>, vector<32x128xf32>, vector<16x128xf32> -> vector<16x128xf32>
    %c3_222 = arith.constant 3 : index
    %c0_223 = arith.constant 0 : index
    %c0_224 = arith.constant 0 : index
    %175 = vector.load %arg10[%c3_222, %c0_223, %c0_224] : memref<9x16x16xf32, #tpu.memory_space<vmem>>, vector<1x16x16xf32>
    %176 = vector.shape_cast %175 : vector<1x16x16xf32> to vector<16x16xf32>
    %cst_225 = arith.constant dense<0.000000e+00> : vector<16x128xf32>
    %177 = tpu.matmul %176, %174, %cst_225 {dimension_numbers = #tpu.dot_dimension_numbers<[1], [0], [0], [1], [0, 0, 1, 1], [], []>} : vector<16x16xf32>, vector<16x128xf32>, vector<16x128xf32> -> vector<16x128xf32>
    %178 = arith.addf %171, %177 : vector<16x128xf32>
    %c4_226 = arith.constant 4 : index
    %c0_227 = arith.constant 0 : index
    %c0_228 = arith.constant 0 : index
    %179 = vector.load %arg6[%c4_226, %c0_227, %c0_228] : memref<9x32x128xf32, #tpu.memory_space<vmem>>, vector<1x32x128xf32>
    %180 = vector.shape_cast %179 : vector<1x32x128xf32> to vector<32x128xf32>
    %cst_229 = arith.constant dense<0.000000e+00> : vector<16x128xf32>
    %181 = tpu.matmul %149, %180, %cst_229 {dimension_numbers = #tpu.dot_dimension_numbers<[1], [0], [0], [1], [0, 0, 1, 1], [], []>} : vector<16x32xf32>, vector<32x128xf32>, vector<16x128xf32> -> vector<16x128xf32>
    %c4_230 = arith.constant 4 : index
    %c0_231 = arith.constant 0 : index
    %c0_232 = arith.constant 0 : index
    %182 = vector.load %arg10[%c4_230, %c0_231, %c0_232] : memref<9x16x16xf32, #tpu.memory_space<vmem>>, vector<1x16x16xf32>
    %183 = vector.shape_cast %182 : vector<1x16x16xf32> to vector<16x16xf32>
    %cst_233 = arith.constant dense<0.000000e+00> : vector<16x128xf32>
    %184 = tpu.matmul %183, %181, %cst_233 {dimension_numbers = #tpu.dot_dimension_numbers<[1], [0], [0], [1], [0, 0, 1, 1], [], []>} : vector<16x16xf32>, vector<16x128xf32>, vector<16x128xf32> -> vector<16x128xf32>
    %185 = arith.addf %178, %184 : vector<16x128xf32>
    %c5_234 = arith.constant 5 : index
    %c0_235 = arith.constant 0 : index
    %c0_236 = arith.constant 0 : index
    %186 = vector.load %arg6[%c5_234, %c0_235, %c0_236] : memref<9x32x128xf32, #tpu.memory_space<vmem>>, vector<1x32x128xf32>
    %187 = vector.shape_cast %186 : vector<1x32x128xf32> to vector<32x128xf32>
    %cst_237 = arith.constant dense<0.000000e+00> : vector<16x128xf32>
    %188 = tpu.matmul %149, %187, %cst_237 {dimension_numbers = #tpu.dot_dimension_numbers<[1], [0], [0], [1], [0, 0, 1, 1], [], []>} : vector<16x32xf32>, vector<32x128xf32>, vector<16x128xf32> -> vector<16x128xf32>
    %c5_238 = arith.constant 5 : index
    %c0_239 = arith.constant 0 : index
    %c0_240 = arith.constant 0 : index
    %189 = vector.load %arg10[%c5_238, %c0_239, %c0_240] : memref<9x16x16xf32, #tpu.memory_space<vmem>>, vector<1x16x16xf32>
    %190 = vector.shape_cast %189 : vector<1x16x16xf32> to vector<16x16xf32>
    %cst_241 = arith.constant dense<0.000000e+00> : vector<16x128xf32>
    %191 = tpu.matmul %190, %188, %cst_241 {dimension_numbers = #tpu.dot_dimension_numbers<[1], [0], [0], [1], [0, 0, 1, 1], [], []>} : vector<16x16xf32>, vector<16x128xf32>, vector<16x128xf32> -> vector<16x128xf32>
    %192 = arith.addf %185, %191 : vector<16x128xf32>
    %c6_242 = arith.constant 6 : index
    %c0_243 = arith.constant 0 : index
    %c0_244 = arith.constant 0 : index
    %193 = vector.load %arg6[%c6_242, %c0_243, %c0_244] : memref<9x32x128xf32, #tpu.memory_space<vmem>>, vector<1x32x128xf32>
    %194 = vector.shape_cast %193 : vector<1x32x128xf32> to vector<32x128xf32>
    %cst_245 = arith.constant dense<0.000000e+00> : vector<16x128xf32>
    %195 = tpu.matmul %149, %194, %cst_245 {dimension_numbers = #tpu.dot_dimension_numbers<[1], [0], [0], [1], [0, 0, 1, 1], [], []>} : vector<16x32xf32>, vector<32x128xf32>, vector<16x128xf32> -> vector<16x128xf32>
    %c6_246 = arith.constant 6 : index
    %c0_247 = arith.constant 0 : index
    %c0_248 = arith.constant 0 : index
    %196 = vector.load %arg10[%c6_246, %c0_247, %c0_248] : memref<9x16x16xf32, #tpu.memory_space<vmem>>, vector<1x16x16xf32>
    %197 = vector.shape_cast %196 : vector<1x16x16xf32> to vector<16x16xf32>
    %cst_249 = arith.constant dense<0.000000e+00> : vector<16x128xf32>
    %198 = tpu.matmul %197, %195, %cst_249 {dimension_numbers = #tpu.dot_dimension_numbers<[1], [0], [0], [1], [0, 0, 1, 1], [], []>} : vector<16x16xf32>, vector<16x128xf32>, vector<16x128xf32> -> vector<16x128xf32>
    %199 = arith.addf %192, %198 : vector<16x128xf32>
    %c7_250 = arith.constant 7 : index
    %c0_251 = arith.constant 0 : index
    %c0_252 = arith.constant 0 : index
    %200 = vector.load %arg6[%c7_250, %c0_251, %c0_252] : memref<9x32x128xf32, #tpu.memory_space<vmem>>, vector<1x32x128xf32>
    %201 = vector.shape_cast %200 : vector<1x32x128xf32> to vector<32x128xf32>
    %cst_253 = arith.constant dense<0.000000e+00> : vector<16x128xf32>
    %202 = tpu.matmul %149, %201, %cst_253 {dimension_numbers = #tpu.dot_dimension_numbers<[1], [0], [0], [1], [0, 0, 1, 1], [], []>} : vector<16x32xf32>, vector<32x128xf32>, vector<16x128xf32> -> vector<16x128xf32>
    %c7_254 = arith.constant 7 : index
    %c0_255 = arith.constant 0 : index
    %c0_256 = arith.constant 0 : index
    %203 = vector.load %arg10[%c7_254, %c0_255, %c0_256] : memref<9x16x16xf32, #tpu.memory_space<vmem>>, vector<1x16x16xf32>
    %204 = vector.shape_cast %203 : vector<1x16x16xf32> to vector<16x16xf32>
    %cst_257 = arith.constant dense<0.000000e+00> : vector<16x128xf32>
    %205 = tpu.matmul %204, %202, %cst_257 {dimension_numbers = #tpu.dot_dimension_numbers<[1], [0], [0], [1], [0, 0, 1, 1], [], []>} : vector<16x16xf32>, vector<16x128xf32>, vector<16x128xf32> -> vector<16x128xf32>
    %206 = arith.addf %199, %205 : vector<16x128xf32>
    %c8_258 = arith.constant 8 : index
    %c0_259 = arith.constant 0 : index
    %c0_260 = arith.constant 0 : index
    %207 = vector.load %arg6[%c8_258, %c0_259, %c0_260] : memref<9x32x128xf32, #tpu.memory_space<vmem>>, vector<1x32x128xf32>
    %208 = vector.shape_cast %207 : vector<1x32x128xf32> to vector<32x128xf32>
    %cst_261 = arith.constant dense<0.000000e+00> : vector<16x128xf32>
    %209 = tpu.matmul %149, %208, %cst_261 {dimension_numbers = #tpu.dot_dimension_numbers<[1], [0], [0], [1], [0, 0, 1, 1], [], []>} : vector<16x32xf32>, vector<32x128xf32>, vector<16x128xf32> -> vector<16x128xf32>
    %c8_262 = arith.constant 8 : index
    %c0_263 = arith.constant 0 : index
    %c0_264 = arith.constant 0 : index
    %210 = vector.load %arg10[%c8_262, %c0_263, %c0_264] : memref<9x16x16xf32, #tpu.memory_space<vmem>>, vector<1x16x16xf32>
    %211 = vector.shape_cast %210 : vector<1x16x16xf32> to vector<16x16xf32>
    %cst_265 = arith.constant dense<0.000000e+00> : vector<16x128xf32>
    %212 = tpu.matmul %211, %209, %cst_265 {dimension_numbers = #tpu.dot_dimension_numbers<[1], [0], [0], [1], [0, 0, 1, 1], [], []>} : vector<16x16xf32>, vector<16x128xf32>, vector<16x128xf32> -> vector<16x128xf32>
    %213 = arith.addf %206, %212 : vector<16x128xf32>
    %c0_266 = arith.constant 0 : index
    %c0_267 = arith.constant 0 : index
    %214 = vector.load %arg11[%c0_266, %c0_267] : memref<16x1xf32, #tpu.memory_space<vmem>>, vector<16x1xf32>
    %215 = vector.broadcast %214 : vector<16x1xf32> to vector<16x128xf32>
    %216 = arith.addf %213, %215 : vector<16x128xf32>
    %cst_268 = arith.constant 0.000000e+00 : f32
    %217 = vector.broadcast %cst_268 : f32 to vector<16x128xf32>
    %218 = arith.maximumf %216, %217 : vector<16x128xf32>
    %cst_269 = arith.constant 0.000000e+00 : f32
    %219 = vector.broadcast %cst_269 : f32 to vector<3x512xf32>
    %c0_270 = arith.constant 0 : index
    %c0_271 = arith.constant 0 : index
    %c0_272 = arith.constant 0 : index
    %220 = vector.load %arg7[%c0_270, %c0_271, %c0_272] : memref<9x128x512xf32, #tpu.memory_space<vmem>>, vector<1x128x512xf32>
    %221 = vector.shape_cast %220 : vector<1x128x512xf32> to vector<128x512xf32>
    %cst_273 = arith.constant dense<0.000000e+00> : vector<16x512xf32>
    %222 = tpu.matmul %218, %221, %cst_273 {dimension_numbers = #tpu.dot_dimension_numbers<[1], [0], [0], [1], [0, 0, 1, 1], [], []>} : vector<16x128xf32>, vector<128x512xf32>, vector<16x512xf32> -> vector<16x512xf32>
    %c0_274 = arith.constant 0 : index
    %c0_275 = arith.constant 0 : index
    %c0_276 = arith.constant 0 : index
    %223 = vector.load %arg12[%c0_274, %c0_275, %c0_276] : memref<9x3x16xf32, #tpu.memory_space<vmem>>, vector<1x3x16xf32>
    %224 = vector.shape_cast %223 : vector<1x3x16xf32> to vector<3x16xf32>
    %cst_277 = arith.constant dense<0.000000e+00> : vector<3x512xf32>
    %225 = tpu.matmul %224, %222, %cst_277 {dimension_numbers = #tpu.dot_dimension_numbers<[1], [0], [0], [1], [0, 0, 1, 1], [], []>} : vector<3x16xf32>, vector<16x512xf32>, vector<3x512xf32> -> vector<3x512xf32>
    %226 = arith.addf %219, %225 : vector<3x512xf32>
    %c1_278 = arith.constant 1 : index
    %c0_279 = arith.constant 0 : index
    %c0_280 = arith.constant 0 : index
    %227 = vector.load %arg7[%c1_278, %c0_279, %c0_280] : memref<9x128x512xf32, #tpu.memory_space<vmem>>, vector<1x128x512xf32>
    %228 = vector.shape_cast %227 : vector<1x128x512xf32> to vector<128x512xf32>
    %cst_281 = arith.constant dense<0.000000e+00> : vector<16x512xf32>
    %229 = tpu.matmul %218, %228, %cst_281 {dimension_numbers = #tpu.dot_dimension_numbers<[1], [0], [0], [1], [0, 0, 1, 1], [], []>} : vector<16x128xf32>, vector<128x512xf32>, vector<16x512xf32> -> vector<16x512xf32>
    %c1_282 = arith.constant 1 : index
    %c0_283 = arith.constant 0 : index
    %c0_284 = arith.constant 0 : index
    %230 = vector.load %arg12[%c1_282, %c0_283, %c0_284] : memref<9x3x16xf32, #tpu.memory_space<vmem>>, vector<1x3x16xf32>
    %231 = vector.shape_cast %230 : vector<1x3x16xf32> to vector<3x16xf32>
    %cst_285 = arith.constant dense<0.000000e+00> : vector<3x512xf32>
    %232 = tpu.matmul %231, %229, %cst_285 {dimension_numbers = #tpu.dot_dimension_numbers<[1], [0], [0], [1], [0, 0, 1, 1], [], []>} : vector<3x16xf32>, vector<16x512xf32>, vector<3x512xf32> -> vector<3x512xf32>
    %233 = arith.addf %226, %232 : vector<3x512xf32>
    %c2_286 = arith.constant 2 : index
    %c0_287 = arith.constant 0 : index
    %c0_288 = arith.constant 0 : index
    %234 = vector.load %arg7[%c2_286, %c0_287, %c0_288] : memref<9x128x512xf32, #tpu.memory_space<vmem>>, vector<1x128x512xf32>
    %235 = vector.shape_cast %234 : vector<1x128x512xf32> to vector<128x512xf32>
    %cst_289 = arith.constant dense<0.000000e+00> : vector<16x512xf32>
    %236 = tpu.matmul %218, %235, %cst_289 {dimension_numbers = #tpu.dot_dimension_numbers<[1], [0], [0], [1], [0, 0, 1, 1], [], []>} : vector<16x128xf32>, vector<128x512xf32>, vector<16x512xf32> -> vector<16x512xf32>
    %c2_290 = arith.constant 2 : index
    %c0_291 = arith.constant 0 : index
    %c0_292 = arith.constant 0 : index
    %237 = vector.load %arg12[%c2_290, %c0_291, %c0_292] : memref<9x3x16xf32, #tpu.memory_space<vmem>>, vector<1x3x16xf32>
    %238 = vector.shape_cast %237 : vector<1x3x16xf32> to vector<3x16xf32>
    %cst_293 = arith.constant dense<0.000000e+00> : vector<3x512xf32>
    %239 = tpu.matmul %238, %236, %cst_293 {dimension_numbers = #tpu.dot_dimension_numbers<[1], [0], [0], [1], [0, 0, 1, 1], [], []>} : vector<3x16xf32>, vector<16x512xf32>, vector<3x512xf32> -> vector<3x512xf32>
    %240 = arith.addf %233, %239 : vector<3x512xf32>
    %c3_294 = arith.constant 3 : index
    %c0_295 = arith.constant 0 : index
    %c0_296 = arith.constant 0 : index
    %241 = vector.load %arg7[%c3_294, %c0_295, %c0_296] : memref<9x128x512xf32, #tpu.memory_space<vmem>>, vector<1x128x512xf32>
    %242 = vector.shape_cast %241 : vector<1x128x512xf32> to vector<128x512xf32>
    %cst_297 = arith.constant dense<0.000000e+00> : vector<16x512xf32>
    %243 = tpu.matmul %218, %242, %cst_297 {dimension_numbers = #tpu.dot_dimension_numbers<[1], [0], [0], [1], [0, 0, 1, 1], [], []>} : vector<16x128xf32>, vector<128x512xf32>, vector<16x512xf32> -> vector<16x512xf32>
    %c3_298 = arith.constant 3 : index
    %c0_299 = arith.constant 0 : index
    %c0_300 = arith.constant 0 : index
    %244 = vector.load %arg12[%c3_298, %c0_299, %c0_300] : memref<9x3x16xf32, #tpu.memory_space<vmem>>, vector<1x3x16xf32>
    %245 = vector.shape_cast %244 : vector<1x3x16xf32> to vector<3x16xf32>
    %cst_301 = arith.constant dense<0.000000e+00> : vector<3x512xf32>
    %246 = tpu.matmul %245, %243, %cst_301 {dimension_numbers = #tpu.dot_dimension_numbers<[1], [0], [0], [1], [0, 0, 1, 1], [], []>} : vector<3x16xf32>, vector<16x512xf32>, vector<3x512xf32> -> vector<3x512xf32>
    %247 = arith.addf %240, %246 : vector<3x512xf32>
    %c4_302 = arith.constant 4 : index
    %c0_303 = arith.constant 0 : index
    %c0_304 = arith.constant 0 : index
    %248 = vector.load %arg7[%c4_302, %c0_303, %c0_304] : memref<9x128x512xf32, #tpu.memory_space<vmem>>, vector<1x128x512xf32>
    %249 = vector.shape_cast %248 : vector<1x128x512xf32> to vector<128x512xf32>
    %cst_305 = arith.constant dense<0.000000e+00> : vector<16x512xf32>
    %250 = tpu.matmul %218, %249, %cst_305 {dimension_numbers = #tpu.dot_dimension_numbers<[1], [0], [0], [1], [0, 0, 1, 1], [], []>} : vector<16x128xf32>, vector<128x512xf32>, vector<16x512xf32> -> vector<16x512xf32>
    %c4_306 = arith.constant 4 : index
    %c0_307 = arith.constant 0 : index
    %c0_308 = arith.constant 0 : index
    %251 = vector.load %arg12[%c4_306, %c0_307, %c0_308] : memref<9x3x16xf32, #tpu.memory_space<vmem>>, vector<1x3x16xf32>
    %252 = vector.shape_cast %251 : vector<1x3x16xf32> to vector<3x16xf32>
    %cst_309 = arith.constant dense<0.000000e+00> : vector<3x512xf32>
    %253 = tpu.matmul %252, %250, %cst_309 {dimension_numbers = #tpu.dot_dimension_numbers<[1], [0], [0], [1], [0, 0, 1, 1], [], []>} : vector<3x16xf32>, vector<16x512xf32>, vector<3x512xf32> -> vector<3x512xf32>
    %254 = arith.addf %247, %253 : vector<3x512xf32>
    %c5_310 = arith.constant 5 : index
    %c0_311 = arith.constant 0 : index
    %c0_312 = arith.constant 0 : index
    %255 = vector.load %arg7[%c5_310, %c0_311, %c0_312] : memref<9x128x512xf32, #tpu.memory_space<vmem>>, vector<1x128x512xf32>
    %256 = vector.shape_cast %255 : vector<1x128x512xf32> to vector<128x512xf32>
    %cst_313 = arith.constant dense<0.000000e+00> : vector<16x512xf32>
    %257 = tpu.matmul %218, %256, %cst_313 {dimension_numbers = #tpu.dot_dimension_numbers<[1], [0], [0], [1], [0, 0, 1, 1], [], []>} : vector<16x128xf32>, vector<128x512xf32>, vector<16x512xf32> -> vector<16x512xf32>
    %c5_314 = arith.constant 5 : index
    %c0_315 = arith.constant 0 : index
    %c0_316 = arith.constant 0 : index
    %258 = vector.load %arg12[%c5_314, %c0_315, %c0_316] : memref<9x3x16xf32, #tpu.memory_space<vmem>>, vector<1x3x16xf32>
    %259 = vector.shape_cast %258 : vector<1x3x16xf32> to vector<3x16xf32>
    %cst_317 = arith.constant dense<0.000000e+00> : vector<3x512xf32>
    %260 = tpu.matmul %259, %257, %cst_317 {dimension_numbers = #tpu.dot_dimension_numbers<[1], [0], [0], [1], [0, 0, 1, 1], [], []>} : vector<3x16xf32>, vector<16x512xf32>, vector<3x512xf32> -> vector<3x512xf32>
    %261 = arith.addf %254, %260 : vector<3x512xf32>
    %c6_318 = arith.constant 6 : index
    %c0_319 = arith.constant 0 : index
    %c0_320 = arith.constant 0 : index
    %262 = vector.load %arg7[%c6_318, %c0_319, %c0_320] : memref<9x128x512xf32, #tpu.memory_space<vmem>>, vector<1x128x512xf32>
    %263 = vector.shape_cast %262 : vector<1x128x512xf32> to vector<128x512xf32>
    %cst_321 = arith.constant dense<0.000000e+00> : vector<16x512xf32>
    %264 = tpu.matmul %218, %263, %cst_321 {dimension_numbers = #tpu.dot_dimension_numbers<[1], [0], [0], [1], [0, 0, 1, 1], [], []>} : vector<16x128xf32>, vector<128x512xf32>, vector<16x512xf32> -> vector<16x512xf32>
    %c6_322 = arith.constant 6 : index
    %c0_323 = arith.constant 0 : index
    %c0_324 = arith.constant 0 : index
    %265 = vector.load %arg12[%c6_322, %c0_323, %c0_324] : memref<9x3x16xf32, #tpu.memory_space<vmem>>, vector<1x3x16xf32>
    %266 = vector.shape_cast %265 : vector<1x3x16xf32> to vector<3x16xf32>
    %cst_325 = arith.constant dense<0.000000e+00> : vector<3x512xf32>
    %267 = tpu.matmul %266, %264, %cst_325 {dimension_numbers = #tpu.dot_dimension_numbers<[1], [0], [0], [1], [0, 0, 1, 1], [], []>} : vector<3x16xf32>, vector<16x512xf32>, vector<3x512xf32> -> vector<3x512xf32>
    %268 = arith.addf %261, %267 : vector<3x512xf32>
    %c7_326 = arith.constant 7 : index
    %c0_327 = arith.constant 0 : index
    %c0_328 = arith.constant 0 : index
    %269 = vector.load %arg7[%c7_326, %c0_327, %c0_328] : memref<9x128x512xf32, #tpu.memory_space<vmem>>, vector<1x128x512xf32>
    %270 = vector.shape_cast %269 : vector<1x128x512xf32> to vector<128x512xf32>
    %cst_329 = arith.constant dense<0.000000e+00> : vector<16x512xf32>
    %271 = tpu.matmul %218, %270, %cst_329 {dimension_numbers = #tpu.dot_dimension_numbers<[1], [0], [0], [1], [0, 0, 1, 1], [], []>} : vector<16x128xf32>, vector<128x512xf32>, vector<16x512xf32> -> vector<16x512xf32>
    %c7_330 = arith.constant 7 : index
    %c0_331 = arith.constant 0 : index
    %c0_332 = arith.constant 0 : index
    %272 = vector.load %arg12[%c7_330, %c0_331, %c0_332] : memref<9x3x16xf32, #tpu.memory_space<vmem>>, vector<1x3x16xf32>
    %273 = vector.shape_cast %272 : vector<1x3x16xf32> to vector<3x16xf32>
    %cst_333 = arith.constant dense<0.000000e+00> : vector<3x512xf32>
    %274 = tpu.matmul %273, %271, %cst_333 {dimension_numbers = #tpu.dot_dimension_numbers<[1], [0], [0], [1], [0, 0, 1, 1], [], []>} : vector<3x16xf32>, vector<16x512xf32>, vector<3x512xf32> -> vector<3x512xf32>
    %275 = arith.addf %268, %274 : vector<3x512xf32>
    %c8_334 = arith.constant 8 : index
    %c0_335 = arith.constant 0 : index
    %c0_336 = arith.constant 0 : index
    %276 = vector.load %arg7[%c8_334, %c0_335, %c0_336] : memref<9x128x512xf32, #tpu.memory_space<vmem>>, vector<1x128x512xf32>
    %277 = vector.shape_cast %276 : vector<1x128x512xf32> to vector<128x512xf32>
    %cst_337 = arith.constant dense<0.000000e+00> : vector<16x512xf32>
    %278 = tpu.matmul %218, %277, %cst_337 {dimension_numbers = #tpu.dot_dimension_numbers<[1], [0], [0], [1], [0, 0, 1, 1], [], []>} : vector<16x128xf32>, vector<128x512xf32>, vector<16x512xf32> -> vector<16x512xf32>
    %c8_338 = arith.constant 8 : index
    %c0_339 = arith.constant 0 : index
    %c0_340 = arith.constant 0 : index
    %279 = vector.load %arg12[%c8_338, %c0_339, %c0_340] : memref<9x3x16xf32, #tpu.memory_space<vmem>>, vector<1x3x16xf32>
    %280 = vector.shape_cast %279 : vector<1x3x16xf32> to vector<3x16xf32>
    %cst_341 = arith.constant dense<0.000000e+00> : vector<3x512xf32>
    %281 = tpu.matmul %280, %278, %cst_341 {dimension_numbers = #tpu.dot_dimension_numbers<[1], [0], [0], [1], [0, 0, 1, 1], [], []>} : vector<3x16xf32>, vector<16x512xf32>, vector<3x512xf32> -> vector<3x512xf32>
    %282 = arith.addf %275, %281 : vector<3x512xf32>
    %c0_342 = arith.constant 0 : index
    %c0_343 = arith.constant 0 : index
    %283 = vector.load %arg13[%c0_342, %c0_343] : memref<3x1xf32, #tpu.memory_space<vmem>>, vector<3x1xf32>
    %284 = vector.broadcast %283 : vector<3x1xf32> to vector<3x512xf32>
    %285 = arith.addf %282, %284 : vector<3x512xf32>
    %cst_344 = arith.constant 0.000000e+00 : f32
    %286 = vector.broadcast %cst_344 : f32 to vector<3x512xf32>
    %287 = arith.subf %286, %285 : vector<3x512xf32>
    %288 = math.exp %287 : vector<3x512xf32>
    %cst_345 = arith.constant 1.000000e+00 : f32
    %289 = vector.broadcast %cst_345 : f32 to vector<3x512xf32>
    %290 = arith.addf %289, %288 : vector<3x512xf32>
    %291 = tpu.reciprocal %290 {approx = true} : vector<3x512xf32> -> vector<3x512xf32>
    %cst_346 = arith.constant 1.000000e+00 : f32
    %292 = vector.broadcast %cst_346 : f32 to vector<3x512xf32>
    %293 = arith.minimumf %291, %292 : vector<3x512xf32>
    %c0_347 = arith.constant 0 : index
    %c0_348 = arith.constant 0 : index
    %294 = vector.load %arg14[%c0_347, %c0_348] : memref<3x512xf32, #tpu.memory_space<vmem>>, vector<3x512xf32>
    tpu.vector_store %arg14[%c0_347, %c0_348], %293 {strides = array<i32>} : memref<3x512xf32, #tpu.memory_space<vmem>>, vector<3x512xf32>,
    return
  }
}

</mosaic_0001>

<bundles_post_ra>
// kernel: _forward.1
= control target key start
LH: loop header
LB: loop body
LE: loop exit
PB: predicated region body
PF: predicated region fallthrough
CT: control target
= control target key end

     0   :  { %19 = vsyncpa [#allocation5], 0  ;;  %s8380_s0 = inlined_call_operand.hbm [shape: f32[2,4], index: 0, kind: input, shape index: {}]   ;;  %s8381_s1 = inlined_call_operand.hbm [shape: f32[4,16], index: 1, kind: input, shape index: {}]   ;;  %s8382_s2 = inlined_call_operand.hbm [shape: f32[1,16], index: 2, kind: input, shape index: {}]   ;;  %s8383_s3 = inlined_call_operand.hbm [shape: f32[16,64], index: 3, kind: input, shape index: {}]   ;;  %s8384_s4 = inlined_call_operand.hbm [shape: f32[1,64], index: 4, kind: input, shape index: {}]   ;;  %s8385_s5 = inlined_call_operand.hbm [shape: f32[9,8,32], index: 5, kind: input, shape index: {}]   ;;  %s8386_s6 = inlined_call_operand.hbm [shape: f32[9,32,128], index: 6, kind: input, shape index: {}]   ;;  %s8387_s7 = inlined_call_operand.hbm [shape: f32[9,128,512], index: 7, kind: input, shape index: {}]   ;;  %s8388_s8 = inlined_call_operand.hbm [shape: f32[9,16,16], index: 8, kind: input, shape index: {}]   ;;  %s8389_s9 = inlined_call_operand.hbm [shape: f32[16,1], index: 9, kind: input, shape index: {}]   ;;  %s8390_s10 = inlined_call_operand.hbm [shape: f32[9,16,16], index: 10, kind: input, shape index: {}]   ;;  %s8391_s11 = inlined_call_operand.hbm [shape: f32[16,1], index: 11, kind: input, shape index: {}]   ;;  %s8392_s12 = inlined_call_operand.hbm [shape: f32[9,3,16], index: 12, kind: input, shape index: {}]   ;;  %s8393_s13 = inlined_call_operand.hbm [shape: f32[3,1], index: 13, kind: input, shape index: {}]   ;;  %s8394_s14 = inlined_call_operand.vmem [shape: f32[3,512], index: 14, kind: output, shape index: {}]  }
   0x1   :  { %20 = vsyncpa [#allocation7], 0 }
   0x2   :  { %21 = vsyncpa [#allocation10], 0 }
   0x3   :  { %22 = vsyncpa [#allocation13], 0 }
   0x4   :  { %23 = vsyncpa [#allocation16], 0 }
   0x5   :  { %24 = vsyncpa [#allocation19], 0 }
   0x6   :  { %25 = vsyncpa [#allocation22], 0 }
   0x7   :  { %26 = vsyncpa [#allocation25], 0  ;;  %s7847_s29 = smov [#allocation6]   ;;  %s7848_s15 = smov [#allocation9]  }
   0x8   :  { %s43_s30 = sshll.u32 %s7847_s29, 4  ;;  %s62_s16 = sshll.u32 %s7848_s15, 4  ;;  %s44_s30 = int_to_ptr.vmem [resolvable:$true] %s43_s30  ;;  %s63_s16 = int_to_ptr.vmem [resolvable:$true] %s62_s16 }
   0x9   :  { %s7559_s17 = scalar_lea.vmem %s44_s30, 64  ;;  %p7564_p1 = scmp.lt.s32.totalorder %s44_s30, %s44_s30 }
   0xa   :  { %p7560_p0 = scmp.ne.s32.totalorder %s44_s30, %s7559_s17  ;;  %p7565_p2 = scmp.lt.s32.totalorder %s7559_s17, %s7559_s17 }
   0xc   :  { %p7566_p3 = por %p7565_p2, %p7564_p1 }
   0xe   :  { %p7567_p4 = pnand %p7566_p3, %p7560_p0 }
  0x10   :  { %7570 = shalt.err (!%p7567_p4)
}
  0x11   :  { %46 = dma.hbm_to_vmem [thread:$0]  %s8381_s1, 64, %s44_s30, [#allocation7]  }
  0x12   :  { %s7579_s20 = scalar_lea.vmem %s63_s16, 256  ;;  %p7584_p6 = scmp.lt.s32.totalorder %s63_s16, %s63_s16 }
  0x13   :  { %p7580_p5 = scmp.ne.s32.totalorder %s63_s16, %s7579_s20  ;;  %p7585_p7 = scmp.lt.s32.totalorder %s7579_s20, %s7579_s20 }
  0x15   :  { %p7586_p8 = por %p7585_p7, %p7584_p6 }
  0x17   :  { %p7587_p9 = pnand %p7586_p8, %p7580_p5 }
  0x19   :  { %7590 = shalt.err (!%p7587_p9)
}
  0x1a   :  { %s7849_s21 = smov 128   ;;  %s7850_s22 = smov 8  }
  0x1b   :  { %68 = dma.hbm_to_vmem [thread:$0]  %s8383_s3, 256, %s63_s16, [#allocation10], %s7849_s21, %s7849_s21, %s7850_s22  }
  0x1c   :  { %s7851_s25 = smov [#allocation12]   ;;  %s7852_s27 = smov [#allocation15]  }
  0x1d   :  { %s84_s26 = sshll.u32 %s7851_s25, 4  ;;  %s108_s1 = sshll.u32 %s7852_s27, 4  ;;  %s85_s26 = int_to_ptr.vmem [resolvable:$true] %s84_s26  ;;  %s109_s1 = int_to_ptr.vmem [resolvable:$true] %s108_s1 }
  0x1e   :  { %s7599_s28 = scalar_lea.vmem %s85_s26, 1152  ;;  %p7604_p11 = scmp.lt.s32.totalorder %s85_s26, %s85_s26 }
  0x1f   :  { %p7600_p10 = scmp.ne.s32.totalorder %s85_s26, %s7599_s28  ;;  %p7605_p12 = scmp.lt.s32.totalorder %s7599_s28, %s7599_s28 }
  0x21   :  { %p7606_p13 = por %p7605_p12, %p7604_p11 }
  0x23   :  { %p7607_p0 = pnand %p7606_p13, %p7600_p10 }
  0x25   :  { %7610 = shalt.err (!%p7607_p0)
}
  0x26   :  { %90 = dma.hbm_to_vmem [thread:$0]  %s8385_s5, 1152, %s85_s26, [#allocation13], %s7849_s21, %s7849_s21, %s7850_s22  }
  0x27   :  { %s7619_s3 = scalar_lea.vmem %s109_s1, 73728  ;;  %p7624_p2 = scmp.lt.s32.totalorder %s109_s1, %s109_s1 }
  0x28   :  { %p7620_p1 = scmp.ne.s32.totalorder %s109_s1, %s7619_s3  ;;  %p7625_p3 = scmp.lt.s32.totalorder %s7619_s3, %s7619_s3 }
  0x2a   :  { %p7626_p4 = por %p7625_p3, %p7624_p2 }
  0x2c   :  { %p7627_p5 = pnand %p7626_p4, %p7620_p1 }
  0x2e   :  { %7630 = shalt.err (!%p7627_p5)
}
  0x2f   :  { %s7853_s15 = smov 512   ;;  %s7854_s16 = smov 32  }
  0x30   :  { %114 = dma.hbm_to_vmem [thread:$0]  %s8387_s7, 73728, %s109_s1, [#allocation16], %s7853_s15, %s7853_s15, %s7854_s16  }
  0x31   :  { %s7855_s19 = smov [#allocation18]   ;;  %s7856_s23 = smov [#allocation21]  }
  0x32   :  { %s132_s20 = sshll.u32 %s7855_s19, 4  ;;  %s156_s24 = sshll.u32 %s7856_s23, 4  ;;  %s133_s20 = int_to_ptr.vmem [resolvable:$true] %s132_s20  ;;  %s157_s24 = int_to_ptr.vmem [resolvable:$true] %s156_s24 }
  0x33   :  { %s7639_s5 = scalar_lea.vmem %s133_s20, 256  ;;  %p7644_p7 = scmp.lt.s32.totalorder %s133_s20, %s133_s20 }
  0x34   :  { %p7640_p6 = scmp.ne.s32.totalorder %s133_s20, %s7639_s5  ;;  %p7645_p8 = scmp.lt.s32.totalorder %s7639_s5, %s7639_s5 }
  0x36   :  { %p7646_p9 = por %p7645_p8, %p7644_p7 }
  0x38   :  { %p7647_p10 = pnand %p7646_p9, %p7640_p6 }
  0x3a   :  { %7650 = shalt.err (!%p7647_p10)
}
  0x3b   :  { %138 = dma.hbm_to_vmem [thread:$0]  %s8389_s9, 256, %s133_s20, [#allocation19], %s7849_s21, %s7849_s21, %s7850_s22  }
  0x3c   :  { %s7659_s7 = scalar_lea.vmem %s157_s24, 256  ;;  %p7664_p12 = scmp.lt.s32.totalorder %s157_s24, %s157_s24 }
  0x3d   :  { %p7660_p11 = scmp.ne.s32.totalorder %s157_s24, %s7659_s7  ;;  %p7665_p13 = scmp.lt.s32.totalorder %s7659_s7, %s7659_s7 }
  0x3f   :  { %p7666_p0 = por %p7665_p13, %p7664_p12 }
  0x41   :  { %p7667_p1 = pnand %p7666_p0, %p7660_p11 }
  0x43   :  { %7670 = shalt.err (!%p7667_p1)
}
  0x44   :  { %162 = dma.hbm_to_vmem [thread:$0]  %s8391_s11, 256, %s157_s24, [#allocation22], %s7849_s21, %s7849_s21, %s7850_s22  }
  0x45   :  { %s7857_s28 = smov [#allocation4]   ;;  %s7858_s30 = smov [#allocation8]  }
  0x46   :  { %s33_s29 = sshll.u32 %s7857_s28, 4  ;;  %s53_s3 = sshll.u32 %s7858_s30, 4  ;;  %s34_s29 = int_to_ptr.vmem [resolvable:$true] %s33_s29  ;;  %s54_s3 = int_to_ptr.vmem [resolvable:$true] %s53_s3 }
  0x47   :  { %s7679_s9 = scalar_lea.vmem %s34_s29, 32  ;;  %p7684_p3 = scmp.lt.s32.totalorder %s34_s29, %s34_s29 }
  0x48   :  { %p7680_p2 = scmp.ne.s32.totalorder %s34_s29, %s7679_s9  ;;  %p7685_p4 = scmp.lt.s32.totalorder %s7679_s9, %s7679_s9 }
  0x4a   :  { %p7686_p5 = por %p7685_p4, %p7684_p3 }
  0x4c   :  { %p7687_p6 = pnand %p7686_p5, %p7680_p2 }
  0x4e   :  { %7690 = shalt.err (!%p7687_p6)
}
  0x4f   :  { %36 = dma.hbm_to_vmem [thread:$0]  %s8380_s0, 32, %s34_s29, [#allocation5]  }
  0x50   :  { %s7699_s17 = scalar_lea.vmem %s54_s3, 16  ;;  %s7703_s11 = scalar_lea.vmem %s54_s3, 32 }
  0x51   :  { %p7700_p7 = scmp.ne.s32.totalorder %s54_s3, %s7699_s17  ;;  %p7704_p8 = scmp.lt.s32.totalorder %s54_s3, %s54_s3 }
  0x52   :  { %p7705_p9 = scmp.lt.s32.totalorder %s7703_s11, %s7699_s17 }
  0x54   :  { %p7706_p10 = por %p7705_p9, %p7704_p8 }
  0x56   :  { %p7707_p11 = pnand %p7706_p10, %p7700_p7 }
  0x58   :  { %7710 = shalt.err (!%p7707_p11)
}
  0x59   :  { %56 = dma.hbm_to_vmem [thread:$0]  %s8382_s2, 16, %s54_s3, [#allocation7]  }
  0x5a   :  { %s7859_s20 = smov [#allocation11]   ;;  %s7860_s24 = smov [#allocation14]  }
  0x5b   :  { %s75_s23 = sshll.u32 %s7859_s20, 4  ;;  %s96_s5 = sshll.u32 %s7860_s24, 4  ;;  %s76_s23 = int_to_ptr.vmem [resolvable:$true] %s75_s23  ;;  %s97_s5 = int_to_ptr.vmem [resolvable:$true] %s96_s5 }
  0x5c   :  { %s7719_s25 = scalar_lea.vmem %s76_s23, 16  ;;  %s7723_s0 = scalar_lea.vmem %s76_s23, 32 }
  0x5d   :  { %p7720_p12 = scmp.ne.s32.totalorder %s76_s23, %s7719_s25  ;;  %p7724_p13 = scmp.lt.s32.totalorder %s76_s23, %s76_s23 }
  0x5e   :  { %p7725_p0 = scmp.lt.s32.totalorder %s7723_s0, %s7719_s25 }
  0x60   :  { %p7726_p1 = por %p7725_p0, %p7724_p13 }
  0x62   :  { %p7727_p2 = pnand %p7726_p1, %p7720_p12 }
  0x64   :  { %7730 = shalt.err (!%p7727_p2)
}
  0x65   :  { %78 = dma.hbm_to_vmem [thread:$0]  %s8384_s4, 16, %s76_s23, [#allocation10]  }
  0x66   :  { %s7739_s27 = scalar_lea.vmem %s97_s5, 4608  ;;  %p7744_p4 = scmp.lt.s32.totalorder %s97_s5, %s97_s5 }
  0x67   :  { %p7740_p3 = scmp.ne.s32.totalorder %s97_s5, %s7739_s27  ;;  %p7745_p5 = scmp.lt.s32.totalorder %s7739_s27, %s7739_s27 }
  0x69   :  { %p7746_p6 = por %p7745_p5, %p7744_p4 }
  0x6b   :  { %p7747_p7 = pnand %p7746_p6, %p7740_p3 }
  0x6d   :  { %7750 = shalt.err (!%p7747_p7)
}
  0x6e   :  { %102 = dma.hbm_to_vmem [thread:$0]  %s8386_s6, 4608, %s97_s5, [#allocation13], %s7849_s21, %s7849_s21, %s7850_s22  }
  0x6f   :  { %s7861_s28 = smov [#allocation17]   ;;  %s7862_s30 = smov [#allocation20]  }
  0x70   :  { %s120_s29 = sshll.u32 %s7861_s28, 4  ;;  %s144_s3 = sshll.u32 %s7862_s30, 4  ;;  %s121_s29 = int_to_ptr.vmem [resolvable:$true] %s120_s29  ;;  %s145_s3 = int_to_ptr.vmem [resolvable:$true] %s144_s3 }
  0x71   :  { %s7759_s4 = scalar_lea.vmem %s121_s29, 2304  ;;  %p7764_p9 = scmp.lt.s32.totalorder %s121_s29, %s121_s29 }
  0x72   :  { %p7760_p8 = scmp.ne.s32.totalorder %s121_s29, %s7759_s4  ;;  %p7765_p10 = scmp.lt.s32.totalorder %s7759_s4, %s7759_s4 }
  0x74   :  { %p7766_p11 = por %p7765_p10, %p7764_p9 }
  0x76   :  { %p7767_p12 = pnand %p7766_p11, %p7760_p8 }
  0x78   :  { %7770 = shalt.err (!%p7767_p12)
}
  0x79   :  { %126 = dma.hbm_to_vmem [thread:$0]  %s8388_s8, 2304, %s121_s29, [#allocation16], %s7849_s21, %s7849_s21, %s7850_s22  }
  0x7a   :  { %s7779_s6 = scalar_lea.vmem %s145_s3, 2304  ;;  %p7784_p0 = scmp.lt.s32.totalorder %s145_s3, %s145_s3 }
  0x7b   :  { %p7780_p13 = scmp.ne.s32.totalorder %s145_s3, %s7779_s6  ;;  %p7785_p1 = scmp.lt.s32.totalorder %s7779_s6, %s7779_s6 }
  0x7d   :  { %p7786_p2 = por %p7785_p1, %p7784_p0 }
  0x7f   :  { %p7787_p3 = pnand %p7786_p2, %p7780_p13 }
  0x81   :  { %7790 = shalt.err (!%p7787_p3)
}
  0x82   :  { %150 = dma.hbm_to_vmem [thread:$0]  %s8390_s10, 2304, %s145_s3, [#allocation19], %s7849_s21, %s7849_s21, %s7850_s22  }
  0x83   :  { %s7863_s11 = smov [#allocation23]  }
  0x84   :  { %s168_s18 = sshll.u32 %s7863_s11, 4  ;;  %s169_s18 = int_to_ptr.vmem [resolvable:$true] %s168_s18 }
  0x85   :  { %s7799_s19 = scalar_lea.vmem %s169_s18, 576  ;;  %p7804_p5 = scmp.lt.s32.totalorder %s169_s18, %s169_s18 }
  0x86   :  { %p7800_p4 = scmp.ne.s32.totalorder %s169_s18, %s7799_s19  ;;  %p7805_p6 = scmp.lt.s32.totalorder %s7799_s19, %s7799_s19 }
  0x88   :  { %p7806_p7 = por %p7805_p6, %p7804_p5 }
  0x8a   :  { %p7807_p8 = pnand %p7806_p7, %p7800_p4 }
  0x8c   :  { %7810 = shalt.err (!%p7807_p8)
}
  0x8d   :  { %s7864_s8 = smov 64   ;;  %s7865_s20 = smov 4  }
  0x8e   :  { %174 = dma.hbm_to_vmem [thread:$0]  %s8392_s12, 576, %s169_s18, [#allocation22], %s7864_s8, %s7864_s8, %s7865_s20  }
  0x8f   :  { %s7866_s5 = smov [#allocation24]  }
  0x90   :  { %s181_s25 = sshll.u32 %s7866_s5, 4  ;;  %s182_s25 = int_to_ptr.vmem [resolvable:$true] %s181_s25 }
  0x91   :  { %s7819_s10 = scalar_lea.vmem %s182_s25, 64  ;;  %p7824_p10 = scmp.lt.s32.totalorder %s182_s25, %s182_s25 }
  0x92   :  { %p7820_p9 = scmp.ne.s32.totalorder %s182_s25, %s7819_s10  ;;  %p7825_p11 = scmp.lt.s32.totalorder %s7819_s10, %s7819_s10 }
  0x94   :  { %p7826_p12 = por %p7825_p11, %p7824_p10 }
  0x96   :  { %p7827_p13 = pnand %p7826_p12, %p7820_p9 }
  0x98   :  { %7830 = shalt.err (!%p7827_p13)
}
  0x99   :  { %184 = dma.hbm_to_vmem [thread:$0]  %s8393_s13, 64, %s182_s25, [#allocation25]  }
  0x9a   :  { %7831 = dma.done.wait [#allocation5], 32  }
  0x9b   :  { %7832 = vsyncadd [#allocation5], 4294967264 }
  0x9c   :  { %7833 = dma.done.wait [#allocation7], 80  }
  0x9d   :  { %7834 = vsyncadd [#allocation7], 4294967216 }
  0x9e   :  { %7835 = dma.done.wait [#allocation10], 272  }
  0x9f   :  { %7836 = vsyncadd [#allocation10], 4294967024 }
  0xa0   :  { %7837 = dma.done.wait [#allocation13], 5760  }
  0xa1   :  { %7838 = vsyncadd [#allocation13], 4294961536 }
  0xa2   :  { %7839 = dma.done.wait [#allocation16], 76032  }
  0xa3   :  { %7840 = vsyncadd [#allocation16], 4294891264 }
  0xa4   :  { %7841 = dma.done.wait [#allocation19], 2560  }
  0xa5   :  { %7842 = vsyncadd [#allocation19], 4294964736 }
  0xa6   :  { %7843 = dma.done.wait [#allocation22], 832  }
  0xa7   :  { %7844 = vsyncadd [#allocation22], 4294966464 }
  0xa8   :  { %7845 = dma.done.wait [#allocation25], 64  }
  0xa9   :  { %7846 = vsyncadd [#allocation25], 4294967232  ;;  %v7867_v0 = vmov 0.0   ;;  %vm7868_vm0 = vmmov 0   ;;  %vm240_vm1 = vcmask 1043456   ;;  %vm236_vm2 = vcmask 31744  }
  0xaa   :  { %7213 = vmatprep.subr.mxu0 %v7867_v0  ;;  %7215 = vmatprep.mubr.msk.f32.mxu0 %vm7868_vm0, %v7867_v0  ;;  %v228_v1 = vld [vmem:[#allocation6] sm:$0xf]  ;;  %v227_v2 = vld [vmem:[#allocation4] sm:$0x3]  ;;  %v316_v3 = vld [vmem:[#allocation9 + $0x8] sm:$0xff]  ;;  %vm324_vm3 = vcmask 130048  }
  0xab   :  { %7218 = vmatprep.subr.mxu1 %v7867_v0  ;;  %7222 = vmatprep.mubr.msk.f32.mxu1 %vm7868_vm0, %v7867_v0  ;;  %v315_v4 = vld [vmem:[#allocation9] sm:$0xff]  ;;  %v6960_v5 = vld [vmem:[#allocation8] ss:$0 sm:$0xff]  ;;  %v6963_v10 = vld [vmem:[#allocation11] ss:$0 sm:$0xff]  ;;  %vm399_vm4 = vcmask 517120  }
  0xac   :  { %7214 = vmatpush3.msk.msra.mxu0 %vm240_vm1, %v228_v1  ;;  %7219 = vmatpush3.msra.mxu1 %v316_v3  ;;  %s7869_s12 = smov 116   ;;  %s7870_s13 = smov 124   ;;  %vm402_vm5 = vcmask 24576   ;;  %v589_v40 = vld [vmem:[#allocation12] sm:$0xff]  ;;  %v675_v41 = vld [vmem:[#allocation12 + $0x8] sm:$0xff]  ;;  %vm409_vm6 = vcmask 57376  }
  0xad   :  { %7216 = vmatmul.mubr.msk.f32.vlgmr.msra.gmra.mxu0 %vm236_vm2, %v227_v2  ;;  %7220 = vmatprep.subr.mxu1 %v7867_v0  ;;  %s7871_s0 = smov 112   ;;  %s7872_s26 = smov 120   ;;  %vm590_vm7 = vcmask 64512   ;;  %vm2077_vm8 = vcmask 261120  }
  0xae   :  { %7221 = vmatpush3.msra.mxu1 %v315_v4  ;;  %s7873_s7 = smov 104   ;;  %s7874_s27 = smov 108   ;;  %7225 = vmatprep.subr.mxu0 %v589_v40 }
  0xaf   :  { %s7875_s2 = smov 100   ;;  %s7876_s1 = smov 96   ;;  %7230 = vmatprep.subr.mxu1 %v675_v41  ;;  %7226 = vmatpush3.msra.mxu0 %v589_v40 }
  0xb0   :  { %s7877_s28 = smov 92   ;;  %s7878_s29 = smov 88  }
  0xb1   :  { %s7879_s30 = smov 84   ;;  %s7880_s3 = smov 80  }
  0xb2   :  { %s7881_s4 = smov 76   ;;  %s7882_s9 = smov 72  }
  0xb3   :  { %s7883_s15 = smov 68  }
 0x16d   :  { %v310_v6 = vpop.f32.mrf.mxu0 }
 0x16e   :  { %v311_v7 = vadd.f32 %v6960_v5, %v310_v6 }
 0x16f   :  { %v7217_v8 = vpop.f32.mrf.mxu0 }
 0x170   :  { %v314_v9 = vmax.f32 %v311_v7, 0.0 }
 0x172   :  { %7223 = vmatmul.mubr.msk.f32.vlgmr.msra.gmra.mxu1 %vm324_vm3, %v314_v9 }
 0x173   :  { %7231 = vmatpush3.msra.mxu1 %v675_v41 }
 0x232   :  { %v394_v11 = vpop.f32.mrf.mxu1 }
 0x233   :  { %v395_v12 = vadd.f32 %v6963_v10, %v394_v11 }
 0x234   :  { %v7224_v13 = vpop.f32.mrf.mxu1 }
 0x235   :  { %v398_v14 = vmax.f32 %v395_v12, 0.0 }
 0x237   :  { %400 = vst.msk [vmem:[#allocation2] sm:$0x3] %vm399_vm4, %v398_v14 }
 0x23e   :  { %v431_v15 = vld [vmem:[#allocation2] sm:$0x1]  ;;  %v404_v23 = vld [vmem:[#allocation2 + $0x1] sm:$0x1] }
 0x23f   :  { %v411_v16 = vld [vmem:[#allocation2] sm:$0x1]  ;;  %433 = vrot.lane.b32.xlu1 %v431_v15, %s7869_s12  ;;  %v425_v24 = vld [vmem:[#allocation2 + $0x1] sm:$0x1] }
 0x240   :  { %413 = vrot.lane.b32.xlu0 %v411_v16, %s7870_s13  ;;  %v443_v17 = vld [vmem:[#allocation2] sm:$0x1]  ;;  %v437_v25 = vld [vmem:[#allocation2 + $0x1] sm:$0x1] }
 0x241   :  { %v419_v18 = vld [vmem:[#allocation2] sm:$0x1]  ;;  %v449_v26 = vld [vmem:[#allocation2 + $0x1] sm:$0x1] }
 0x242   :  { %v467_v19 = vld [vmem:[#allocation2] sm:$0x1]  ;;  %v461_v27 = vld [vmem:[#allocation2 + $0x1] sm:$0x1] }
 0x243   :  { %445 = vrot.lane.b32.xlu1 %v443_v17, %s7871_s0  ;;  %v455_v20 = vld [vmem:[#allocation2] sm:$0x1]  ;;  %v473_v28 = vld [vmem:[#allocation2 + $0x1] sm:$0x1] }
 0x244   :  { %421 = vrot.lane.b32.xlu0 %v419_v18, %s7872_s26  ;;  %v401_v21 = vld [vmem:[#allocation2] sm:$0x1]  ;;  %v485_v29 = vld [vmem:[#allocation2 + $0x1] sm:$0x1]  ;;  %v752_v18 = vld [vmem:[#allocation17 + $0x10] sm:$0xff] }
 0x245   :  { %403 = vst.msk [vmem:[#allocation3] sm:$0x1] %vm402_vm5, %v401_v21  ;;  %v479_v22 = vld [vmem:[#allocation2] sm:$0x1]  ;;  %v497_v38 = vld [vmem:[#allocation2 + $0x1] sm:$0x1] }
 0x246   :  { %v491_v30 = vld [vmem:[#allocation2] sm:$0x1]  ;;  %v509_v39 = vld [vmem:[#allocation2 + $0x1] sm:$0x1] }
 0x247   :  { %469 = vrot.lane.b32.xlu1 %v467_v19, %s7873_s7  ;;  %v503_v31 = vld [vmem:[#allocation2] sm:$0x1]  ;;  %v521_v42 = vld [vmem:[#allocation2 + $0x1] sm:$0x1]  ;;  %v672_v19 = vld [vmem:[#allocation17] sm:$0xff] }
 0x248   :  { %457 = vrot.lane.b32.xlu0 %v455_v20, %s7874_s27  ;;  %v515_v32 = vld [vmem:[#allocation2] sm:$0x1]  ;;  %v533_v43 = vld [vmem:[#allocation2 + $0x1] sm:$0x1] }
 0x249   :  { %v527_v33 = vld [vmem:[#allocation2] sm:$0x1]  ;;  %v545_v44 = vld [vmem:[#allocation2 + $0x1] sm:$0x1] }
 0x24a   :  { %v539_v34 = vld [vmem:[#allocation2] sm:$0x1]  ;;  %v557_v45 = vld [vmem:[#allocation2 + $0x1] sm:$0x1] }
 0x24b   :  { %406 = vrot.lane.b32.xlu1 %v404_v23, %s7865_s20  ;;  %v551_v35 = vld [vmem:[#allocation2] sm:$0x1]  ;;  %v569_v46 = vld [vmem:[#allocation2 + $0x1] sm:$0x1] }
 0x24c   :  { %481 = vrot.lane.b32.xlu0 %v479_v22, %s7875_s2  ;;  %v563_v36 = vld [vmem:[#allocation2] sm:$0x1]  ;;  %v581_v47 = vld [vmem:[#allocation2 + $0x1] sm:$0x1] }
 0x24d   :  { %v575_v37 = vld [vmem:[#allocation2] sm:$0x1]  ;;  %v417_v50 = vld [vmem:[#allocation2 + $0x1] sm:$0x1] }
 0x24f   :  { %439 = vrot.lane.b32.xlu1 %v437_v25, %s7872_s26  ;;  %v673_v25 = vld [vmem:[#allocation17 + $0x8] sm:$0xff] }
 0x250   :  { %427 = vrot.lane.b32.xlu0 %v425_v24, %s7870_s13  ;;  %v753_v24 = vld [vmem:[#allocation17 + $0x18] sm:$0xff] }
 0x253   :  { %463 = vrot.lane.b32.xlu1 %v461_v27, %s7871_s0  ;;  %v1080_v27 = vld [vmem:[#allocation12 + $0x18] sm:$0xff] }
 0x254   :  { %451 = vrot.lane.b32.xlu0 %v449_v26, %s7869_s12  ;;  %v917_v26 = vld [vmem:[#allocation12 + $0x10] sm:$0xff] }
 0x257   :  { %487 = vrot.lane.b32.xlu1 %v485_v29, %s7873_s7  ;;  %v1406_v29 = vld [vmem:[#allocation12 + $0x28] sm:$0xff] }
 0x258   :  { %475 = vrot.lane.b32.xlu0 %v473_v28, %s7874_s27  ;;  %v1243_v28 = vld [vmem:[#allocation12 + $0x20] sm:$0xff] }
 0x25b   :  { %505 = vrot.lane.b32.xlu1 %v503_v31, %s7877_s28  ;;  %v1732_v31 = vld [vmem:[#allocation12 + $0x38] sm:$0xff] }
 0x25c   :  { %493 = vrot.lane.b32.xlu0 %v491_v30, %s7876_s1  ;;  %v1569_v30 = vld [vmem:[#allocation12 + $0x30] sm:$0xff] }
 0x25f   :  { %529 = vrot.lane.b32.xlu1 %v527_v33, %s7879_s30  ;;  %v994_v33 = vld [vmem:[#allocation17 + $0x20] sm:$0xff] }
 0x260   :  { %517 = vrot.lane.b32.xlu0 %v515_v32, %s7878_s29  ;;  %v1895_v32 = vld [vmem:[#allocation12 + $0x40] sm:$0xff] }
 0x263   :  { %553 = vrot.lane.b32.xlu1 %v551_v35, %s7881_s4  ;;  %v2057_v35 = vld [vmem:[#allocation18] sm:$0xff] }
 0x264   :  { %541 = vrot.lane.b32.xlu0 %v539_v34, %s7880_s3  ;;  %v2058_v34 = vld [vmem:[#allocation18 + $0x8] sm:$0xff] }
 0x267   :  { %577 = vrot.lane.b32.xlu1 %v575_v37, %s7883_s15  ;;  %v3568_v37 = vld [vmem:[#allocation21] sm:$0xff] }
 0x268   :  { %565 = vrot.lane.b32.xlu0 %v563_v36, %s7882_s9  ;;  %v7884_v36 = vmov 0  }
 0x269   :  { %7534 = vset.pattern.permute.xlu1 %v7884_v36  ;;  %7533 = vset.pattern.permute.xlu0 %v7884_v36 }
 0x26b   :  { %511 = vrot.lane.b32.xlu1 %v509_v39, %s7876_s1  ;;  %v6904_v39 = vld [vmem:[#allocation24] sm:$0x7] }
 0x26c   :  { %499 = vrot.lane.b32.xlu0 %v497_v38, %s7875_s2  ;;  %v3569_v38 = vld [vmem:[#allocation21 + $0x8] sm:$0xff] }
 0x26f   :  { %535 = vrot.lane.b32.xlu1 %v533_v43, %s7878_s29 }
 0x270   :  { %523 = vrot.lane.b32.xlu0 %v521_v42, %s7877_s28 }
 0x273   :  { %559 = vrot.lane.b32.xlu1 %v557_v45, %s7880_s3  ;;  %v1157_v45 = vld [vmem:[#allocation17 + $0x30] sm:$0xff] }
 0x274   :  { %547 = vrot.lane.b32.xlu0 %v545_v44, %s7879_s30  ;;  %v995_v44 = vld [vmem:[#allocation17 + $0x28] sm:$0xff] }
 0x277   :  { %583 = vrot.lane.b32.xlu1 %v581_v47, %s7882_s9 }
 0x278   :  { %571 = vrot.lane.b32.xlu0 %v569_v46, %s7881_s4 }
 0x27b   :  { %2066 = vperm.xlu1 %7534, %v2058_v34  }
 0x27c   :  { %2061 = vperm.xlu0 %7533, %v2057_v35  }
 0x27f   :  { %3572 = vperm.xlu1 %7534, %v3568_v37  }
 0x280   :  { %3577 = vperm.xlu0 %7533, %v3569_v38  }
 0x283   :  { %6907 = vperm.xlu1 %7534, %v6904_v39  }
 0x2b1   :  { %v434_v48 = vpop.permute.xlu1 %433 }
 0x2b2   :  { %v414_v49 = vpop.permute.xlu0 %413  ;;  %436 = vst.msk [vmem:[#allocation3 + $0x3] sm:$0x1] %vm402_vm5, %v434_v48  ;;  %v1158_v48 = vld [vmem:[#allocation17 + $0x38] sm:$0xff] }
 0x2b3   :  { %416 = vst.msk [vmem:[#allocation3 + $0x1] sm:$0x1] %vm402_vm5, %v414_v49  ;;  %v1320_v49 = vld [vmem:[#allocation17 + $0x40] sm:$0xff] }
 0x2b4   :  { %418 = vst.msk [vmem:[#allocation3 + $0x1] sm:$0x1] %vm409_vm6, %v417_v50 }
 0x2b5   :  { %v446_v51 = vpop.permute.xlu1 %445 }
 0x2b6   :  { %v422_v52 = vpop.permute.xlu0 %421  ;;  %448 = vst.msk [vmem:[#allocation3 + $0x4] sm:$0x1] %vm402_vm5, %v446_v51 }
 0x2b7   :  { %424 = vst.msk [vmem:[#allocation3 + $0x2] sm:$0x1] %vm402_vm5, %v422_v52  ;;  %v1321_v52 = vld [vmem:[#allocation17 + $0x48] sm:$0xff] }
 0x2b9   :  { %v470_v53 = vpop.permute.xlu1 %469 }
 0x2ba   :  { %v458_v54 = vpop.permute.xlu0 %457  ;;  %472 = vst.msk [vmem:[#allocation3 + $0x6] sm:$0x1] %vm402_vm5, %v470_v53  ;;  %v1483_v53 = vld [vmem:[#allocation17 + $0x50] sm:$0xff] }
 0x2bb   :  { %460 = vst.msk [vmem:[#allocation3 + $0x5] sm:$0x1] %vm402_vm5, %v458_v54 }
 0x2bd   :  { %v407_v56 = vpop.permute.xlu1 %406 }
 0x2be   :  { %v482_v55 = vpop.permute.xlu0 %481  ;;  %410 = vst.msk [vmem:[#allocation3] sm:$0x1] %vm409_vm6, %v407_v56  ;;  %v1484_v56 = vld [vmem:[#allocation17 + $0x58] sm:$0xff] }
 0x2bf   :  { %484 = vst.msk [vmem:[#allocation3 + $0x7] sm:$0x1] %vm402_vm5, %v482_v55 }
 0x2c1   :  { %v440_v58 = vpop.permute.xlu1 %439 }
 0x2c2   :  { %v428_v57 = vpop.permute.xlu0 %427  ;;  %442 = vst.msk [vmem:[#allocation3 + $0x3] sm:$0x1] %vm409_vm6, %v440_v58 }
 0x2c3   :  { %430 = vst.msk [vmem:[#allocation3 + $0x2] sm:$0x1] %vm409_vm6, %v428_v57  ;;  %v1646_v57 = vld [vmem:[#allocation17 + $0x60] sm:$0xff] }
 0x2c5   :  { %v464_v60 = vpop.permute.xlu1 %463 }
 0x2c6   :  { %v452_v59 = vpop.permute.xlu0 %451  ;;  %466 = vst.msk [vmem:[#allocation3 + $0x5] sm:$0x1] %vm409_vm6, %v464_v60  ;;  %v1647_v60 = vld [vmem:[#allocation17 + $0x68] sm:$0xff] }
 0x2c7   :  { %454 = vst.msk [vmem:[#allocation3 + $0x4] sm:$0x1] %vm409_vm6, %v452_v59 }
 0x2c9   :  { %v488_v62 = vpop.permute.xlu1 %487 }
 0x2ca   :  { %v476_v61 = vpop.permute.xlu0 %475  ;;  %490 = vst.msk [vmem:[#allocation3 + $0x7] sm:$0x1] %vm409_vm6, %v488_v62 }
 0x2cb   :  { %478 = vst.msk [vmem:[#allocation3 + $0x6] sm:$0x1] %vm409_vm6, %v476_v61  ;;  %v1809_v61 = vld [vmem:[#allocation17 + $0x70] sm:$0xff] }
 0x2cd   :  { %v506_v1 = vpop.permute.xlu1 %505 }
 0x2ce   :  { %v494_v63 = vpop.permute.xlu0 %493  ;;  %508 = vst.msk [vmem:[#allocation3 + $0x9] sm:$0x1] %vm402_vm5, %v506_v1  ;;  %v1810_v1 = vld [vmem:[#allocation17 + $0x78] sm:$0xff] }
 0x2cf   :  { %496 = vst.msk [vmem:[#allocation3 + $0x8] sm:$0x1] %vm402_vm5, %v494_v63 }
 0x2d1   :  { %v530_v3 = vpop.permute.xlu1 %529 }
 0x2d2   :  { %v518_v2 = vpop.permute.xlu0 %517  ;;  %v8053_v4 = vld [vmem:[#allocation3] sm:$0xff]  ;;  %532 = vst.msk [vmem:[#allocation3 + $0xb] sm:$0x1] %vm402_vm5, %v530_v3 }
 0x2d3   :  { %520 = vst.msk [vmem:[#allocation3 + $0xa] sm:$0x1] %vm402_vm5, %v518_v2  ;;  %7227 = vmatprep.mubr.msk.f32.mxu0 %vm590_vm7, %v8053_v4  ;;  %7232 = vmatprep.mubr.msk.f32.mxu1 %vm590_vm7, %v8053_v4  ;;  %v1972_v2 = vld [vmem:[#allocation17 + $0x80] sm:$0xff] }
 0x2d5   :  { %v554_v6 = vpop.permute.xlu1 %553 }
 0x2d6   :  { %v542_v5 = vpop.permute.xlu0 %541  ;;  %556 = vst.msk [vmem:[#allocation3 + $0xd] sm:$0x1] %vm402_vm5, %v554_v6  ;;  %v2076_v6 = vld [vmem:[#allocation14 + $0x18] sm:$0xff] }
 0x2d7   :  { %544 = vst.msk [vmem:[#allocation3 + $0xc] sm:$0x1] %vm402_vm5, %v542_v5  ;;  %v1973_v5 = vld [vmem:[#allocation17 + $0x88] sm:$0xff] }
 0x2d9   :  { %v578_v8 = vpop.permute.xlu1 %577 }
 0x2da   :  { %v566_v7 = vpop.permute.xlu0 %565  ;;  %580 = vst.msk [vmem:[#allocation3 + $0xf] sm:$0x1] %vm402_vm5, %v578_v8  ;;  %v2075_v8 = vld [vmem:[#allocation14 + $0x10] sm:$0xff] }
 0x2db   :  { %568 = vst.msk [vmem:[#allocation3 + $0xe] sm:$0x1] %vm402_vm5, %v566_v7  ;;  %v2165_v7 = vld [vmem:[#allocation14 + $0x38] sm:$0xff] }
 0x2dd   :  { %v512_v10 = vpop.permute.xlu1 %511 }
 0x2de   :  { %v500_v9 = vpop.permute.xlu0 %499  ;;  %514 = vst.msk [vmem:[#allocation3 + $0x9] sm:$0x1] %vm409_vm6, %v512_v10  ;;  %v2074_v10 = vld [vmem:[#allocation14 + $0x8] sm:$0xff] }
 0x2df   :  { %502 = vst.msk [vmem:[#allocation3 + $0x8] sm:$0x1] %vm409_vm6, %v500_v9  ;;  %v2164_v9 = vld [vmem:[#allocation14 + $0x30] sm:$0xff] }
 0x2e1   :  { %v536_v12 = vpop.permute.xlu1 %535 }
 0x2e2   :  { %v524_v11 = vpop.permute.xlu0 %523  ;;  %538 = vst.msk [vmem:[#allocation3 + $0xb] sm:$0x1] %vm409_vm6, %v536_v12  ;;  %v2073_v12 = vld [vmem:[#allocation14] sm:$0xff] }
 0x2e3   :  { %526 = vst.msk [vmem:[#allocation3 + $0xa] sm:$0x1] %vm409_vm6, %v524_v11  ;;  %v2163_v11 = vld [vmem:[#allocation14 + $0x28] sm:$0xff] }
 0x2e5   :  { %v560_v14 = vpop.permute.xlu1 %559 }
 0x2e6   :  { %v548_v13 = vpop.permute.xlu0 %547  ;;  %562 = vst.msk [vmem:[#allocation3 + $0xd] sm:$0x1] %vm409_vm6, %v560_v14 }
 0x2e7   :  { %550 = vst.msk [vmem:[#allocation3 + $0xc] sm:$0x1] %vm409_vm6, %v548_v13  ;;  %v2162_v13 = vld [vmem:[#allocation14 + $0x20] sm:$0xff] }
 0x2e9   :  { %v584_v16 = vpop.permute.xlu1 %583 }
 0x2ea   :  { %v572_v15 = vpop.permute.xlu0 %571  ;;  %586 = vst.msk [vmem:[#allocation3 + $0xf] sm:$0x1] %vm409_vm6, %v584_v16 }
 0x2eb   :  { %574 = vst.msk [vmem:[#allocation3 + $0xe] sm:$0x1] %vm409_vm6, %v572_v15 }
 0x2f2   :  { %v588_v17 = vld [vmem:[#allocation3 + $0x8] sm:$0xff] }
 0x2f3   :  { %7228 = vmatmul.mubr.msk.f32.vlgmr.msra.gmra.mxu0 %vm590_vm7, %v588_v17  ;;  %7233 = vmatmul.mubr.msk.f32.vlgmr.msra.gmra.mxu1 %vm590_vm7, %v588_v17 }
 0x2f4   :  { %7239 = vmatprep.mubr.msk.f32.mxu0 %vm324_vm3, %v752_v18  ;;  %7246 = vmatprep.mubr.msk.f32.mxu1 %vm324_vm3, %v672_v19 }
 0x3b3   :  { %v7229_v20 = vpop.f32.mrf.mxu0  ;;  %v7234_v21 = vpop.f32.mrf.mxu1 }
 0x3b4   :  { %7235 = vmatprep.subr.mxu0 %v7234_v21  ;;  %7242 = vmatprep.subr.mxu1 %v7229_v20 }
 0x3b5   :  { %v663_v22 = vpop.f32.mrf.mxu0  ;;  %v742_v23 = vpop.f32.mrf.mxu1  ;;  %7236 = vmatpush3.msra.mxu0 %v7234_v21  ;;  %7243 = vmatpush3.msra.mxu1 %v7229_v20 }
 0x3b6   :  { %7237 = vmatprep.subr.mxu0 %v742_v23  ;;  %7244 = vmatprep.subr.mxu1 %v663_v22 }
 0x3b7   :  { %7238 = vmatpush3.msra.mxu0 %v742_v23  ;;  %7245 = vmatpush3.msra.mxu1 %v663_v22 }
 0x3b8   :  { %7240 = vmatmul.mubr.msk.f32.vlgmr.msra.gmra.mxu0 %vm324_vm3, %v753_v24  ;;  %7247 = vmatmul.mubr.msk.f32.vlgmr.msra.gmra.mxu1 %vm324_vm3, %v673_v25 }
 0x3b9   :  { %7251 = vmatprep.mubr.msk.f32.mxu0 %vm590_vm7, %v8053_v4  ;;  %7249 = vmatprep.subr.mxu0 %v917_v26 }
 0x3ba   :  { %7250 = vmatpush3.msra.mxu0 %v917_v26  ;;  %7258 = vmatprep.mubr.msk.f32.mxu1 %vm324_vm3, %v994_v33 }
 0x3bb   :  { %7261 = vmatprep.subr.mxu0 %v1080_v27 }
 0x3bc   :  { %7252 = vmatmul.mubr.msk.f32.vlgmr.msra.gmra.mxu0 %vm590_vm7, %v588_v17 }
 0x3bd   :  { %7263 = vmatprep.mubr.msk.f32.mxu0 %vm590_vm7, %v8053_v4  ;;  %7262 = vmatpush3.msra.mxu0 %v1080_v27 }
 0x3be   :  { %7273 = vmatprep.subr.mxu0 %v1243_v28 }
 0x3c0   :  { %7264 = vmatmul.mubr.msk.f32.vlgmr.msra.gmra.mxu0 %vm590_vm7, %v588_v17 }
 0x3c1   :  { %7275 = vmatprep.mubr.msk.f32.mxu0 %vm590_vm7, %v8053_v4  ;;  %7274 = vmatpush3.msra.mxu0 %v1243_v28 }
 0x3c2   :  { %7285 = vmatprep.subr.mxu0 %v1406_v29 }
 0x3c4   :  { %7276 = vmatmul.mubr.msk.f32.vlgmr.msra.gmra.mxu0 %vm590_vm7, %v588_v17 }
 0x3c5   :  { %7287 = vmatprep.mubr.msk.f32.mxu0 %vm590_vm7, %v8053_v4  ;;  %7286 = vmatpush3.msra.mxu0 %v1406_v29 }
 0x3c6   :  { %7297 = vmatprep.subr.mxu0 %v1569_v30 }
 0x3c8   :  { %7288 = vmatmul.mubr.msk.f32.vlgmr.msra.gmra.mxu0 %vm590_vm7, %v588_v17 }
 0x3c9   :  { %7299 = vmatprep.mubr.msk.f32.mxu0 %vm590_vm7, %v8053_v4  ;;  %7298 = vmatpush3.msra.mxu0 %v1569_v30 }
 0x3ca   :  { %7309 = vmatprep.subr.mxu0 %v1732_v31 }
 0x3cc   :  { %7300 = vmatmul.mubr.msk.f32.vlgmr.msra.gmra.mxu0 %vm590_vm7, %v588_v17 }
 0x3cd   :  { %7311 = vmatprep.mubr.msk.f32.mxu0 %vm590_vm7, %v8053_v4  ;;  %7310 = vmatpush3.msra.mxu0 %v1732_v31 }
 0x3ce   :  { %7321 = vmatprep.subr.mxu0 %v1895_v32 }
 0x3d0   :  { %7312 = vmatmul.mubr.msk.f32.vlgmr.msra.gmra.mxu0 %vm590_vm7, %v588_v17 }
 0x3d1   :  { %7323 = vmatprep.mubr.msk.f32.mxu0 %vm590_vm7, %v8053_v4  ;;  %7322 = vmatpush3.msra.mxu0 %v1895_v32 }
 0x3d2   :  { %7333 = vmatprep.subr.mxu0 %v2076_v6 }
 0x3d4   :  { %7324 = vmatmul.mubr.msk.f32.vlgmr.msra.gmra.mxu0 %vm590_vm7, %v588_v17 }
 0x3d5   :  { %7334 = vmatpush3.msra.mxu0 %v2076_v6 }
 0x3d6   :  { %7335 = vmatprep.subr.mxu0 %v2075_v8 }
 0x3d7   :  { %7336 = vmatpush3.msra.mxu0 %v2075_v8  ;;  %v2488_v8 = vld [vmem:[#allocation20 + $0x28] sm:$0xff] }
 0x3d8   :  { %7337 = vmatprep.subr.mxu0 %v2074_v10 }
 0x3d9   :  { %7338 = vmatpush3.msra.mxu0 %v2074_v10  ;;  %v2575_v10 = vld [vmem:[#allocation14 + $0x70] sm:$0xff] }
 0x3da   :  { %7339 = vmatprep.subr.mxu0 %v2073_v12 }
 0x3db   :  { %7340 = vmatpush3.msra.mxu0 %v2073_v12  ;;  %v2573_v12 = vld [vmem:[#allocation14 + $0x60] sm:$0xff] }
 0x478   :  { %v8101_v40 = vpop.f32.mrf.mxu0  ;;  %v7248_v14 = vpop.f32.mrf.mxu1 }
 0x479   :  { %v913_v22 = vadd.f32 %v7248_v14, %v8101_v40 }
 0x47a   :  { %v8103_v41 = vpop.f32.mrf.mxu0  ;;  %v907_v15 = vpop.f32.mrf.mxu1 }
 0x47b   :  { %v908_v24 = vadd.f32 %v907_v15, %v8103_v41 }
 0x47c   :  { %v7253_v42 = vpop.f32.mrf.mxu0 }
 0x47d   :  { %7254 = vmatprep.subr.mxu1 %v7253_v42 }
 0x47e   :  { %v984_v43 = vpop.f32.mrf.mxu0  ;;  %7255 = vmatpush3.msra.mxu1 %v7253_v42 }
 0x47f   :  { %7256 = vmatprep.subr.mxu1 %v984_v43 }
 0x480   :  { %7257 = vmatpush3.msra.mxu1 %v984_v43  ;;  %v7265_v46 = vpop.f32.mrf.mxu0 }
 0x481   :  { %7259 = vmatmul.mubr.msk.f32.vlgmr.msra.gmra.mxu1 %vm324_vm3, %v995_v44  ;;  %7266 = vmatprep.subr.mxu1 %v7265_v46 }
 0x482   :  { %v1147_v47 = vpop.f32.mrf.mxu0  ;;  %7267 = vmatpush3.msra.mxu1 %v7265_v46  ;;  %7270 = vmatprep.mubr.msk.f32.mxu1 %vm324_vm3, %v1157_v45  ;;  %v2067_v45 = vpop.permute.xlu1 %2066 }
 0x483   :  { %7268 = vmatprep.subr.mxu1 %v1147_v47 }
 0x484   :  { %7269 = vmatpush3.msra.mxu1 %v1147_v47  ;;  %v7277_v50 = vpop.f32.mrf.mxu0  ;;  %v2062_v47 = vpop.permute.xlu0 %2061 }
 0x485   :  { %7271 = vmatmul.mubr.msk.f32.vlgmr.msra.gmra.mxu1 %vm324_vm3, %v1158_v48  ;;  %7278 = vmatprep.subr.mxu1 %v7277_v50 }
 0x486   :  { %v1310_v51 = vpop.f32.mrf.mxu0  ;;  %7279 = vmatpush3.msra.mxu1 %v7277_v50  ;;  %7282 = vmatprep.mubr.msk.f32.mxu1 %vm324_vm3, %v1320_v49 }
 0x487   :  { %7280 = vmatprep.subr.mxu1 %v1310_v51 }
 0x488   :  { %7281 = vmatpush3.msra.mxu1 %v1310_v51  ;;  %v7289_v54 = vpop.f32.mrf.mxu0 }
 0x489   :  { %7283 = vmatmul.mubr.msk.f32.vlgmr.msra.gmra.mxu1 %vm324_vm3, %v1321_v52  ;;  %7290 = vmatprep.subr.mxu1 %v7289_v54  ;;  %v2242_v52 = vld [vmem:[#allocation20 + $0x10] sm:$0xff] }
 0x48a   :  { %v1473_v55 = vpop.f32.mrf.mxu0  ;;  %7291 = vmatpush3.msra.mxu1 %v7289_v54  ;;  %7294 = vmatprep.mubr.msk.f32.mxu1 %vm324_vm3, %v1483_v53  ;;  %v2159_v53 = vld [vmem:[#allocation20] sm:$0xff] }
 0x48b   :  { %7292 = vmatprep.subr.mxu1 %v1473_v55 }
 0x48c   :  { %7293 = vmatpush3.msra.mxu1 %v1473_v55  ;;  %v7301_v58 = vpop.f32.mrf.mxu0 }
 0x48d   :  { %7295 = vmatmul.mubr.msk.f32.vlgmr.msra.gmra.mxu1 %vm324_vm3, %v1484_v56  ;;  %7302 = vmatprep.subr.mxu1 %v7301_v58 }
 0x48e   :  { %v1636_v59 = vpop.f32.mrf.mxu0  ;;  %7303 = vmatpush3.msra.mxu1 %v7301_v58  ;;  %7306 = vmatprep.mubr.msk.f32.mxu1 %vm324_vm3, %v1646_v57  ;;  %v2243_v58 = vld [vmem:[#allocation20 + $0x18] sm:$0xff] }
 0x48f   :  { %7304 = vmatprep.subr.mxu1 %v1636_v59 }
 0x490   :  { %7305 = vmatpush3.msra.mxu1 %v1636_v59  ;;  %v7313_v62 = vpop.f32.mrf.mxu0  ;;  %v2160_v59 = vld [vmem:[#allocation20 + $0x8] sm:$0xff] }
 0x491   :  { %7307 = vmatmul.mubr.msk.f32.vlgmr.msra.gmra.mxu1 %vm324_vm3, %v1647_v60  ;;  %7314 = vmatprep.subr.mxu1 %v7313_v62  ;;  %v2410_v60 = vld [vmem:[#allocation14 + $0x58] sm:$0xff] }
 0x492   :  { %v1799_v63 = vpop.f32.mrf.mxu0  ;;  %7315 = vmatpush3.msra.mxu1 %v7313_v62  ;;  %7318 = vmatprep.mubr.msk.f32.mxu1 %vm324_vm3, %v1809_v61  ;;  %v2409_v61 = vld [vmem:[#allocation14 + $0x50] sm:$0xff]  ;;  %v2408_v62 = vld [vmem:[#allocation14 + $0x48] sm:$0xff] }
 0x493   :  { %7316 = vmatprep.subr.mxu1 %v1799_v63 }
 0x494   :  { %7317 = vmatpush3.msra.mxu1 %v1799_v63  ;;  %v7325_v3 = vpop.f32.mrf.mxu0  ;;  %v2407_v63 = vld [vmem:[#allocation14 + $0x40] sm:$0xff] }
 0x495   :  { %7319 = vmatmul.mubr.msk.f32.vlgmr.msra.gmra.mxu1 %vm324_vm3, %v1810_v1  ;;  %7326 = vmatprep.subr.mxu1 %v7325_v3  ;;  %v2487_v1 = vld [vmem:[#allocation20 + $0x20] sm:$0xff] }
 0x496   :  { %v1962_v4 = vpop.f32.mrf.mxu0  ;;  %7327 = vmatpush3.msra.mxu1 %v7325_v3  ;;  %7330 = vmatprep.mubr.msk.f32.mxu1 %vm324_vm3, %v1972_v2 }
 0x497   :  { %7328 = vmatprep.subr.mxu1 %v1962_v4 }
 0x498   :  { %7329 = vmatpush3.msra.mxu1 %v1962_v4 }
 0x499   :  { %7331 = vmatmul.mubr.msk.f32.vlgmr.msra.gmra.mxu1 %vm324_vm3, %v1973_v5  ;;  %7344 = vmatprep.subr.mxu1 %v2165_v7 }
 0x49a   :  { %7345 = vmatpush3.msra.mxu1 %v2165_v7 }
 0x49b   :  { %7346 = vmatprep.subr.mxu1 %v2164_v9 }
 0x49c   :  { %7347 = vmatpush3.msra.mxu1 %v2164_v9  ;;  %v2576_v9 = vld [vmem:[#allocation14 + $0x78] sm:$0xff] }
 0x49d   :  { %7348 = vmatprep.subr.mxu1 %v2163_v11 }
 0x49e   :  { %7349 = vmatpush3.msra.mxu1 %v2163_v11  ;;  %v2574_v11 = vld [vmem:[#allocation14 + $0x68] sm:$0xff] }
 0x49f   :  { %7350 = vmatprep.subr.mxu1 %v2162_v13 }
 0x4a0   :  { %7351 = vmatpush3.msra.mxu1 %v2162_v13  ;;  %v2653_v13 = vld [vmem:[#allocation20 + $0x30] sm:$0xff] }
 0x541   :  { %v7260_v16 = vpop.f32.mrf.mxu1 }
 0x542   :  { %v1078_v25 = vadd.f32 %v7260_v16, %v913_v22  ;;  %v2654_v22 = vld [vmem:[#allocation20 + $0x38] sm:$0xff] }
 0x543   :  { %v1068_v17 = vpop.f32.mrf.mxu1 }
 0x544   :  { %v1077_v27 = vadd.f32 %v1068_v17, %v908_v24  ;;  %v2741_v24 = vld [vmem:[#allocation14 + $0x90] sm:$0xff] }
 0x545   :  { %v7272_v18 = vpop.f32.mrf.mxu1 }
 0x546   :  { %v1241_v28 = vadd.f32 %v7272_v18, %v1078_v25  ;;  %v2740_v25 = vld [vmem:[#allocation14 + $0x88] sm:$0xff] }
 0x547   :  { %v1231_v19 = vpop.f32.mrf.mxu1 }
 0x548   :  { %v1240_v30 = vadd.f32 %v1231_v19, %v1077_v27  ;;  %v2819_v27 = vld [vmem:[#allocation20 + $0x40] sm:$0xff] }
 0x549   :  { %v7284_v20 = vpop.f32.mrf.mxu1 }
 0x54a   :  { %v1404_v31 = vadd.f32 %v7284_v20, %v1241_v28 }
 0x54b   :  { %v1394_v21 = vpop.f32.mrf.mxu1 }
 0x54c   :  { %v1403_v33 = vadd.f32 %v1394_v21, %v1240_v30 }
 0x54d   :  { %v7296_v23 = vpop.f32.mrf.mxu1 }
 0x54e   :  { %v1567_v34 = vadd.f32 %v7296_v23, %v1404_v31  ;;  %v2742_v23 = vld [vmem:[#allocation14 + $0x98] sm:$0xff] }
 0x54f   :  { %v1557_v26 = vpop.f32.mrf.mxu1 }
 0x550   :  { %v1566_v36 = vadd.f32 %v1557_v26, %v1403_v33  ;;  %v2739_v26 = vld [vmem:[#allocation14 + $0x80] sm:$0xff] }
 0x551   :  { %v7308_v29 = vpop.f32.mrf.mxu1 }
 0x552   :  { %v1730_v37 = vadd.f32 %v7308_v29, %v1567_v34  ;;  %v2820_v34 = vld [vmem:[#allocation20 + $0x48] sm:$0xff] }
 0x553   :  { %v1720_v32 = vpop.f32.mrf.mxu1 }
 0x554   :  { %v1729_v39 = vadd.f32 %v1720_v32, %v1566_v36  ;;  %v2907_v36 = vld [vmem:[#allocation14 + $0xb0] sm:$0xff] }
 0x555   :  { %v7320_v35 = vpop.f32.mrf.mxu1 }
 0x556   :  { %v1893_v42 = vadd.f32 %v7320_v35, %v1730_v37  ;;  %v2908_v35 = vld [vmem:[#allocation14 + $0xb8] sm:$0xff]  ;;  %v2906_v37 = vld [vmem:[#allocation14 + $0xa8] sm:$0xff] }
 0x557   :  { %v1883_v38 = vpop.f32.mrf.mxu1 }
 0x558   :  { %v1892_v43 = vadd.f32 %v1883_v38, %v1729_v39  ;;  %v2905_v38 = vld [vmem:[#allocation14 + $0xa0] sm:$0xff]  ;;  %v2985_v39 = vld [vmem:[#allocation20 + $0x50] sm:$0xff] }
 0x559   :  { %v7332_v40 = vpop.f32.mrf.mxu1 }
 0x55a   :  { %v2056_v44 = vadd.f32 %v7332_v40, %v1893_v42 }
 0x55b   :  { %v2046_v41 = vpop.f32.mrf.mxu1 }
 0x55c   :  { %v2055_v46 = vadd.f32 %v2046_v41, %v1892_v43  ;;  %v2070_v48 = vadd.f32 %v2067_v45, %v2056_v44 }
 0x55e   :  { %v2069_v49 = vadd.f32 %v2062_v47, %v2055_v46  ;;  %v8122_v51 = vmax.f32 %v2070_v48, 0.0  ;;  %v2986_v46 = vld [vmem:[#allocation20 + $0x58] sm:$0xff]  ;;  %v3073_v48 = vld [vmem:[#allocation14 + $0xd0] sm:$0xff] }
 0x55f   :  { %v3074_v47 = vld [vmem:[#allocation14 + $0xd8] sm:$0xff] }
 0x560   :  { %v8120_v50 = vmax.f32 %v2069_v49, 0.0  ;;  %v3072_v49 = vld [vmem:[#allocation14 + $0xc8] sm:$0xff] }
 0x562   :  { %7341 = vmatprep.mubr.msk.f32.mxu0 %vm2077_vm8, %v8120_v50  ;;  %7352 = vmatprep.mubr.msk.f32.mxu1 %vm2077_vm8, %v8120_v50 }
 0x563   :  { %7342 = vmatmul.mubr.msk.f32.vlgmr.msra.gmra.mxu0 %vm2077_vm8, %v8122_v51  ;;  %7353 = vmatmul.mubr.msk.f32.vlgmr.msra.gmra.mxu1 %vm2077_vm8, %v8122_v51 }
 0x564   :  { %7359 = vmatprep.mubr.msk.f32.mxu0 %vm324_vm3, %v2242_v52  ;;  %7366 = vmatprep.mubr.msk.f32.mxu1 %vm324_vm3, %v2159_v53  ;;  %v3071_v52 = vld [vmem:[#allocation14 + $0xc0] sm:$0xff] }
 0x565   :  { %v3151_v53 = vld [vmem:[#allocation20 + $0x60] sm:$0xff] }
 0x623   :  { %v7343_v54 = vpop.f32.mrf.mxu0  ;;  %v7354_v55 = vpop.f32.mrf.mxu1 }
 0x624   :  { %7355 = vmatprep.subr.mxu0 %v7354_v55  ;;  %7362 = vmatprep.subr.mxu1 %v7343_v54 }
 0x625   :  { %v2150_v56 = vpop.f32.mrf.mxu0  ;;  %v2232_v57 = vpop.f32.mrf.mxu1  ;;  %7356 = vmatpush3.msra.mxu0 %v7354_v55  ;;  %7363 = vmatpush3.msra.mxu1 %v7343_v54 }
 0x626   :  { %7357 = vmatprep.subr.mxu0 %v2232_v57  ;;  %7364 = vmatprep.subr.mxu1 %v2150_v56 }
 0x627   :  { %7358 = vmatpush3.msra.mxu0 %v2232_v57  ;;  %7365 = vmatpush3.msra.mxu1 %v2150_v56 }
 0x628   :  { %7360 = vmatmul.mubr.msk.f32.vlgmr.msra.gmra.mxu0 %vm324_vm3, %v2243_v58  ;;  %7367 = vmatmul.mubr.msk.f32.vlgmr.msra.gmra.mxu1 %vm324_vm3, %v2160_v59 }
 0x629   :  { %7369 = vmatprep.subr.mxu0 %v2410_v60  ;;  %7377 = vmatprep.mubr.msk.f32.mxu0 %vm2077_vm8, %v8120_v50 }
 0x62a   :  { %7370 = vmatpush3.msra.mxu0 %v2410_v60  ;;  %7384 = vmatprep.mubr.msk.f32.mxu1 %vm324_vm3, %v2487_v1  ;;  %v3152_v60 = vld [vmem:[#allocation20 + $0x68] sm:$0xff]  ;;  %v3237_v1 = vld [vmem:[#allocation14 + $0xe0] sm:$0xff] }
 0x62b   :  { %7371 = vmatprep.subr.mxu0 %v2409_v61 }
 0x62c   :  { %7372 = vmatpush3.msra.mxu0 %v2409_v61  ;;  %v3240_v61 = vld [vmem:[#allocation14 + $0xf8] sm:$0xff] }
 0x62d   :  { %7373 = vmatprep.subr.mxu0 %v2408_v62 }
 0x62e   :  { %7374 = vmatpush3.msra.mxu0 %v2408_v62  ;;  %v3239_v62 = vld [vmem:[#allocation14 + $0xf0] sm:$0xff] }
 0x62f   :  { %7375 = vmatprep.subr.mxu0 %v2407_v63 }
 0x630   :  { %7376 = vmatpush3.msra.mxu0 %v2407_v63  ;;  %v3238_v63 = vld [vmem:[#allocation14 + $0xe8] sm:$0xff] }
 0x631   :  { %7378 = vmatmul.mubr.msk.f32.vlgmr.msra.gmra.mxu0 %vm2077_vm8, %v8122_v51 }
 0x632   :  { %7402 = vmatprep.mubr.msk.f32.mxu0 %vm324_vm3, %v2653_v13  ;;  %v3403_v13 = vld [vmem:[#allocation14 + $0x100] sm:$0xff] }
 0x6e8   :  { %v7361_v2 = vpop.f32.mrf.mxu0  ;;  %v7368_v3 = vpop.f32.mrf.mxu1 }
 0x6e9   :  { %v2403_v4 = vadd.f32 %v7368_v3, %v7361_v2  ;;  %v3317_v2 = vld [vmem:[#allocation20 + $0x70] sm:$0xff] }
 0x6ea   :  { %v2316_v5 = vpop.f32.mrf.mxu0  ;;  %v2397_v14 = vpop.f32.mrf.mxu1 }
 0x6eb   :  { %v2398_v16 = vadd.f32 %v2397_v14, %v2316_v5  ;;  %v3483_v14 = vld [vmem:[#allocation20 + $0x80] sm:$0xff] }
 0x6f1   :  { %v7379_v6 = vpop.f32.mrf.mxu0 }
 0x6f2   :  { %7380 = vmatprep.subr.mxu1 %v7379_v6 }
 0x6f3   :  { %v2477_v7 = vpop.f32.mrf.mxu0  ;;  %7381 = vmatpush3.msra.mxu1 %v7379_v6 }
 0x6f4   :  { %7382 = vmatprep.subr.mxu1 %v2477_v7 }
 0x6f5   :  { %7383 = vmatpush3.msra.mxu1 %v2477_v7 }
 0x6f6   :  { %7385 = vmatmul.mubr.msk.f32.vlgmr.msra.gmra.mxu1 %vm324_vm3, %v2488_v8  ;;  %7387 = vmatprep.subr.mxu1 %v2576_v9 }
 0x6f7   :  { %7388 = vmatpush3.msra.mxu1 %v2576_v9  ;;  %7395 = vmatprep.mubr.msk.f32.mxu1 %vm2077_vm8, %v8120_v50  ;;  %v3318_v9 = vld [vmem:[#allocation20 + $0x78] sm:$0xff] }
 0x6f8   :  { %7389 = vmatprep.subr.mxu1 %v2575_v10 }
 0x6f9   :  { %7390 = vmatpush3.msra.mxu1 %v2575_v10  ;;  %v3406_v10 = vld [vmem:[#allocation14 + $0x118] sm:$0xff] }
 0x6fa   :  { %7391 = vmatprep.subr.mxu1 %v2574_v11 }
 0x6fb   :  { %7392 = vmatpush3.msra.mxu1 %v2574_v11  ;;  %v3405_v11 = vld [vmem:[#allocation14 + $0x110] sm:$0xff] }
 0x6fc   :  { %7393 = vmatprep.subr.mxu1 %v2573_v12 }
 0x6fd   :  { %7394 = vmatpush3.msra.mxu1 %v2573_v12  ;;  %v3404_v12 = vld [vmem:[#allocation14 + $0x108] sm:$0xff] }
 0x6fe   :  { %7396 = vmatmul.mubr.msk.f32.vlgmr.msra.gmra.mxu1 %vm2077_vm8, %v8122_v51 }
 0x6ff   :  { %7420 = vmatprep.mubr.msk.f32.mxu1 %vm324_vm3, %v2819_v27  ;;  %v3619_v27 = vld [vmem:[#allocation15 + $0x118] sm:$0xff] }
 0x7b6   :  { %v7386_v15 = vpop.f32.mrf.mxu1 }
 0x7b7   :  { %v2571_v17 = vadd.f32 %v7386_v15, %v2403_v4  ;;  %v3647_v15 = vld [vmem:[#allocation15 + $0x1f8] sm:$0xff] }
 0x7b8   :  { %v2561_v18 = vpop.f32.mrf.mxu1 }
 0x7b9   :  { %v2570_v19 = vadd.f32 %v2561_v18, %v2398_v16  ;;  %v3646_v16 = vld [vmem:[#allocation15 + $0x1f0] sm:$0xff]  ;;  %v3639_v18 = vld [vmem:[#allocation15 + $0x1b8] sm:$0xff] }
 0x7be   :  { %v7397_v20 = vpop.f32.mrf.mxu1 }
 0x7bf   :  { %7398 = vmatprep.subr.mxu0 %v7397_v20 }
 0x7c0   :  { %v2643_v21 = vpop.f32.mrf.mxu1  ;;  %7399 = vmatpush3.msra.mxu0 %v7397_v20  ;;  %v3635_v20 = vld [vmem:[#allocation15 + $0x198] sm:$0xff] }
 0x7c1   :  { %7400 = vmatprep.subr.mxu0 %v2643_v21 }
 0x7c2   :  { %7401 = vmatpush3.msra.mxu0 %v2643_v21  ;;  %v3631_v21 = vld [vmem:[#allocation15 + $0x178] sm:$0xff] }
 0x7c3   :  { %7403 = vmatmul.mubr.msk.f32.vlgmr.msra.gmra.mxu0 %vm324_vm3, %v2654_v22  ;;  %7405 = vmatprep.subr.mxu0 %v2742_v23  ;;  %v3630_v22 = vld [vmem:[#allocation15 + $0x170] sm:$0xff] }
 0x7c4   :  { %7406 = vmatpush3.msra.mxu0 %v2742_v23  ;;  %7413 = vmatprep.mubr.msk.f32.mxu0 %vm2077_vm8, %v8120_v50  ;;  %v3627_v23 = vld [vmem:[#allocation15 + $0x158] sm:$0xff] }
 0x7c5   :  { %7407 = vmatprep.subr.mxu0 %v2741_v24 }
 0x7c6   :  { %7408 = vmatpush3.msra.mxu0 %v2741_v24  ;;  %v3626_v24 = vld [vmem:[#allocation15 + $0x150] sm:$0xff] }
 0x7c7   :  { %7409 = vmatprep.subr.mxu0 %v2740_v25 }
 0x7c8   :  { %7410 = vmatpush3.msra.mxu0 %v2740_v25  ;;  %v3623_v25 = vld [vmem:[#allocation15 + $0x138] sm:$0xff] }
 0x7c9   :  { %7411 = vmatprep.subr.mxu0 %v2739_v26 }
 0x7ca   :  { %7412 = vmatpush3.msra.mxu0 %v2739_v26  ;;  %v3622_v26 = vld [vmem:[#allocation15 + $0x130] sm:$0xff] }
 0x7cb   :  { %7414 = vmatmul.mubr.msk.f32.vlgmr.msra.gmra.mxu0 %vm2077_vm8, %v8122_v51 }
 0x7cc   :  { %7438 = vmatprep.mubr.msk.f32.mxu0 %vm324_vm3, %v2985_v39 }
 0x883   :  { %v7404_v28 = vpop.f32.mrf.mxu0 }
 0x884   :  { %v2737_v29 = vadd.f32 %v7404_v28, %v2571_v17  ;;  %v3642_v17 = vld [vmem:[#allocation15 + $0x1d0] sm:$0xff] }
 0x885   :  { %v2727_v30 = vpop.f32.mrf.mxu0  ;;  %v3618_v28 = vld [vmem:[#allocation15 + $0x110] sm:$0xff] }
 0x886   :  { %v2736_v31 = vadd.f32 %v2727_v30, %v2570_v19  ;;  %v3638_v19 = vld [vmem:[#allocation15 + $0x1b0] sm:$0xff] }
 0x887   :  { %v3614_v30 = vld [vmem:[#allocation15 + $0xf0] sm:$0xff] }
 0x88b   :  { %v7415_v32 = vpop.f32.mrf.mxu0 }
 0x88c   :  { %7416 = vmatprep.subr.mxu1 %v7415_v32 }
 0x88d   :  { %v2809_v33 = vpop.f32.mrf.mxu0  ;;  %7417 = vmatpush3.msra.mxu1 %v7415_v32  ;;  %v3610_v32 = vld [vmem:[#allocation15 + $0xd0] sm:$0xff] }
 0x88e   :  { %7418 = vmatprep.subr.mxu1 %v2809_v33 }
 0x88f   :  { %7419 = vmatpush3.msra.mxu1 %v2809_v33  ;;  %v3607_v33 = vld [vmem:[#allocation15 + $0xb8] sm:$0xff] }
 0x890   :  { %7421 = vmatmul.mubr.msk.f32.vlgmr.msra.gmra.mxu1 %vm324_vm3, %v2820_v34  ;;  %7423 = vmatprep.subr.mxu1 %v2908_v35  ;;  %v3606_v34 = vld [vmem:[#allocation15 + $0xb0] sm:$0xff] }
 0x891   :  { %7424 = vmatpush3.msra.mxu1 %v2908_v35  ;;  %7431 = vmatprep.mubr.msk.f32.mxu1 %vm2077_vm8, %v8120_v50  ;;  %v3603_v35 = vld [vmem:[#allocation15 + $0x98] sm:$0xff] }
 0x892   :  { %7425 = vmatprep.subr.mxu1 %v2907_v36 }
 0x893   :  { %7426 = vmatpush3.msra.mxu1 %v2907_v36  ;;  %v3602_v36 = vld [vmem:[#allocation15 + $0x90] sm:$0xff] }
 0x894   :  { %7427 = vmatprep.subr.mxu1 %v2906_v37 }
 0x895   :  { %7428 = vmatpush3.msra.mxu1 %v2906_v37 }
 0x896   :  { %7429 = vmatprep.subr.mxu1 %v2905_v38 }
 0x897   :  { %7430 = vmatpush3.msra.mxu1 %v2905_v38 }
 0x898   :  { %7432 = vmatmul.mubr.msk.f32.vlgmr.msra.gmra.mxu1 %vm2077_vm8, %v8122_v51 }
 0x899   :  { %7456 = vmatprep.mubr.msk.f32.mxu1 %vm324_vm3, %v3151_v53  ;;  %v3632_v53 = vld [vmem:[#allocation15 + $0x180] sm:$0xff] }
 0x950   :  { %v7422_v42 = vpop.f32.mrf.mxu1 }
 0x951   :  { %v2903_v40 = vadd.f32 %v7422_v42, %v2737_v29  ;;  %v3615_v29 = vld [vmem:[#allocation15 + $0xf8] sm:$0xff] }
 0x952   :  { %v2893_v43 = vpop.f32.mrf.mxu1 }
 0x953   :  { %v2902_v44 = vadd.f32 %v2893_v43, %v2736_v31  ;;  %v3611_v31 = vld [vmem:[#allocation15 + $0xd8] sm:$0xff] }
 0x958   :  { %v7433_v41 = vpop.f32.mrf.mxu1 }
 0x959   :  { %7434 = vmatprep.subr.mxu0 %v7433_v41 }
 0x95a   :  { %v2975_v45 = vpop.f32.mrf.mxu1  ;;  %7435 = vmatpush3.msra.mxu0 %v7433_v41  ;;  %v3645_v41 = vld [vmem:[#allocation15 + $0x1e8] sm:$0xff] }
 0x95b   :  { %7436 = vmatprep.subr.mxu0 %v2975_v45 }
 0x95c   :  { %7437 = vmatpush3.msra.mxu0 %v2975_v45  ;;  %v3644_v45 = vld [vmem:[#allocation15 + $0x1e0] sm:$0xff] }
 0x95d   :  { %7439 = vmatmul.mubr.msk.f32.vlgmr.msra.gmra.mxu0 %vm324_vm3, %v2986_v46  ;;  %7441 = vmatprep.subr.mxu0 %v3074_v47  ;;  %v3641_v46 = vld [vmem:[#allocation15 + $0x1c8] sm:$0xff] }
 0x95e   :  { %7442 = vmatpush3.msra.mxu0 %v3074_v47  ;;  %7449 = vmatprep.mubr.msk.f32.mxu0 %vm2077_vm8, %v8120_v50  ;;  %v3640_v47 = vld [vmem:[#allocation15 + $0x1c0] sm:$0xff] }
 0x95f   :  { %7443 = vmatprep.subr.mxu0 %v3073_v48 }
 0x960   :  { %7444 = vmatpush3.msra.mxu0 %v3073_v48  ;;  %v3637_v48 = vld [vmem:[#allocation15 + $0x1a8] sm:$0xff] }
 0x961   :  { %7445 = vmatprep.subr.mxu0 %v3072_v49 }
 0x962   :  { %7446 = vmatpush3.msra.mxu0 %v3072_v49  ;;  %v3636_v49 = vld [vmem:[#allocation15 + $0x1a0] sm:$0xff] }
 0x963   :  { %7447 = vmatprep.subr.mxu0 %v3071_v52 }
 0x964   :  { %7448 = vmatpush3.msra.mxu0 %v3071_v52  ;;  %v3633_v52 = vld [vmem:[#allocation15 + $0x188] sm:$0xff] }
 0x965   :  { %7450 = vmatmul.mubr.msk.f32.vlgmr.msra.gmra.mxu0 %vm2077_vm8, %v8122_v51 }
 0x966   :  { %7474 = vmatprep.mubr.msk.f32.mxu0 %vm324_vm3, %v3317_v2  ;;  %v3608_v2 = vld [vmem:[#allocation15 + $0xc0] sm:$0xff] }
 0xa1d   :  { %v7440_v54 = vpop.f32.mrf.mxu0 }
 0xa1e   :  { %v3069_v55 = vadd.f32 %v7440_v54, %v2903_v40  ;;  %v3629_v54 = vld [vmem:[#allocation15 + $0x168] sm:$0xff] }
 0xa1f   :  { %v3059_v56 = vpop.f32.mrf.mxu0 }
 0xa20   :  { %v3068_v57 = vadd.f32 %v3059_v56, %v2902_v44  ;;  %v3484_v44 = vld [vmem:[#allocation20 + $0x88] sm:$0xff] }
 0xa21   :  { %v3625_v56 = vld [vmem:[#allocation15 + $0x148] sm:$0xff] }
 0xa25   :  { %v7451_v58 = vpop.f32.mrf.mxu0 }
 0xa26   :  { %7452 = vmatprep.subr.mxu1 %v7451_v58 }
 0xa27   :  { %v3141_v59 = vpop.f32.mrf.mxu0  ;;  %7453 = vmatpush3.msra.mxu1 %v7451_v58  ;;  %v3621_v58 = vld [vmem:[#allocation15 + $0x128] sm:$0xff] }
 0xa28   :  { %7454 = vmatprep.subr.mxu1 %v3141_v59 }
 0xa29   :  { %7455 = vmatpush3.msra.mxu1 %v3141_v59  ;;  %v3620_v59 = vld [vmem:[#allocation15 + $0x120] sm:$0xff] }
 0xa2a   :  { %7457 = vmatmul.mubr.msk.f32.vlgmr.msra.gmra.mxu1 %vm324_vm3, %v3152_v60  ;;  %7459 = vmatprep.subr.mxu1 %v3240_v61  ;;  %v3617_v60 = vld [vmem:[#allocation15 + $0x108] sm:$0xff] }
 0xa2b   :  { %7460 = vmatpush3.msra.mxu1 %v3240_v61  ;;  %7467 = vmatprep.mubr.msk.f32.mxu1 %vm2077_vm8, %v8120_v50  ;;  %v3616_v61 = vld [vmem:[#allocation15 + $0x100] sm:$0xff] }
 0xa2c   :  { %7461 = vmatprep.subr.mxu1 %v3239_v62 }
 0xa2d   :  { %7462 = vmatpush3.msra.mxu1 %v3239_v62  ;;  %v3613_v62 = vld [vmem:[#allocation15 + $0xe8] sm:$0xff] }
 0xa2e   :  { %7463 = vmatprep.subr.mxu1 %v3238_v63 }
 0xa2f   :  { %7464 = vmatpush3.msra.mxu1 %v3238_v63  ;;  %v3612_v63 = vld [vmem:[#allocation15 + $0xe0] sm:$0xff] }
 0xa30   :  { %7465 = vmatprep.subr.mxu1 %v3237_v1 }
 0xa31   :  { %7466 = vmatpush3.msra.mxu1 %v3237_v1  ;;  %v3609_v1 = vld [vmem:[#allocation15 + $0xc8] sm:$0xff] }
 0xa32   :  { %7468 = vmatmul.mubr.msk.f32.vlgmr.msra.gmra.mxu1 %vm2077_vm8, %v8122_v51 }
 0xa33   :  { %7492 = vmatprep.mubr.msk.f32.mxu1 %vm324_vm3, %v3483_v14  ;;  %v3594_v14 = vld [vmem:[#allocation15 + $0x50] sm:$0xff] }
 0xaea   :  { %v7458_v3 = vpop.f32.mrf.mxu1 }
 0xaeb   :  { %v8171_v4 = vadd.f32 %v7458_v3, %v3069_v55  ;;  %v3628_v55 = vld [vmem:[#allocation15 + $0x160] sm:$0xff]  ;;  %v3605_v3 = vld [vmem:[#allocation15 + $0xa8] sm:$0xff] }
 0xaec   :  { %v3225_v5 = vpop.f32.mrf.mxu1 }
 0xaed   :  { %v8173_v6 = vadd.f32 %v3225_v5, %v3068_v57  ;;  %v3624_v57 = vld [vmem:[#allocation15 + $0x140] sm:$0xff]  ;;  %v3601_v5 = vld [vmem:[#allocation15 + $0x88] sm:$0xff] }
 0xaf2   :  { %v7469_v7 = vpop.f32.mrf.mxu1 }
 0xaf3   :  { %7470 = vmatprep.subr.mxu0 %v7469_v7 }
 0xaf4   :  { %v3307_v8 = vpop.f32.mrf.mxu1  ;;  %7471 = vmatpush3.msra.mxu0 %v7469_v7  ;;  %v3597_v7 = vld [vmem:[#allocation15 + $0x68] sm:$0xff] }
 0xaf5   :  { %7472 = vmatprep.subr.mxu0 %v3307_v8 }
 0xaf6   :  { %7473 = vmatpush3.msra.mxu0 %v3307_v8  ;;  %v3599_v8 = vld [vmem:[#allocation15 + $0x78] sm:$0xff] }
 0xaf7   :  { %7475 = vmatmul.mubr.msk.f32.vlgmr.msra.gmra.mxu0 %vm324_vm3, %v3318_v9  ;;  %7477 = vmatprep.subr.mxu0 %v3406_v10  ;;  %v3596_v9 = vld [vmem:[#allocation15 + $0x60] sm:$0xff] }
 0xaf8   :  { %7478 = vmatpush3.msra.mxu0 %v3406_v10  ;;  %7485 = vmatprep.mubr.msk.f32.mxu0 %vm2077_vm8, %v8120_v50  ;;  %v3643_v50 = vld [vmem:[#allocation15 + $0x1d8] sm:$0xff]  ;;  %v3598_v10 = vld [vmem:[#allocation15 + $0x70] sm:$0xff] }
 0xaf9   :  { %7479 = vmatprep.subr.mxu0 %v3405_v11 }
 0xafa   :  { %7480 = vmatpush3.msra.mxu0 %v3405_v11  ;;  %v3593_v11 = vld [vmem:[#allocation15 + $0x48] sm:$0xff] }
 0xafb   :  { %7481 = vmatprep.subr.mxu0 %v3404_v12 }
 0xafc   :  { %7482 = vmatpush3.msra.mxu0 %v3404_v12  ;;  %v3595_v12 = vld [vmem:[#allocation15 + $0x58] sm:$0xff] }
 0xafd   :  { %7483 = vmatprep.subr.mxu0 %v3403_v13 }
 0xafe   :  { %7484 = vmatpush3.msra.mxu0 %v3403_v13  ;;  %v3592_v13 = vld [vmem:[#allocation15 + $0x40] sm:$0xff] }
 0xaff   :  { %7486 = vmatmul.mubr.msk.f32.vlgmr.msra.gmra.mxu0 %vm2077_vm8, %v8122_v51  ;;  %3725 = vmatprep.subr.mxu0 %v3647_v15  ;;  %v3634_v51 = vld [vmem:[#allocation15 + $0x190] sm:$0xff]  ;;  %v3589_v15 = vld [vmem:[#allocation15 + $0x28] sm:$0xff] }
 0xb00   :  { %3789 = vmatprep.mubr.f32.mxu0 %v7867_v0  ;;  %3726 = vmatpush1.msra.mxu0 %v3646_v16  ;;  %v3591_v16 = vld [vmem:[#allocation15 + $0x38] sm:$0xff] }
 0xb01   :  { %3727 = vmatprep.subr.mxu0 %v3643_v50  ;;  %v3588_v50 = vld [vmem:[#allocation15 + $0x20] sm:$0xff] }
 0xb02   :  { %3728 = vmatpush1.msra.mxu0 %v3642_v17  ;;  %v3590_v17 = vld [vmem:[#allocation15 + $0x30] sm:$0xff] }
 0xb03   :  { %3729 = vmatprep.subr.mxu0 %v3639_v18  ;;  %v3585_v18 = vld [vmem:[#allocation15 + $0x8] sm:$0xff] }
 0xb04   :  { %3730 = vmatpush1.msra.mxu0 %v3638_v19  ;;  %v3587_v19 = vld [vmem:[#allocation15 + $0x18] sm:$0xff] }
 0xb05   :  { %3731 = vmatprep.subr.mxu0 %v3635_v20  ;;  %v3584_v20 = vld [vmem:[#allocation15] sm:$0xff] }
 0xb06   :  { %3732 = vmatpush1.msra.mxu0 %v3634_v51  ;;  %v3586_v51 = vld [vmem:[#allocation15 + $0x10] sm:$0xff] }
 0xb07   :  { %3733 = vmatprep.subr.mxu0 %v3631_v21  ;;  %v3865_v21 = vld [vmem:[#allocation15 + $0x3e8] sm:$0xff] }
 0xb08   :  { %3734 = vmatpush1.msra.mxu0 %v3630_v22  ;;  %v3867_v22 = vld [vmem:[#allocation15 + $0x3f8] sm:$0xff] }
 0xb09   :  { %3735 = vmatprep.subr.mxu0 %v3627_v23 }
 0xb0a   :  { %3736 = vmatpush1.msra.mxu0 %v3626_v24 }
 0xb0b   :  { %3737 = vmatprep.subr.mxu0 %v3623_v25 }
 0xb0c   :  { %3738 = vmatpush1.msra.mxu0 %v3622_v26  ;;  %v3573_v26 = vpop.permute.xlu1 %3572 }
 0xb0d   :  { %3739 = vmatprep.subr.mxu0 %v3619_v27 }
 0xb0e   :  { %3740 = vmatpush1.msra.mxu0 %v3618_v28 }
 0xb0f   :  { %3741 = vmatprep.subr.mxu0 %v3615_v29 }
 0xb10   :  { %3742 = vmatpush1.msra.mxu0 %v3614_v30  ;;  %v3864_v30 = vld [vmem:[#allocation15 + $0x3e0] sm:$0xff] }
 0xb11   :  { %3743 = vmatprep.subr.mxu0 %v3611_v31  ;;  %v3866_v31 = vld [vmem:[#allocation15 + $0x3f0] sm:$0xff] }
 0xb12   :  { %3744 = vmatpush1.msra.mxu0 %v3610_v32  ;;  %v3578_v32 = vpop.permute.xlu0 %3577 }
 0xb13   :  { %3745 = vmatprep.subr.mxu0 %v3607_v33  ;;  %v3861_v33 = vld [vmem:[#allocation15 + $0x3c8] sm:$0xff] }
 0xb14   :  { %3746 = vmatpush1.msra.mxu0 %v3606_v34  ;;  %v3863_v34 = vld [vmem:[#allocation15 + $0x3d8] sm:$0xff] }
 0xb15   :  { %3747 = vmatprep.subr.mxu0 %v3603_v35 }
 0xb16   :  { %3748 = vmatpush1.msra.mxu0 %v3602_v36  ;;  %v3860_v36 = vld [vmem:[#allocation15 + $0x3c0] sm:$0xff] }
 0xb17   :  { %3749 = vmatprep.subr.mxu0 %v3599_v8  ;;  %v3828_v8 = vld [vmem:[#allocation15 + $0x2c0] sm:$0xff] }
 0xb18   :  { %3750 = vmatpush1.msra.mxu0 %v3598_v10  ;;  %v3825_v10 = vld [vmem:[#allocation15 + $0x2a8] sm:$0xff] }
 0xb19   :  { %3751 = vmatprep.subr.mxu0 %v3595_v12  ;;  %v3824_v12 = vld [vmem:[#allocation15 + $0x2a0] sm:$0xff] }
 0xb1a   :  { %3752 = vmatpush1.msra.mxu0 %v3594_v14  ;;  %v3821_v14 = vld [vmem:[#allocation15 + $0x288] sm:$0xff] }
 0xb1b   :  { %3753 = vmatprep.subr.mxu0 %v3591_v16  ;;  %v3820_v16 = vld [vmem:[#allocation15 + $0x280] sm:$0xff] }
 0xb1c   :  { %3754 = vmatpush1.msra.mxu0 %v3590_v17  ;;  %v3817_v17 = vld [vmem:[#allocation15 + $0x268] sm:$0xff] }
 0xb1d   :  { %3755 = vmatprep.subr.mxu0 %v3587_v19  ;;  %v3816_v19 = vld [vmem:[#allocation15 + $0x260] sm:$0xff] }
 0xb1e   :  { %3756 = vmatpush1.msra.mxu0 %v3586_v51  ;;  %v3813_v51 = vld [vmem:[#allocation15 + $0x248] sm:$0xff] }
 0xb1f   :  { %3945 = vmatprep.subr.mxu0 %v3867_v22  ;;  %v3812_v22 = vld [vmem:[#allocation15 + $0x240] sm:$0xff] }
 0xbb7   :  { %v7476_v37 = vpop.f32.mrf.mxu0 }
 0xbb8   :  { %v8183_v38 = vadd.f32 %v7476_v37, %v8171_v4  ;;  %v3604_v4 = vld [vmem:[#allocation15 + $0xa0] sm:$0xff]  ;;  %v3862_v37 = vld [vmem:[#allocation15 + $0x3d0] sm:$0xff] }
 0xbb9   :  { %v3391_v39 = vpop.f32.mrf.mxu0 }
 0xbba   :  { %v8186_v42 = vadd.f32 %v3391_v39, %v8173_v6  ;;  %v3600_v6 = vld [vmem:[#allocation15 + $0x80] sm:$0xff]  ;;  %v3859_v39 = vld [vmem:[#allocation15 + $0x3b8] sm:$0xff] }
 0xbbf   :  { %v7487_v40 = vpop.f32.mrf.mxu0 }
 0xbc0   :  { %7488 = vmatprep.subr.mxu1 %v7487_v40 }
 0xbc1   :  { %v3473_v43 = vpop.f32.mrf.mxu0  ;;  %7489 = vmatpush3.msra.mxu1 %v7487_v40  ;;  %v3856_v40 = vld [vmem:[#allocation15 + $0x3a0] sm:$0xff] }
 0xbc2   :  { %7490 = vmatprep.subr.mxu1 %v3473_v43 }
 0xbc3   :  { %7491 = vmatpush3.msra.mxu1 %v3473_v43  ;;  %v3858_v43 = vld [vmem:[#allocation15 + $0x3b0] sm:$0xff] }
 0xbc4   :  { %7493 = vmatmul.mubr.msk.f32.vlgmr.msra.gmra.mxu1 %vm324_vm3, %v3484_v44  ;;  %3648 = vmatprep.subr.mxu1 %v3645_v41  ;;  %v3853_v44 = vld [vmem:[#allocation15 + $0x388] sm:$0xff]  ;;  %v3855_v41 = vld [vmem:[#allocation15 + $0x398] sm:$0xff] }
 0xbc5   :  { %3649 = vmatpush1.msra.mxu1 %v3644_v45  ;;  %3712 = vmatprep.mubr.f32.mxu1 %v7867_v0  ;;  %v3852_v45 = vld [vmem:[#allocation15 + $0x380] sm:$0xff] }
 0xbc6   :  { %3650 = vmatprep.subr.mxu1 %v3641_v46  ;;  %v3854_v46 = vld [vmem:[#allocation15 + $0x390] sm:$0xff] }
 0xbc7   :  { %3651 = vmatpush1.msra.mxu1 %v3640_v47  ;;  %v3849_v47 = vld [vmem:[#allocation15 + $0x368] sm:$0xff] }
 0xbc8   :  { %3652 = vmatprep.subr.mxu1 %v3637_v48  ;;  %v3851_v48 = vld [vmem:[#allocation15 + $0x378] sm:$0xff] }
 0xbc9   :  { %3653 = vmatpush1.msra.mxu1 %v3636_v49  ;;  %v3848_v49 = vld [vmem:[#allocation15 + $0x360] sm:$0xff] }
 0xbca   :  { %3654 = vmatprep.subr.mxu1 %v3633_v52  ;;  %v3850_v52 = vld [vmem:[#allocation15 + $0x370] sm:$0xff] }
 0xbcb   :  { %3655 = vmatpush1.msra.mxu1 %v3632_v53  ;;  %v3845_v53 = vld [vmem:[#allocation15 + $0x348] sm:$0xff] }
 0xbcc   :  { %3656 = vmatprep.subr.mxu1 %v3629_v54  ;;  %v3847_v54 = vld [vmem:[#allocation15 + $0x358] sm:$0xff] }
 0xbcd   :  { %3657 = vmatpush1.msra.mxu1 %v3628_v55  ;;  %v3844_v55 = vld [vmem:[#allocation15 + $0x340] sm:$0xff] }
 0xbce   :  { %3658 = vmatprep.subr.mxu1 %v3625_v56  ;;  %v3846_v56 = vld [vmem:[#allocation15 + $0x350] sm:$0xff] }
 0xbcf   :  { %3659 = vmatpush1.msra.mxu1 %v3624_v57  ;;  %v3841_v57 = vld [vmem:[#allocation15 + $0x328] sm:$0xff] }
 0xbd0   :  { %3660 = vmatprep.subr.mxu1 %v3621_v58  ;;  %v3843_v58 = vld [vmem:[#allocation15 + $0x338] sm:$0xff] }
 0xbd1   :  { %3661 = vmatpush1.msra.mxu1 %v3620_v59  ;;  %v3840_v59 = vld [vmem:[#allocation15 + $0x320] sm:$0xff] }
 0xbd2   :  { %3662 = vmatprep.subr.mxu1 %v3617_v60  ;;  %v3842_v60 = vld [vmem:[#allocation15 + $0x330] sm:$0xff] }
 0xbd3   :  { %3663 = vmatpush1.msra.mxu1 %v3616_v61  ;;  %v3837_v61 = vld [vmem:[#allocation15 + $0x308] sm:$0xff] }
 0xbd4   :  { %3664 = vmatprep.subr.mxu1 %v3613_v62  ;;  %v3839_v62 = vld [vmem:[#allocation15 + $0x318] sm:$0xff] }
 0xbd5   :  { %3665 = vmatpush1.msra.mxu1 %v3612_v63  ;;  %v3836_v63 = vld [vmem:[#allocation15 + $0x300] sm:$0xff] }
 0xbd6   :  { %3666 = vmatprep.subr.mxu1 %v3609_v1  ;;  %v3838_v1 = vld [vmem:[#allocation15 + $0x310] sm:$0xff] }
 0xbd7   :  { %3667 = vmatpush1.msra.mxu1 %v3608_v2  ;;  %v3833_v2 = vld [vmem:[#allocation15 + $0x2e8] sm:$0xff] }
 0xbd8   :  { %3668 = vmatprep.subr.mxu1 %v3605_v3  ;;  %v3835_v3 = vld [vmem:[#allocation15 + $0x2f8] sm:$0xff] }
 0xbd9   :  { %3669 = vmatpush1.msra.mxu1 %v3604_v4  ;;  %v3832_v4 = vld [vmem:[#allocation15 + $0x2e0] sm:$0xff] }
 0xbda   :  { %3670 = vmatprep.subr.mxu1 %v3601_v5  ;;  %v3834_v5 = vld [vmem:[#allocation15 + $0x2f0] sm:$0xff] }
 0xbdb   :  { %3671 = vmatpush1.msra.mxu1 %v3600_v6  ;;  %v3829_v6 = vld [vmem:[#allocation15 + $0x2c8] sm:$0xff] }
 0xbdc   :  { %3672 = vmatprep.subr.mxu1 %v3597_v7  ;;  %v3831_v7 = vld [vmem:[#allocation15 + $0x2d8] sm:$0xff] }
 0xbdd   :  { %3673 = vmatpush1.msra.mxu1 %v3596_v9  ;;  %v3830_v9 = vld [vmem:[#allocation15 + $0x2d0] sm:$0xff] }
 0xbde   :  { %3674 = vmatprep.subr.mxu1 %v3593_v11  ;;  %v3827_v11 = vld [vmem:[#allocation15 + $0x2b8] sm:$0xff] }
 0xbdf   :  { %3675 = vmatpush1.msra.mxu1 %v3592_v13  ;;  %v3826_v13 = vld [vmem:[#allocation15 + $0x2b0] sm:$0xff] }
 0xbe0   :  { %3676 = vmatprep.subr.mxu1 %v3589_v15  ;;  %v3823_v15 = vld [vmem:[#allocation15 + $0x298] sm:$0xff] }
 0xbe1   :  { %3677 = vmatpush1.msra.mxu1 %v3588_v50  ;;  %v3822_v50 = vld [vmem:[#allocation15 + $0x290] sm:$0xff] }
 0xbe2   :  { %3678 = vmatprep.subr.mxu1 %v3585_v18  ;;  %v3819_v18 = vld [vmem:[#allocation15 + $0x278] sm:$0xff] }
 0xbe3   :  { %3679 = vmatpush1.msra.mxu1 %v3584_v20  ;;  %v3818_v20 = vld [vmem:[#allocation15 + $0x270] sm:$0xff] }
 0xbe4   :  { %3868 = vmatprep.subr.mxu1 %v3865_v21  ;;  %v3815_v21 = vld [vmem:[#allocation15 + $0x258] sm:$0xff] }
 0xc84   :  { %v7494_v23 = vpop.f32.mrf.mxu1 }
 0xc85   :  { %v3567_v27 = vadd.f32 %v7494_v23, %v8183_v38  ;;  %v3857_v38 = vld [vmem:[#allocation15 + $0x3a8] sm:$0xff]  ;;  %v3814_v23 = vld [vmem:[#allocation15 + $0x250] sm:$0xff] }
 0xc86   :  { %v3557_v24 = vpop.f32.mrf.mxu1 }
 0xc87   :  { %v3566_v25 = vadd.f32 %v3557_v24, %v8186_v42  ;;  %v3581_v35 = vadd.f32 %v3578_v32, %v3567_v27  ;;  %v3809_v24 = vld [vmem:[#allocation15 + $0x228] sm:$0xff]  ;;  %v3810_v27 = vld [vmem:[#allocation15 + $0x230] sm:$0xff] }
 0xc88   :  { %v3806_v32 = vld [vmem:[#allocation15 + $0x210] sm:$0xff] }
 0xc89   :  { %v3580_v28 = vadd.f32 %v3573_v26, %v3566_v25  ;;  %v8196_v42 = vmax.f32 %v3581_v35, 0.0  ;;  %v3811_v25 = vld [vmem:[#allocation15 + $0x238] sm:$0xff]  ;;  %v3808_v26 = vld [vmem:[#allocation15 + $0x220] sm:$0xff] }
 0xc8b   :  { %v8192_v29 = vmax.f32 %v3580_v28, 0.0  ;;  %v3805_v28 = vld [vmem:[#allocation15 + $0x208] sm:$0xff] }
 0xc8d   :  { %3713 = vmatmul.mubr.f32.vlgmr.msra.gmra.mxu1 %v8192_v29  ;;  %3790 = vmatmul.mubr.f32.vlgmr.msra.gmra.mxu0 %v8192_v29 }
 0xc8e   :  { %3869 = vmatpush1.msra.mxu1 %v3864_v30  ;;  %3946 = vmatpush1.msra.mxu0 %v3866_v31  ;;  %v3807_v30 = vld [vmem:[#allocation15 + $0x218] sm:$0xff]  ;;  %v3804_v31 = vld [vmem:[#allocation15 + $0x200] sm:$0xff] }
 0xc8f   :  { %3870 = vmatprep.subr.mxu1 %v3861_v33  ;;  %3947 = vmatprep.subr.mxu0 %v3863_v34 }
 0xc90   :  { %3871 = vmatpush1.msra.mxu1 %v3860_v36  ;;  %3948 = vmatpush1.msra.mxu0 %v3862_v37 }
 0xc91   :  { %3718 = vmatprep.mubr.f32.mxu1 %v7867_v0  ;;  %3795 = vmatprep.mubr.f32.mxu0 %v7867_v0 }
 0xc92   :  { %3872 = vmatprep.subr.mxu1 %v3857_v38  ;;  %3949 = vmatprep.subr.mxu0 %v3859_v39 }
 0xc93   :  { %3719 = vmatmul.mubr.f32.gmra.mxu1 %v8196_v42  ;;  %3796 = vmatmul.mubr.f32.gmra.mxu0 %v8196_v42 }
 0xc94   :  { %3873 = vmatpush1.msra.mxu1 %v3856_v40  ;;  %3950 = vmatpush1.msra.mxu0 %v3858_v43 }
 0xc95   :  { %3874 = vmatprep.subr.mxu1 %v3853_v44  ;;  %3951 = vmatprep.subr.mxu0 %v3855_v41 }
 0xc96   :  { %3875 = vmatpush1.msra.mxu1 %v3852_v45  ;;  %3952 = vmatpush1.msra.mxu0 %v3854_v46 }
 0xc97   :  { %3876 = vmatprep.subr.mxu1 %v3849_v47  ;;  %3953 = vmatprep.subr.mxu0 %v3851_v48 }
 0xc98   :  { %3877 = vmatpush1.msra.mxu1 %v3848_v49  ;;  %3954 = vmatpush1.msra.mxu0 %v3850_v52  ;;  %v4023_v52 = vld [vmem:[#allocation23 + $0x4] sm:$0x7] }
 0xc99   :  { %3878 = vmatprep.subr.mxu1 %v3845_v53  ;;  %3955 = vmatprep.subr.mxu0 %v3847_v54  ;;  %v3802_v53 = vld [vmem:[#allocation23] sm:$0x7]  ;;  %v4376_v54 = vld [vmem:[#allocation15 + $0x5e8] sm:$0xff] }
 0xc9a   :  { %3879 = vmatpush1.msra.mxu1 %v3844_v55  ;;  %3956 = vmatpush1.msra.mxu0 %v3846_v56  ;;  %v4378_v55 = vld [vmem:[#allocation15 + $0x5f8] sm:$0xff]  ;;  %v4375_v56 = vld [vmem:[#allocation15 + $0x5e0] sm:$0xff] }
 0xc9b   :  { %3880 = vmatprep.subr.mxu1 %v3841_v57  ;;  %3957 = vmatprep.subr.mxu0 %v3843_v58  ;;  %v4377_v57 = vld [vmem:[#allocation15 + $0x5f0] sm:$0xff]  ;;  %v4372_v58 = vld [vmem:[#allocation15 + $0x5c8] sm:$0xff] }
 0xc9c   :  { %3881 = vmatpush1.msra.mxu1 %v3840_v59  ;;  %3958 = vmatpush1.msra.mxu0 %v3842_v60  ;;  %v4374_v59 = vld [vmem:[#allocation15 + $0x5d8] sm:$0xff]  ;;  %v4371_v60 = vld [vmem:[#allocation15 + $0x5c0] sm:$0xff] }
 0xc9d   :  { %3882 = vmatprep.subr.mxu1 %v3837_v61  ;;  %3959 = vmatprep.subr.mxu0 %v3839_v62  ;;  %v4373_v61 = vld [vmem:[#allocation15 + $0x5d0] sm:$0xff]  ;;  %v4368_v62 = vld [vmem:[#allocation15 + $0x5a8] sm:$0xff] }
 0xc9e   :  { %3883 = vmatpush1.msra.mxu1 %v3836_v63  ;;  %3960 = vmatpush1.msra.mxu0 %v3838_v1  ;;  %v4370_v63 = vld [vmem:[#allocation15 + $0x5b8] sm:$0xff]  ;;  %v4367_v1 = vld [vmem:[#allocation15 + $0x5a0] sm:$0xff] }
 0xc9f   :  { %3884 = vmatprep.subr.mxu1 %v3833_v2  ;;  %3961 = vmatprep.subr.mxu0 %v3835_v3  ;;  %v4369_v2 = vld [vmem:[#allocation15 + $0x5b0] sm:$0xff]  ;;  %v4364_v3 = vld [vmem:[#allocation15 + $0x588] sm:$0xff] }
 0xca0   :  { %3885 = vmatpush1.msra.mxu1 %v3832_v4  ;;  %3962 = vmatpush1.msra.mxu0 %v3834_v5  ;;  %v4366_v4 = vld [vmem:[#allocation15 + $0x598] sm:$0xff]  ;;  %v4363_v5 = vld [vmem:[#allocation15 + $0x580] sm:$0xff] }
 0xca1   :  { %3886 = vmatprep.subr.mxu1 %v3829_v6  ;;  %3963 = vmatprep.subr.mxu0 %v3831_v7  ;;  %v4365_v6 = vld [vmem:[#allocation15 + $0x590] sm:$0xff]  ;;  %v4360_v7 = vld [vmem:[#allocation15 + $0x568] sm:$0xff] }
 0xca2   :  { %3887 = vmatpush1.msra.mxu1 %v3828_v8  ;;  %3964 = vmatpush1.msra.mxu0 %v3830_v9  ;;  %v4362_v8 = vld [vmem:[#allocation15 + $0x578] sm:$0xff]  ;;  %v4359_v9 = vld [vmem:[#allocation15 + $0x560] sm:$0xff] }
 0xca3   :  { %3888 = vmatprep.subr.mxu1 %v3825_v10  ;;  %3965 = vmatprep.subr.mxu0 %v3827_v11  ;;  %v4361_v10 = vld [vmem:[#allocation15 + $0x570] sm:$0xff]  ;;  %v4356_v11 = vld [vmem:[#allocation15 + $0x548] sm:$0xff] }
 0xca4   :  { %3889 = vmatpush1.msra.mxu1 %v3824_v12  ;;  %3966 = vmatpush1.msra.mxu0 %v3826_v13  ;;  %v4358_v12 = vld [vmem:[#allocation15 + $0x558] sm:$0xff]  ;;  %v4355_v13 = vld [vmem:[#allocation15 + $0x540] sm:$0xff] }
 0xca5   :  { %3890 = vmatprep.subr.mxu1 %v3821_v14  ;;  %3967 = vmatprep.subr.mxu0 %v3823_v15  ;;  %v4357_v14 = vld [vmem:[#allocation15 + $0x550] sm:$0xff]  ;;  %v4352_v15 = vld [vmem:[#allocation15 + $0x528] sm:$0xff] }
 0xca6   :  { %3891 = vmatpush1.msra.mxu1 %v3820_v16  ;;  %3968 = vmatpush1.msra.mxu0 %v3822_v50  ;;  %v4354_v16 = vld [vmem:[#allocation15 + $0x538] sm:$0xff]  ;;  %v4351_v50 = vld [vmem:[#allocation15 + $0x520] sm:$0xff] }
 0xca7   :  { %3892 = vmatprep.subr.mxu1 %v3817_v17  ;;  %3969 = vmatprep.subr.mxu0 %v3819_v18  ;;  %v4353_v17 = vld [vmem:[#allocation15 + $0x530] sm:$0xff]  ;;  %v4348_v18 = vld [vmem:[#allocation15 + $0x508] sm:$0xff] }
 0xca8   :  { %3893 = vmatpush1.msra.mxu1 %v3816_v19  ;;  %3970 = vmatpush1.msra.mxu0 %v3818_v20  ;;  %v4350_v19 = vld [vmem:[#allocation15 + $0x518] sm:$0xff]  ;;  %v4347_v20 = vld [vmem:[#allocation15 + $0x500] sm:$0xff] }
 0xca9   :  { %3894 = vmatprep.subr.mxu1 %v3813_v51  ;;  %3971 = vmatprep.subr.mxu0 %v3815_v21  ;;  %v4349_v51 = vld [vmem:[#allocation15 + $0x510] sm:$0xff]  ;;  %v4344_v21 = vld [vmem:[#allocation15 + $0x4e8] sm:$0xff] }
 0xcaa   :  { %3895 = vmatpush1.msra.mxu1 %v3812_v22  ;;  %3972 = vmatpush1.msra.mxu0 %v3814_v23  ;;  %v4346_v22 = vld [vmem:[#allocation15 + $0x4f8] sm:$0xff]  ;;  %v4343_v23 = vld [vmem:[#allocation15 + $0x4e0] sm:$0xff] }
 0xcab   :  { %3896 = vmatprep.subr.mxu1 %v3809_v24  ;;  %3973 = vmatprep.subr.mxu0 %v3811_v25  ;;  %v4345_v24 = vld [vmem:[#allocation15 + $0x4f0] sm:$0xff]  ;;  %v4340_v25 = vld [vmem:[#allocation15 + $0x4c8] sm:$0xff] }
 0xcac   :  { %3897 = vmatpush1.msra.mxu1 %v3808_v26  ;;  %3974 = vmatpush1.msra.mxu0 %v3810_v27  ;;  %v4342_v26 = vld [vmem:[#allocation15 + $0x4d8] sm:$0xff]  ;;  %v4339_v27 = vld [vmem:[#allocation15 + $0x4c0] sm:$0xff] }
 0xcad   :  { %3898 = vmatprep.subr.mxu1 %v3805_v28  ;;  %3975 = vmatprep.subr.mxu0 %v3807_v30  ;;  %v4341_v28 = vld [vmem:[#allocation15 + $0x4d0] sm:$0xff]  ;;  %v4336_v30 = vld [vmem:[#allocation15 + $0x4a8] sm:$0xff] }
 0xcae   :  { %3899 = vmatpush1.msra.mxu1 %v3804_v31  ;;  %3932 = vmatprep.mubr.f32.mxu1 %v7867_v0  ;;  %v4338_v31 = vld [vmem:[#allocation15 + $0x4b8] sm:$0xff] }
 0xcaf   :  { %3976 = vmatpush1.msra.mxu0 %v3806_v32  ;;  %4009 = vmatprep.mubr.f32.mxu0 %v7867_v0  ;;  %v4335_v32 = vld [vmem:[#allocation15 + $0x4a0] sm:$0xff] }
 0xcb0   :  { %3933 = vmatmul.mubr.f32.vlgmr.msra.gmra.mxu1 %v8192_v29  ;;  %4010 = vmatmul.mubr.f32.vlgmr.msra.gmra.mxu0 %v8192_v29 }
 0xcb1   :  { %3938 = vmatprep.mubr.f32.mxu1 %v7867_v0  ;;  %4015 = vmatprep.mubr.f32.mxu0 %v7867_v0 }
 0xcb4   :  { %3939 = vmatmul.mubr.f32.gmra.mxu1 %v8196_v42  ;;  %4016 = vmatmul.mubr.f32.gmra.mxu0 %v8196_v42 }
 0xcb5   :  { %4091 = vmatprep.mubr.f32.mxu1 %v7867_v0  ;;  %4162 = vmatprep.mubr.f32.mxu0 %v7867_v0 }
 0xd4d   :  { %v3714_v33 = vpop.f32.mrf.mxu1  ;;  %v3791_v34 = vpop.f32.mrf.mxu0 }
 0xd4f   :  { %v3716_v35 = vpop.f32.mrf.mxu1  ;;  %v3793_v36 = vpop.f32.mrf.mxu0 }
 0xd53   :  { %v3720_v37 = vpop.f32.mrf.mxu1  ;;  %v3797_v38 = vpop.f32.mrf.mxu0 }
 0xd55   :  { %v3722_v39 = vpop.f32.mrf.mxu1  ;;  %v3799_v40 = vpop.f32.mrf.mxu0 }
 0xd70   :  { %v3934_v43 = vpop.f32.mrf.mxu1  ;;  %v4011_v44 = vpop.f32.mrf.mxu0 }
 0xd72   :  { %v3936_v41 = vpop.f32.mrf.mxu1  ;;  %v4013_v45 = vpop.f32.mrf.mxu0 }
 0xd74   :  { %v3940_v46 = vpop.f32.mrf.mxu1  ;;  %v4017_v47 = vpop.f32.mrf.mxu0 }
 0xd76   :  { %v3942_v48 = vpop.f32.mrf.mxu1  ;;  %v4019_v49 = vpop.f32.mrf.mxu0 }
 0xd77   :  { %4055 = vmatprep.subr.mxu1 %v3942_v48  ;;  %4126 = vmatprep.subr.mxu0 %v4019_v49  ;;  %v4322_v48 = vld [vmem:[#allocation15 + $0x438] sm:$0xff]  ;;  %v4319_v49 = vld [vmem:[#allocation15 + $0x420] sm:$0xff] }
 0xd78   :  { %4056 = vmatpush1.msra.mxu1 %v3940_v46  ;;  %4127 = vmatpush1.msra.mxu0 %v4017_v47  ;;  %v4325_v46 = vld [vmem:[#allocation15 + $0x450] sm:$0xff]  ;;  %v4320_v47 = vld [vmem:[#allocation15 + $0x428] sm:$0xff] }
 0xd79   :  { %4057 = vmatprep.subr.mxu1 %v3936_v41  ;;  %4128 = vmatprep.subr.mxu0 %v4013_v45  ;;  %v4326_v41 = vld [vmem:[#allocation15 + $0x458] sm:$0xff]  ;;  %v4323_v45 = vld [vmem:[#allocation15 + $0x440] sm:$0xff] }
 0xd7a   :  { %4058 = vmatpush1.msra.mxu1 %v3934_v43  ;;  %4129 = vmatpush1.msra.mxu0 %v4011_v44  ;;  %v4329_v43 = vld [vmem:[#allocation15 + $0x470] sm:$0xff]  ;;  %v4324_v44 = vld [vmem:[#allocation15 + $0x448] sm:$0xff] }
 0xd7b   :  { %7037 = vmatmul.mubr.msk.f32.vlgmr.msra.gmra.mxu1 %vm324_vm3, %v4023_v52  ;;  %7038 = vmatmul.mubr.msk.f32.vlgmr.msra.gmra.mxu0 %vm324_vm3, %v4023_v52  ;;  %v4321_v52 = vld [vmem:[#allocation15 + $0x430] sm:$0xff] }
 0xd7c   :  { %4200 = vmatprep.subr.mxu1 %v3722_v39  ;;  %4271 = vmatprep.subr.mxu0 %v3799_v40  ;;  %v4330_v39 = vld [vmem:[#allocation15 + $0x478] sm:$0xff]  ;;  %v4327_v40 = vld [vmem:[#allocation15 + $0x460] sm:$0xff] }
 0xd7d   :  { %4201 = vmatpush1.msra.mxu1 %v3720_v37  ;;  %4272 = vmatpush1.msra.mxu0 %v3797_v38  ;;  %v4333_v37 = vld [vmem:[#allocation15 + $0x490] sm:$0xff]  ;;  %v4328_v38 = vld [vmem:[#allocation15 + $0x468] sm:$0xff] }
 0xd7e   :  { %4202 = vmatprep.subr.mxu1 %v3716_v35  ;;  %4273 = vmatprep.subr.mxu0 %v3793_v36  ;;  %v4334_v35 = vld [vmem:[#allocation15 + $0x498] sm:$0xff]  ;;  %v4331_v36 = vld [vmem:[#allocation15 + $0x480] sm:$0xff] }
 0xd7f   :  { %4203 = vmatpush1.msra.mxu1 %v3714_v33  ;;  %4236 = vmatprep.mubr.f32.mxu1 %v7867_v0  ;;  %v4337_v33 = vld [vmem:[#allocation15 + $0x4b0] sm:$0xff] }
 0xd80   :  { %4274 = vmatpush1.msra.mxu0 %v3791_v34  ;;  %4307 = vmatprep.mubr.f32.mxu0 %v7867_v0  ;;  %v4332_v34 = vld [vmem:[#allocation15 + $0x488] sm:$0xff] }
 0xd81   :  { %7039 = vmatmul.mubr.msk.f32.vlgmr.msra.gmra.mxu1 %vm324_vm3, %v3802_v53  ;;  %7040 = vmatmul.mubr.msk.f32.vlgmr.msra.gmra.mxu0 %vm324_vm3, %v3802_v53  ;;  %v4316_v53 = vld [vmem:[#allocation15 + $0x408] sm:$0xff] }
 0xd82   :  { %4379 = vmatprep.subr.mxu1 %v4376_v54  ;;  %4456 = vmatprep.subr.mxu0 %v4378_v55  ;;  %v4318_v54 = vld [vmem:[#allocation15 + $0x418] sm:$0xff]  ;;  %v4315_v55 = vld [vmem:[#allocation15 + $0x400] sm:$0xff] }
 0xd83   :  { %4380 = vmatpush1.msra.mxu1 %v4375_v56  ;;  %4457 = vmatpush1.msra.mxu0 %v4377_v57  ;;  %v4317_v56 = vld [vmem:[#allocation15 + $0x410] sm:$0xff] }
 0xd84   :  { %4381 = vmatprep.subr.mxu1 %v4372_v58  ;;  %4458 = vmatprep.subr.mxu0 %v4374_v59 }
 0xd85   :  { %4382 = vmatpush1.msra.mxu1 %v4371_v60  ;;  %4459 = vmatpush1.msra.mxu0 %v4373_v61 }
 0xd86   :  { %4383 = vmatprep.subr.mxu1 %v4368_v62  ;;  %4460 = vmatprep.subr.mxu0 %v4370_v63 }
 0xd87   :  { %4384 = vmatpush1.msra.mxu1 %v4367_v1  ;;  %4461 = vmatpush1.msra.mxu0 %v4369_v2 }
 0xd88   :  { %4385 = vmatprep.subr.mxu1 %v4364_v3  ;;  %4462 = vmatprep.subr.mxu0 %v4366_v4 }
 0xd89   :  { %4386 = vmatpush1.msra.mxu1 %v4363_v5  ;;  %4463 = vmatpush1.msra.mxu0 %v4365_v6 }
 0xd8a   :  { %4387 = vmatprep.subr.mxu1 %v4360_v7  ;;  %4464 = vmatprep.subr.mxu0 %v4362_v8 }
 0xd8b   :  { %4388 = vmatpush1.msra.mxu1 %v4359_v9  ;;  %4465 = vmatpush1.msra.mxu0 %v4361_v10 }
 0xd8c   :  { %4389 = vmatprep.subr.mxu1 %v4356_v11  ;;  %4466 = vmatprep.subr.mxu0 %v4358_v12 }
 0xd8d   :  { %4390 = vmatpush1.msra.mxu1 %v4355_v13  ;;  %4467 = vmatpush1.msra.mxu0 %v4357_v14  ;;  %v4534_v14 = vld [vmem:[#allocation23 + $0x8] sm:$0x7] }
 0xd8e   :  { %4391 = vmatprep.subr.mxu1 %v4352_v15  ;;  %4468 = vmatprep.subr.mxu0 %v4354_v16  ;;  %v4746_v15 = vld [vmem:[#allocation15 + $0x7e8] sm:$0xff]  ;;  %v4748_v16 = vld [vmem:[#allocation15 + $0x7f8] sm:$0xff] }
 0xd8f   :  { %4392 = vmatpush1.msra.mxu1 %v4351_v50  ;;  %4469 = vmatpush1.msra.mxu0 %v4353_v17  ;;  %v4745_v50 = vld [vmem:[#allocation15 + $0x7e0] sm:$0xff]  ;;  %v4747_v17 = vld [vmem:[#allocation15 + $0x7f0] sm:$0xff] }
 0xd90   :  { %4393 = vmatprep.subr.mxu1 %v4348_v18  ;;  %4470 = vmatprep.subr.mxu0 %v4350_v19  ;;  %v4742_v18 = vld [vmem:[#allocation15 + $0x7c8] sm:$0xff]  ;;  %v4744_v19 = vld [vmem:[#allocation15 + $0x7d8] sm:$0xff] }
 0xd91   :  { %4394 = vmatpush1.msra.mxu1 %v4347_v20  ;;  %4471 = vmatpush1.msra.mxu0 %v4349_v51  ;;  %v4741_v20 = vld [vmem:[#allocation15 + $0x7c0] sm:$0xff]  ;;  %v4743_v51 = vld [vmem:[#allocation15 + $0x7d0] sm:$0xff] }
 0xd92   :  { %4395 = vmatprep.subr.mxu1 %v4344_v21  ;;  %4472 = vmatprep.subr.mxu0 %v4346_v22  ;;  %v4738_v21 = vld [vmem:[#allocation15 + $0x7a8] sm:$0xff]  ;;  %v4740_v22 = vld [vmem:[#allocation15 + $0x7b8] sm:$0xff] }
 0xd93   :  { %4396 = vmatpush1.msra.mxu1 %v4343_v23  ;;  %4473 = vmatpush1.msra.mxu0 %v4345_v24  ;;  %v4737_v23 = vld [vmem:[#allocation15 + $0x7a0] sm:$0xff]  ;;  %v4739_v24 = vld [vmem:[#allocation15 + $0x7b0] sm:$0xff] }
 0xd94   :  { %4397 = vmatprep.subr.mxu1 %v4340_v25  ;;  %4474 = vmatprep.subr.mxu0 %v4342_v26  ;;  %v4734_v25 = vld [vmem:[#allocation15 + $0x788] sm:$0xff]  ;;  %v4736_v26 = vld [vmem:[#allocation15 + $0x798] sm:$0xff] }
 0xd95   :  { %4398 = vmatpush1.msra.mxu1 %v4339_v27  ;;  %4475 = vmatpush1.msra.mxu0 %v4341_v28  ;;  %v4733_v27 = vld [vmem:[#allocation15 + $0x780] sm:$0xff]  ;;  %v4735_v28 = vld [vmem:[#allocation15 + $0x790] sm:$0xff] }
 0xd96   :  { %4399 = vmatprep.subr.mxu1 %v4336_v30  ;;  %4476 = vmatprep.subr.mxu0 %v4338_v31  ;;  %v4730_v30 = vld [vmem:[#allocation15 + $0x768] sm:$0xff]  ;;  %v4732_v31 = vld [vmem:[#allocation15 + $0x778] sm:$0xff] }
 0xd97   :  { %4400 = vmatpush1.msra.mxu1 %v4335_v32  ;;  %4477 = vmatpush1.msra.mxu0 %v4337_v33  ;;  %v4729_v32 = vld [vmem:[#allocation15 + $0x760] sm:$0xff]  ;;  %v4731_v33 = vld [vmem:[#allocation15 + $0x770] sm:$0xff] }
 0xd98   :  { %4401 = vmatprep.subr.mxu1 %v4332_v34  ;;  %4478 = vmatprep.subr.mxu0 %v4334_v35  ;;  %v4726_v34 = vld [vmem:[#allocation15 + $0x748] sm:$0xff]  ;;  %v4728_v35 = vld [vmem:[#allocation15 + $0x758] sm:$0xff] }
 0xd99   :  { %4402 = vmatpush1.msra.mxu1 %v4331_v36  ;;  %4479 = vmatpush1.msra.mxu0 %v4333_v37  ;;  %v4725_v36 = vld [vmem:[#allocation15 + $0x740] sm:$0xff]  ;;  %v4727_v37 = vld [vmem:[#allocation15 + $0x750] sm:$0xff] }
 0xd9a   :  { %4403 = vmatprep.subr.mxu1 %v4328_v38  ;;  %4480 = vmatprep.subr.mxu0 %v4330_v39  ;;  %v4722_v38 = vld [vmem:[#allocation15 + $0x728] sm:$0xff]  ;;  %v4724_v39 = vld [vmem:[#allocation15 + $0x738] sm:$0xff] }
 0xd9b   :  { %4404 = vmatpush1.msra.mxu1 %v4327_v40  ;;  %4481 = vmatpush1.msra.mxu0 %v4329_v43  ;;  %v4721_v40 = vld [vmem:[#allocation15 + $0x720] sm:$0xff]  ;;  %v4723_v43 = vld [vmem:[#allocation15 + $0x730] sm:$0xff] }
 0xd9c   :  { %4405 = vmatprep.subr.mxu1 %v4324_v44  ;;  %4482 = vmatprep.subr.mxu0 %v4326_v41  ;;  %v4718_v44 = vld [vmem:[#allocation15 + $0x708] sm:$0xff]  ;;  %v4720_v41 = vld [vmem:[#allocation15 + $0x718] sm:$0xff] }
 0xd9d   :  { %4406 = vmatpush1.msra.mxu1 %v4323_v45  ;;  %4483 = vmatpush1.msra.mxu0 %v4325_v46  ;;  %v4717_v45 = vld [vmem:[#allocation15 + $0x700] sm:$0xff]  ;;  %v4719_v46 = vld [vmem:[#allocation15 + $0x710] sm:$0xff] }
 0xd9e   :  { %4407 = vmatprep.subr.mxu1 %v4320_v47  ;;  %4484 = vmatprep.subr.mxu0 %v4322_v48  ;;  %v4714_v47 = vld [vmem:[#allocation15 + $0x6e8] sm:$0xff]  ;;  %v4716_v48 = vld [vmem:[#allocation15 + $0x6f8] sm:$0xff] }
 0xd9f   :  { %4408 = vmatpush1.msra.mxu1 %v4319_v49  ;;  %4485 = vmatpush1.msra.mxu0 %v4321_v52  ;;  %v4713_v49 = vld [vmem:[#allocation15 + $0x6e0] sm:$0xff]  ;;  %v4715_v52 = vld [vmem:[#allocation15 + $0x6f0] sm:$0xff] }
 0xda0   :  { %4409 = vmatprep.subr.mxu1 %v4316_v53  ;;  %4486 = vmatprep.subr.mxu0 %v4318_v54  ;;  %v4710_v53 = vld [vmem:[#allocation15 + $0x6c8] sm:$0xff]  ;;  %v4712_v54 = vld [vmem:[#allocation15 + $0x6d8] sm:$0xff] }
 0xda1   :  { %4410 = vmatpush1.msra.mxu1 %v4315_v55  ;;  %4443 = vmatprep.mubr.f32.mxu1 %v7867_v0  ;;  %v4709_v55 = vld [vmem:[#allocation15 + $0x6c0] sm:$0xff] }
 0xda2   :  { %4487 = vmatpush1.msra.mxu0 %v4317_v56  ;;  %4520 = vmatprep.mubr.f32.mxu0 %v7867_v0  ;;  %v4711_v56 = vld [vmem:[#allocation15 + $0x6d0] sm:$0xff] }
 0xda3   :  { %4444 = vmatmul.mubr.f32.vlgmr.msra.gmra.mxu1 %v8192_v29  ;;  %4521 = vmatmul.mubr.f32.vlgmr.msra.gmra.mxu0 %v8192_v29 }
 0xda4   :  { %4449 = vmatprep.mubr.f32.mxu1 %v7867_v0  ;;  %4526 = vmatprep.mubr.f32.mxu0 %v7867_v0 }
 0xda7   :  { %4450 = vmatmul.mubr.f32.gmra.mxu1 %v8196_v42  ;;  %4527 = vmatmul.mubr.f32.gmra.mxu0 %v8196_v42 }
 0xda8   :  { %4602 = vmatprep.mubr.f32.mxu1 %v7867_v0  ;;  %4673 = vmatprep.mubr.f32.mxu0 %v7867_v0 }
 0xe3b   :  { %v4093_v57 = vpop.f32.mrf.mxu1  ;;  %v4164_v58 = vpop.f32.mrf.mxu0 }
 0xe3d   :  { %v4095_v59 = vpop.f32.mrf.mxu1  ;;  %v4166_v60 = vpop.f32.mrf.mxu0 }
 0xe41   :  { %v4238_v61 = vpop.f32.mrf.mxu1  ;;  %v4309_v62 = vpop.f32.mrf.mxu0 }
 0xe42   :  { %v8228_v63 = vadd.f32 %v4238_v61, %v4093_v57  ;;  %v8230_v1 = vadd.f32 %v4309_v62, %v4164_v58  ;;  %v4706_v57 = vld [vmem:[#allocation15 + $0x6a8] sm:$0xff]  ;;  %v4708_v58 = vld [vmem:[#allocation15 + $0x6b8] sm:$0xff] }
 0xe43   :  { %v4240_v2 = vpop.f32.mrf.mxu1  ;;  %v4311_v3 = vpop.f32.mrf.mxu0  ;;  %v4702_v61 = vld [vmem:[#allocation15 + $0x688] sm:$0xff]  ;;  %v4704_v62 = vld [vmem:[#allocation15 + $0x698] sm:$0xff] }
 0xe44   :  { %v8232_v4 = vadd.f32 %v4240_v2, %v4095_v59  ;;  %v8234_v5 = vadd.f32 %v4311_v3, %v4166_v60  ;;  %v4705_v59 = vld [vmem:[#allocation15 + $0x6a0] sm:$0xff]  ;;  %v4707_v60 = vld [vmem:[#allocation15 + $0x6b0] sm:$0xff] }
 0xe45   :  { %v4701_v2 = vld [vmem:[#allocation15 + $0x680] sm:$0xff]  ;;  %v4703_v3 = vld [vmem:[#allocation15 + $0x690] sm:$0xff] }
 0xe63   :  { %v4445_v6 = vpop.f32.mrf.mxu1  ;;  %v4522_v7 = vpop.f32.mrf.mxu0 }
 0xe65   :  { %v4447_v8 = vpop.f32.mrf.mxu1  ;;  %v4524_v9 = vpop.f32.mrf.mxu0 }
 0xe67   :  { %v4451_v10 = vpop.f32.mrf.mxu1  ;;  %v4528_v11 = vpop.f32.mrf.mxu0 }
 0xe69   :  { %v4453_v12 = vpop.f32.mrf.mxu1  ;;  %v4530_v13 = vpop.f32.mrf.mxu0 }
 0xe6a   :  { %4566 = vmatprep.subr.mxu1 %v4453_v12  ;;  %4637 = vmatprep.subr.mxu0 %v4530_v13  ;;  %v4693_v12 = vld [vmem:[#allocation15 + $0x640] sm:$0xff]  ;;  %v4695_v13 = vld [vmem:[#allocation15 + $0x650] sm:$0xff] }
 0xe6b   :  { %4567 = vmatpush1.msra.mxu1 %v4451_v10  ;;  %4638 = vmatpush1.msra.mxu0 %v4528_v11  ;;  %v4694_v10 = vld [vmem:[#allocation15 + $0x648] sm:$0xff]  ;;  %v4696_v11 = vld [vmem:[#allocation15 + $0x658] sm:$0xff] }
 0xe6c   :  { %4568 = vmatprep.subr.mxu1 %v4447_v8  ;;  %4639 = vmatprep.subr.mxu0 %v4524_v9  ;;  %v4697_v8 = vld [vmem:[#allocation15 + $0x660] sm:$0xff]  ;;  %v4699_v9 = vld [vmem:[#allocation15 + $0x670] sm:$0xff] }
 0xe6d   :  { %4569 = vmatpush1.msra.mxu1 %v4445_v6  ;;  %4640 = vmatpush1.msra.mxu0 %v4522_v7  ;;  %v4698_v6 = vld [vmem:[#allocation15 + $0x668] sm:$0xff]  ;;  %v4700_v7 = vld [vmem:[#allocation15 + $0x678] sm:$0xff] }
 0xe6e   :  { %7041 = vmatmul.mubr.msk.f32.vlgmr.msra.gmra.mxu1 %vm324_vm3, %v4534_v14  ;;  %7042 = vmatmul.mubr.msk.f32.vlgmr.msra.gmra.mxu0 %vm324_vm3, %v4534_v14  ;;  %v4690_v14 = vld [vmem:[#allocation15 + $0x628] sm:$0xff] }
 0xe6f   :  { %4749 = vmatprep.subr.mxu1 %v4746_v15  ;;  %4826 = vmatprep.subr.mxu0 %v4748_v16  ;;  %v4692_v15 = vld [vmem:[#allocation15 + $0x638] sm:$0xff]  ;;  %v4689_v16 = vld [vmem:[#allocation15 + $0x620] sm:$0xff] }
 0xe70   :  { %4750 = vmatpush1.msra.mxu1 %v4745_v50  ;;  %4827 = vmatpush1.msra.mxu0 %v4747_v17  ;;  %v4691_v50 = vld [vmem:[#allocation15 + $0x630] sm:$0xff]  ;;  %v4686_v17 = vld [vmem:[#allocation15 + $0x608] sm:$0xff] }
 0xe71   :  { %4751 = vmatprep.subr.mxu1 %v4742_v18  ;;  %4828 = vmatprep.subr.mxu0 %v4744_v19  ;;  %v4688_v18 = vld [vmem:[#allocation15 + $0x618] sm:$0xff]  ;;  %v4685_v19 = vld [vmem:[#allocation15 + $0x600] sm:$0xff] }
 0xe72   :  { %4752 = vmatpush1.msra.mxu1 %v4741_v20  ;;  %4829 = vmatpush1.msra.mxu0 %v4743_v51  ;;  %v4687_v20 = vld [vmem:[#allocation15 + $0x610] sm:$0xff] }
 0xe73   :  { %4753 = vmatprep.subr.mxu1 %v4738_v21  ;;  %4830 = vmatprep.subr.mxu0 %v4740_v22 }
 0xe74   :  { %4754 = vmatpush1.msra.mxu1 %v4737_v23  ;;  %4831 = vmatpush1.msra.mxu0 %v4739_v24 }
 0xe75   :  { %4755 = vmatprep.subr.mxu1 %v4734_v25  ;;  %4832 = vmatprep.subr.mxu0 %v4736_v26 }
 0xe76   :  { %4756 = vmatpush1.msra.mxu1 %v4733_v27  ;;  %4833 = vmatpush1.msra.mxu0 %v4735_v28 }
 0xe77   :  { %4757 = vmatprep.subr.mxu1 %v4730_v30  ;;  %4834 = vmatprep.subr.mxu0 %v4732_v31 }
 0xe78   :  { %4758 = vmatpush1.msra.mxu1 %v4729_v32  ;;  %4835 = vmatpush1.msra.mxu0 %v4731_v33 }
 0xe79   :  { %4759 = vmatprep.subr.mxu1 %v4726_v34  ;;  %4836 = vmatprep.subr.mxu0 %v4728_v35 }
 0xe7a   :  { %4760 = vmatpush1.msra.mxu1 %v4725_v36  ;;  %4837 = vmatpush1.msra.mxu0 %v4727_v37  ;;  %v5118_v36 = vld [vmem:[#allocation15 + $0x9f8] sm:$0xff]  ;;  %v5117_v37 = vld [vmem:[#allocation15 + $0x9f0] sm:$0xff] }
 0xe7b   :  { %4761 = vmatprep.subr.mxu1 %v4722_v38  ;;  %4838 = vmatprep.subr.mxu0 %v4724_v39  ;;  %v5112_v38 = vld [vmem:[#allocation15 + $0x9c8] sm:$0xff]  ;;  %v5114_v39 = vld [vmem:[#allocation15 + $0x9d8] sm:$0xff] }
 0xe7c   :  { %4762 = vmatpush1.msra.mxu1 %v4721_v40  ;;  %4839 = vmatpush1.msra.mxu0 %v4723_v43  ;;  %v5111_v40 = vld [vmem:[#allocation15 + $0x9c0] sm:$0xff]  ;;  %v5113_v43 = vld [vmem:[#allocation15 + $0x9d0] sm:$0xff] }
 0xe7d   :  { %4763 = vmatprep.subr.mxu1 %v4718_v44  ;;  %4840 = vmatprep.subr.mxu0 %v4720_v41  ;;  %v5108_v44 = vld [vmem:[#allocation15 + $0x9a8] sm:$0xff]  ;;  %v5110_v41 = vld [vmem:[#allocation15 + $0x9b8] sm:$0xff] }
 0xe7e   :  { %4764 = vmatpush1.msra.mxu1 %v4717_v45  ;;  %4841 = vmatpush1.msra.mxu0 %v4719_v46  ;;  %v5107_v45 = vld [vmem:[#allocation15 + $0x9a0] sm:$0xff]  ;;  %v5109_v46 = vld [vmem:[#allocation15 + $0x9b0] sm:$0xff] }
 0xe7f   :  { %4765 = vmatprep.subr.mxu1 %v4714_v47  ;;  %4842 = vmatprep.subr.mxu0 %v4716_v48  ;;  %v5104_v47 = vld [vmem:[#allocation15 + $0x988] sm:$0xff]  ;;  %v5106_v48 = vld [vmem:[#allocation15 + $0x998] sm:$0xff] }
 0xe80   :  { %4766 = vmatpush1.msra.mxu1 %v4713_v49  ;;  %4843 = vmatpush1.msra.mxu0 %v4715_v52  ;;  %v5103_v49 = vld [vmem:[#allocation15 + $0x980] sm:$0xff]  ;;  %v5105_v52 = vld [vmem:[#allocation15 + $0x990] sm:$0xff] }
 0xe81   :  { %4767 = vmatprep.subr.mxu1 %v4710_v53  ;;  %4844 = vmatprep.subr.mxu0 %v4712_v54  ;;  %v5100_v53 = vld [vmem:[#allocation15 + $0x968] sm:$0xff]  ;;  %v5102_v54 = vld [vmem:[#allocation15 + $0x978] sm:$0xff] }
 0xe82   :  { %4768 = vmatpush1.msra.mxu1 %v4709_v55  ;;  %4845 = vmatpush1.msra.mxu0 %v4711_v56  ;;  %v5099_v55 = vld [vmem:[#allocation15 + $0x960] sm:$0xff]  ;;  %v5101_v56 = vld [vmem:[#allocation15 + $0x970] sm:$0xff] }
 0xe83   :  { %4769 = vmatprep.subr.mxu1 %v4706_v57  ;;  %4846 = vmatprep.subr.mxu0 %v4708_v58  ;;  %v5096_v57 = vld [vmem:[#allocation15 + $0x948] sm:$0xff]  ;;  %v5098_v58 = vld [vmem:[#allocation15 + $0x958] sm:$0xff] }
 0xe84   :  { %4770 = vmatpush1.msra.mxu1 %v4705_v59  ;;  %4847 = vmatpush1.msra.mxu0 %v4707_v60  ;;  %v5095_v59 = vld [vmem:[#allocation15 + $0x940] sm:$0xff]  ;;  %v5097_v60 = vld [vmem:[#allocation15 + $0x950] sm:$0xff] }
 0xe85   :  { %4771 = vmatprep.subr.mxu1 %v4702_v61  ;;  %4848 = vmatprep.subr.mxu0 %v4704_v62  ;;  %v5092_v61 = vld [vmem:[#allocation15 + $0x928] sm:$0xff]  ;;  %v5094_v62 = vld [vmem:[#allocation15 + $0x938] sm:$0xff] }
 0xe86   :  { %4772 = vmatpush1.msra.mxu1 %v4701_v2  ;;  %4849 = vmatpush1.msra.mxu0 %v4703_v3  ;;  %v5091_v2 = vld [vmem:[#allocation15 + $0x920] sm:$0xff]  ;;  %v5093_v3 = vld [vmem:[#allocation15 + $0x930] sm:$0xff] }
 0xe87   :  { %4773 = vmatprep.subr.mxu1 %v4698_v6  ;;  %4850 = vmatprep.subr.mxu0 %v4700_v7  ;;  %v5088_v6 = vld [vmem:[#allocation15 + $0x908] sm:$0xff]  ;;  %v5090_v7 = vld [vmem:[#allocation15 + $0x918] sm:$0xff] }
 0xe88   :  { %4774 = vmatpush1.msra.mxu1 %v4697_v8  ;;  %4851 = vmatpush1.msra.mxu0 %v4699_v9  ;;  %v5087_v8 = vld [vmem:[#allocation15 + $0x900] sm:$0xff]  ;;  %v5089_v9 = vld [vmem:[#allocation15 + $0x910] sm:$0xff] }
 0xe89   :  { %4775 = vmatprep.subr.mxu1 %v4694_v10  ;;  %4852 = vmatprep.subr.mxu0 %v4696_v11  ;;  %v5084_v10 = vld [vmem:[#allocation15 + $0x8e8] sm:$0xff]  ;;  %v5086_v11 = vld [vmem:[#allocation15 + $0x8f8] sm:$0xff] }
 0xe8a   :  { %4776 = vmatpush1.msra.mxu1 %v4693_v12  ;;  %4853 = vmatpush1.msra.mxu0 %v4695_v13  ;;  %v5083_v12 = vld [vmem:[#allocation15 + $0x8e0] sm:$0xff]  ;;  %v5085_v13 = vld [vmem:[#allocation15 + $0x8f0] sm:$0xff] }
 0xe8b   :  { %4777 = vmatprep.subr.mxu1 %v4690_v14  ;;  %4854 = vmatprep.subr.mxu0 %v4692_v15  ;;  %v5080_v14 = vld [vmem:[#allocation15 + $0x8c8] sm:$0xff]  ;;  %v5082_v15 = vld [vmem:[#allocation15 + $0x8d8] sm:$0xff] }
 0xe8c   :  { %4778 = vmatpush1.msra.mxu1 %v4689_v16  ;;  %4855 = vmatpush1.msra.mxu0 %v4691_v50  ;;  %v5079_v16 = vld [vmem:[#allocation15 + $0x8c0] sm:$0xff]  ;;  %v5081_v50 = vld [vmem:[#allocation15 + $0x8d0] sm:$0xff] }
 0xe8d   :  { %4779 = vmatprep.subr.mxu1 %v4686_v17  ;;  %4856 = vmatprep.subr.mxu0 %v4688_v18  ;;  %v5076_v17 = vld [vmem:[#allocation15 + $0x8a8] sm:$0xff]  ;;  %v5078_v18 = vld [vmem:[#allocation15 + $0x8b8] sm:$0xff] }
 0xe8e   :  { %4780 = vmatpush1.msra.mxu1 %v4685_v19  ;;  %4813 = vmatprep.mubr.f32.mxu1 %v7867_v0  ;;  %v5075_v19 = vld [vmem:[#allocation15 + $0x8a0] sm:$0xff] }
 0xe8f   :  { %4857 = vmatpush1.msra.mxu0 %v4687_v20  ;;  %4890 = vmatprep.mubr.f32.mxu0 %v7867_v0  ;;  %v5077_v20 = vld [vmem:[#allocation15 + $0x8b0] sm:$0xff] }
 0xe90   :  { %4814 = vmatmul.mubr.f32.vlgmr.msra.gmra.mxu1 %v8192_v29  ;;  %4891 = vmatmul.mubr.f32.vlgmr.msra.gmra.mxu0 %v8192_v29 }
 0xe91   :  { %4819 = vmatprep.mubr.f32.mxu1 %v7867_v0  ;;  %4896 = vmatprep.mubr.f32.mxu0 %v7867_v0 }
 0xe94   :  { %4820 = vmatmul.mubr.f32.gmra.mxu1 %v8196_v42  ;;  %4897 = vmatmul.mubr.f32.gmra.mxu0 %v8196_v42 }
 0xe95   :  { %4972 = vmatprep.mubr.f32.mxu1 %v7867_v0  ;;  %5043 = vmatprep.mubr.f32.mxu0 %v7867_v0 }
 0xf2e   :  { %v4604_v51 = vpop.f32.mrf.mxu1  ;;  %v4675_v21 = vpop.f32.mrf.mxu0 }
 0xf2f   :  { %v8249_v22 = vadd.f32 %v4604_v51, %v8228_v63  ;;  %v8252_v23 = vadd.f32 %v4675_v21, %v8230_v1  ;;  %v4904_v1 = vld [vmem:[#allocation23 + $0xc] sm:$0x7]  ;;  %v5074_v21 = vld [vmem:[#allocation15 + $0x898] sm:$0xff] }
 0xf30   :  { %v4606_v24 = vpop.f32.mrf.mxu1  ;;  %v4677_v25 = vpop.f32.mrf.mxu0  ;;  %v5072_v51 = vld [vmem:[#allocation15 + $0x888] sm:$0xff] }
 0xf31   :  { %v8255_v26 = vadd.f32 %v4606_v24, %v8232_v4  ;;  %v8258_v27 = vadd.f32 %v4677_v25, %v8234_v5  ;;  %v5116_v4 = vld [vmem:[#allocation15 + $0x9e8] sm:$0xff]  ;;  %v5115_v5 = vld [vmem:[#allocation15 + $0x9e0] sm:$0xff]  ;;  %v5073_v25 = vld [vmem:[#allocation15 + $0x890] sm:$0xff] }
 0xf32   :  { %v5071_v24 = vld [vmem:[#allocation15 + $0x880] sm:$0xff] }
 0xf50   :  { %v4815_v28 = vpop.f32.mrf.mxu1  ;;  %v4892_v30 = vpop.f32.mrf.mxu0 }
 0xf52   :  { %v4817_v31 = vpop.f32.mrf.mxu1  ;;  %v4894_v32 = vpop.f32.mrf.mxu0 }
 0xf54   :  { %v4821_v33 = vpop.f32.mrf.mxu1  ;;  %v4898_v34 = vpop.f32.mrf.mxu0 }
 0xf56   :  { %v4823_v35 = vpop.f32.mrf.mxu1  ;;  %v4900_v63 = vpop.f32.mrf.mxu0 }
 0xf57   :  { %4936 = vmatprep.subr.mxu1 %v4823_v35  ;;  %5007 = vmatprep.subr.mxu0 %v4900_v63  ;;  %v5063_v35 = vld [vmem:[#allocation15 + $0x840] sm:$0xff]  ;;  %v5065_v63 = vld [vmem:[#allocation15 + $0x850] sm:$0xff] }
 0xf58   :  { %4937 = vmatpush1.msra.mxu1 %v4821_v33  ;;  %5008 = vmatpush1.msra.mxu0 %v4898_v34  ;;  %v5064_v33 = vld [vmem:[#allocation15 + $0x848] sm:$0xff]  ;;  %v5066_v34 = vld [vmem:[#allocation15 + $0x858] sm:$0xff] }
 0xf59   :  { %4938 = vmatprep.subr.mxu1 %v4817_v31  ;;  %5009 = vmatprep.subr.mxu0 %v4894_v32  ;;  %v5067_v31 = vld [vmem:[#allocation15 + $0x860] sm:$0xff]  ;;  %v5069_v32 = vld [vmem:[#allocation15 + $0x870] sm:$0xff] }
 0xf5a   :  { %4939 = vmatpush1.msra.mxu1 %v4815_v28  ;;  %5010 = vmatpush1.msra.mxu0 %v4892_v30  ;;  %v5068_v28 = vld [vmem:[#allocation15 + $0x868] sm:$0xff]  ;;  %v5070_v30 = vld [vmem:[#allocation15 + $0x878] sm:$0xff] }
 0xf5b   :  { %7043 = vmatmul.mubr.msk.f32.vlgmr.msra.gmra.mxu1 %vm324_vm3, %v4904_v1  ;;  %7044 = vmatmul.mubr.msk.f32.vlgmr.msra.gmra.mxu0 %vm324_vm3, %v4904_v1  ;;  %v5060_v1 = vld [vmem:[#allocation15 + $0x828] sm:$0xff] }
 0xf5c   :  { %5119 = vmatprep.subr.mxu1 %v5116_v4  ;;  %5196 = vmatprep.subr.mxu0 %v5118_v36  ;;  %v5062_v4 = vld [vmem:[#allocation15 + $0x838] sm:$0xff]  ;;  %v5059_v36 = vld [vmem:[#allocation15 + $0x820] sm:$0xff] }
 0xf5d   :  { %5120 = vmatpush1.msra.mxu1 %v5115_v5  ;;  %5197 = vmatpush1.msra.mxu0 %v5117_v37  ;;  %v5061_v5 = vld [vmem:[#allocation15 + $0x830] sm:$0xff]  ;;  %v5056_v37 = vld [vmem:[#allocation15 + $0x808] sm:$0xff] }
 0xf5e   :  { %5121 = vmatprep.subr.mxu1 %v5112_v38  ;;  %5198 = vmatprep.subr.mxu0 %v5114_v39  ;;  %v5058_v38 = vld [vmem:[#allocation15 + $0x818] sm:$0xff]  ;;  %v5055_v39 = vld [vmem:[#allocation15 + $0x800] sm:$0xff] }
 0xf5f   :  { %5122 = vmatpush1.msra.mxu1 %v5111_v40  ;;  %5199 = vmatpush1.msra.mxu0 %v5113_v43  ;;  %v5057_v40 = vld [vmem:[#allocation15 + $0x810] sm:$0xff] }
 0xf60   :  { %5123 = vmatprep.subr.mxu1 %v5108_v44  ;;  %5200 = vmatprep.subr.mxu0 %v5110_v41 }
 0xf61   :  { %5124 = vmatpush1.msra.mxu1 %v5107_v45  ;;  %5201 = vmatpush1.msra.mxu0 %v5109_v46 }
 0xf62   :  { %5125 = vmatprep.subr.mxu1 %v5104_v47  ;;  %5202 = vmatprep.subr.mxu0 %v5106_v48 }
 0xf63   :  { %5126 = vmatpush1.msra.mxu1 %v5103_v49  ;;  %5203 = vmatpush1.msra.mxu0 %v5105_v52 }
 0xf64   :  { %5127 = vmatprep.subr.mxu1 %v5100_v53  ;;  %5204 = vmatprep.subr.mxu0 %v5102_v54 }
 0xf65   :  { %5128 = vmatpush1.msra.mxu1 %v5099_v55  ;;  %5205 = vmatpush1.msra.mxu0 %v5101_v56 }
 0xf66   :  { %5129 = vmatprep.subr.mxu1 %v5096_v57  ;;  %5206 = vmatprep.subr.mxu0 %v5098_v58 }
 0xf67   :  { %5130 = vmatpush1.msra.mxu1 %v5095_v59  ;;  %5207 = vmatpush1.msra.mxu0 %v5097_v60  ;;  %v5488_v59 = vld [vmem:[#allocation15 + $0xbf8] sm:$0xff]  ;;  %v5487_v60 = vld [vmem:[#allocation15 + $0xbf0] sm:$0xff] }
 0xf68   :  { %5131 = vmatprep.subr.mxu1 %v5092_v61  ;;  %5208 = vmatprep.subr.mxu0 %v5094_v62  ;;  %v5482_v61 = vld [vmem:[#allocation15 + $0xbc8] sm:$0xff]  ;;  %v5484_v62 = vld [vmem:[#allocation15 + $0xbd8] sm:$0xff] }
 0xf69   :  { %5132 = vmatpush1.msra.mxu1 %v5091_v2  ;;  %5209 = vmatpush1.msra.mxu0 %v5093_v3  ;;  %v5481_v2 = vld [vmem:[#allocation15 + $0xbc0] sm:$0xff]  ;;  %v5483_v3 = vld [vmem:[#allocation15 + $0xbd0] sm:$0xff] }
 0xf6a   :  { %5133 = vmatprep.subr.mxu1 %v5088_v6  ;;  %5210 = vmatprep.subr.mxu0 %v5090_v7  ;;  %v5478_v6 = vld [vmem:[#allocation15 + $0xba8] sm:$0xff]  ;;  %v5480_v7 = vld [vmem:[#allocation15 + $0xbb8] sm:$0xff] }
 0xf6b   :  { %5134 = vmatpush1.msra.mxu1 %v5087_v8  ;;  %5211 = vmatpush1.msra.mxu0 %v5089_v9  ;;  %v5477_v8 = vld [vmem:[#allocation15 + $0xba0] sm:$0xff]  ;;  %v5479_v9 = vld [vmem:[#allocation15 + $0xbb0] sm:$0xff] }
 0xf6c   :  { %5135 = vmatprep.subr.mxu1 %v5084_v10  ;;  %5212 = vmatprep.subr.mxu0 %v5086_v11  ;;  %v5474_v10 = vld [vmem:[#allocation15 + $0xb88] sm:$0xff]  ;;  %v5476_v11 = vld [vmem:[#allocation15 + $0xb98] sm:$0xff] }
 0xf6d   :  { %5136 = vmatpush1.msra.mxu1 %v5083_v12  ;;  %5213 = vmatpush1.msra.mxu0 %v5085_v13  ;;  %v5473_v12 = vld [vmem:[#allocation15 + $0xb80] sm:$0xff]  ;;  %v5475_v13 = vld [vmem:[#allocation15 + $0xb90] sm:$0xff] }
 0xf6e   :  { %5137 = vmatprep.subr.mxu1 %v5080_v14  ;;  %5214 = vmatprep.subr.mxu0 %v5082_v15  ;;  %v5470_v14 = vld [vmem:[#allocation15 + $0xb68] sm:$0xff]  ;;  %v5472_v15 = vld [vmem:[#allocation15 + $0xb78] sm:$0xff] }
 0xf6f   :  { %5138 = vmatpush1.msra.mxu1 %v5079_v16  ;;  %5215 = vmatpush1.msra.mxu0 %v5081_v50  ;;  %v5469_v16 = vld [vmem:[#allocation15 + $0xb60] sm:$0xff]  ;;  %v5471_v50 = vld [vmem:[#allocation15 + $0xb70] sm:$0xff] }
 0xf70   :  { %5139 = vmatprep.subr.mxu1 %v5076_v17  ;;  %5216 = vmatprep.subr.mxu0 %v5078_v18  ;;  %v5466_v17 = vld [vmem:[#allocation15 + $0xb48] sm:$0xff]  ;;  %v5468_v18 = vld [vmem:[#allocation15 + $0xb58] sm:$0xff] }
 0xf71   :  { %5140 = vmatpush1.msra.mxu1 %v5075_v19  ;;  %5217 = vmatpush1.msra.mxu0 %v5077_v20  ;;  %v5465_v19 = vld [vmem:[#allocation15 + $0xb40] sm:$0xff]  ;;  %v5467_v20 = vld [vmem:[#allocation15 + $0xb50] sm:$0xff] }
 0xf72   :  { %5141 = vmatprep.subr.mxu1 %v5072_v51  ;;  %5218 = vmatprep.subr.mxu0 %v5074_v21  ;;  %v5462_v51 = vld [vmem:[#allocation15 + $0xb28] sm:$0xff]  ;;  %v5464_v21 = vld [vmem:[#allocation15 + $0xb38] sm:$0xff] }
 0xf73   :  { %5142 = vmatpush1.msra.mxu1 %v5071_v24  ;;  %5219 = vmatpush1.msra.mxu0 %v5073_v25  ;;  %v5461_v24 = vld [vmem:[#allocation15 + $0xb20] sm:$0xff]  ;;  %v5463_v25 = vld [vmem:[#allocation15 + $0xb30] sm:$0xff] }
 0xf74   :  { %5143 = vmatprep.subr.mxu1 %v5068_v28  ;;  %5220 = vmatprep.subr.mxu0 %v5070_v30  ;;  %v5458_v28 = vld [vmem:[#allocation15 + $0xb08] sm:$0xff]  ;;  %v5460_v30 = vld [vmem:[#allocation15 + $0xb18] sm:$0xff] }
 0xf75   :  { %5144 = vmatpush1.msra.mxu1 %v5067_v31  ;;  %5221 = vmatpush1.msra.mxu0 %v5069_v32  ;;  %v5457_v31 = vld [vmem:[#allocation15 + $0xb00] sm:$0xff]  ;;  %v5459_v32 = vld [vmem:[#allocation15 + $0xb10] sm:$0xff] }
 0xf76   :  { %5145 = vmatprep.subr.mxu1 %v5064_v33  ;;  %5222 = vmatprep.subr.mxu0 %v5066_v34  ;;  %v5454_v33 = vld [vmem:[#allocation15 + $0xae8] sm:$0xff]  ;;  %v5456_v34 = vld [vmem:[#allocation15 + $0xaf8] sm:$0xff] }
 0xf77   :  { %5146 = vmatpush1.msra.mxu1 %v5063_v35  ;;  %5223 = vmatpush1.msra.mxu0 %v5065_v63  ;;  %v5453_v35 = vld [vmem:[#allocation15 + $0xae0] sm:$0xff]  ;;  %v5455_v63 = vld [vmem:[#allocation15 + $0xaf0] sm:$0xff] }
 0xf78   :  { %5147 = vmatprep.subr.mxu1 %v5060_v1  ;;  %5224 = vmatprep.subr.mxu0 %v5062_v4  ;;  %v5450_v1 = vld [vmem:[#allocation15 + $0xac8] sm:$0xff]  ;;  %v5452_v4 = vld [vmem:[#allocation15 + $0xad8] sm:$0xff] }
 0xf79   :  { %5148 = vmatpush1.msra.mxu1 %v5059_v36  ;;  %5225 = vmatpush1.msra.mxu0 %v5061_v5  ;;  %v5449_v36 = vld [vmem:[#allocation15 + $0xac0] sm:$0xff]  ;;  %v5451_v5 = vld [vmem:[#allocation15 + $0xad0] sm:$0xff] }
 0xf7a   :  { %5149 = vmatprep.subr.mxu1 %v5056_v37  ;;  %5226 = vmatprep.subr.mxu0 %v5058_v38  ;;  %v5446_v37 = vld [vmem:[#allocation15 + $0xaa8] sm:$0xff]  ;;  %v5448_v38 = vld [vmem:[#allocation15 + $0xab8] sm:$0xff] }
 0xf7b   :  { %5150 = vmatpush1.msra.mxu1 %v5055_v39  ;;  %5183 = vmatprep.mubr.f32.mxu1 %v7867_v0  ;;  %v5445_v39 = vld [vmem:[#allocation15 + $0xaa0] sm:$0xff] }
 0xf7c   :  { %5227 = vmatpush1.msra.mxu0 %v5057_v40  ;;  %5260 = vmatprep.mubr.f32.mxu0 %v7867_v0  ;;  %v5447_v40 = vld [vmem:[#allocation15 + $0xab0] sm:$0xff] }
 0xf7d   :  { %5184 = vmatmul.mubr.f32.vlgmr.msra.gmra.mxu1 %v8192_v29  ;;  %5261 = vmatmul.mubr.f32.vlgmr.msra.gmra.mxu0 %v8192_v29 }
 0xf7e   :  { %5189 = vmatprep.mubr.f32.mxu1 %v7867_v0  ;;  %5266 = vmatprep.mubr.f32.mxu0 %v7867_v0 }
 0xf81   :  { %5190 = vmatmul.mubr.f32.gmra.mxu1 %v8196_v42  ;;  %5267 = vmatmul.mubr.f32.gmra.mxu0 %v8196_v42 }
 0xf82   :  { %5342 = vmatprep.mubr.f32.mxu1 %v7867_v0  ;;  %5413 = vmatprep.mubr.f32.mxu0 %v7867_v0 }
0x101b   :  { %v4974_v43 = vpop.f32.mrf.mxu1  ;;  %v5045_v44 = vpop.f32.mrf.mxu0 }
0x101c   :  { %v8273_v41 = vadd.f32 %v4974_v43, %v8249_v22  ;;  %v8276_v45 = vadd.f32 %v5045_v44, %v8252_v23  ;;  %v5274_v23 = vld [vmem:[#allocation23 + $0x10] sm:$0x7]  ;;  %v5442_v43 = vld [vmem:[#allocation15 + $0xa88] sm:$0xff]  ;;  %v5444_v44 = vld [vmem:[#allocation15 + $0xa98] sm:$0xff] }
0x101d   :  { %v4976_v46 = vpop.f32.mrf.mxu1  ;;  %v5047_v47 = vpop.f32.mrf.mxu0 }
0x101e   :  { %v8279_v48 = vadd.f32 %v4976_v46, %v8255_v26  ;;  %v8282_v49 = vadd.f32 %v5047_v47, %v8258_v27  ;;  %v5486_v26 = vld [vmem:[#allocation15 + $0xbe8] sm:$0xff]  ;;  %v5485_v27 = vld [vmem:[#allocation15 + $0xbe0] sm:$0xff]  ;;  %v5443_v47 = vld [vmem:[#allocation15 + $0xa90] sm:$0xff] }
0x101f   :  { %v5441_v46 = vld [vmem:[#allocation15 + $0xa80] sm:$0xff] }
0x103d   :  { %v5185_v52 = vpop.f32.mrf.mxu1  ;;  %v5262_v53 = vpop.f32.mrf.mxu0 }
0x103f   :  { %v5187_v54 = vpop.f32.mrf.mxu1  ;;  %v5264_v55 = vpop.f32.mrf.mxu0 }
0x1041   :  { %v5191_v56 = vpop.f32.mrf.mxu1  ;;  %v5268_v57 = vpop.f32.mrf.mxu0 }
0x1043   :  { %v5193_v58 = vpop.f32.mrf.mxu1  ;;  %v5270_v22 = vpop.f32.mrf.mxu0 }
0x1044   :  { %5306 = vmatprep.subr.mxu1 %v5193_v58  ;;  %5377 = vmatprep.subr.mxu0 %v5270_v22  ;;  %v5433_v58 = vld [vmem:[#allocation15 + $0xa40] sm:$0xff]  ;;  %v5435_v22 = vld [vmem:[#allocation15 + $0xa50] sm:$0xff] }
0x1045   :  { %5307 = vmatpush1.msra.mxu1 %v5191_v56  ;;  %5378 = vmatpush1.msra.mxu0 %v5268_v57  ;;  %v5434_v56 = vld [vmem:[#allocation15 + $0xa48] sm:$0xff]  ;;  %v5436_v57 = vld [vmem:[#allocation15 + $0xa58] sm:$0xff] }
0x1046   :  { %5308 = vmatprep.subr.mxu1 %v5187_v54  ;;  %5379 = vmatprep.subr.mxu0 %v5264_v55  ;;  %v5437_v54 = vld [vmem:[#allocation15 + $0xa60] sm:$0xff]  ;;  %v5439_v55 = vld [vmem:[#allocation15 + $0xa70] sm:$0xff] }
0x1047   :  { %5309 = vmatpush1.msra.mxu1 %v5185_v52  ;;  %5380 = vmatpush1.msra.mxu0 %v5262_v53  ;;  %v5438_v52 = vld [vmem:[#allocation15 + $0xa68] sm:$0xff]  ;;  %v5440_v53 = vld [vmem:[#allocation15 + $0xa78] sm:$0xff] }
0x1048   :  { %7045 = vmatmul.mubr.msk.f32.vlgmr.msra.gmra.mxu1 %vm324_vm3, %v5274_v23  ;;  %7046 = vmatmul.mubr.msk.f32.vlgmr.msra.gmra.mxu0 %vm324_vm3, %v5274_v23  ;;  %v5430_v23 = vld [vmem:[#allocation15 + $0xa28] sm:$0xff] }
0x1049   :  { %5489 = vmatprep.subr.mxu1 %v5486_v26  ;;  %5566 = vmatprep.subr.mxu0 %v5488_v59  ;;  %v5432_v26 = vld [vmem:[#allocation15 + $0xa38] sm:$0xff]  ;;  %v5429_v59 = vld [vmem:[#allocation15 + $0xa20] sm:$0xff] }
0x104a   :  { %5490 = vmatpush1.msra.mxu1 %v5485_v27  ;;  %5567 = vmatpush1.msra.mxu0 %v5487_v60  ;;  %v5431_v27 = vld [vmem:[#allocation15 + $0xa30] sm:$0xff]  ;;  %v5426_v60 = vld [vmem:[#allocation15 + $0xa08] sm:$0xff] }
0x104b   :  { %5491 = vmatprep.subr.mxu1 %v5482_v61  ;;  %5568 = vmatprep.subr.mxu0 %v5484_v62  ;;  %v5428_v61 = vld [vmem:[#allocation15 + $0xa18] sm:$0xff]  ;;  %v5425_v62 = vld [vmem:[#allocation15 + $0xa00] sm:$0xff] }
0x104c   :  { %5492 = vmatpush1.msra.mxu1 %v5481_v2  ;;  %5569 = vmatpush1.msra.mxu0 %v5483_v3  ;;  %v5427_v2 = vld [vmem:[#allocation15 + $0xa10] sm:$0xff] }
0x104d   :  { %5493 = vmatprep.subr.mxu1 %v5478_v6  ;;  %5570 = vmatprep.subr.mxu0 %v5480_v7 }
0x104e   :  { %5494 = vmatpush1.msra.mxu1 %v5477_v8  ;;  %5571 = vmatpush1.msra.mxu0 %v5479_v9 }
0x104f   :  { %5495 = vmatprep.subr.mxu1 %v5474_v10  ;;  %5572 = vmatprep.subr.mxu0 %v5476_v11 }
0x1050   :  { %5496 = vmatpush1.msra.mxu1 %v5473_v12  ;;  %5573 = vmatpush1.msra.mxu0 %v5475_v13 }
0x1051   :  { %5497 = vmatprep.subr.mxu1 %v5470_v14  ;;  %5574 = vmatprep.subr.mxu0 %v5472_v15 }
0x1052   :  { %5498 = vmatpush1.msra.mxu1 %v5469_v16  ;;  %5575 = vmatpush1.msra.mxu0 %v5471_v50 }
0x1053   :  { %5499 = vmatprep.subr.mxu1 %v5466_v17  ;;  %5576 = vmatprep.subr.mxu0 %v5468_v18 }
0x1054   :  { %5500 = vmatpush1.msra.mxu1 %v5465_v19  ;;  %5577 = vmatpush1.msra.mxu0 %v5467_v20  ;;  %v5858_v19 = vld [vmem:[#allocation15 + $0xdf8] sm:$0xff]  ;;  %v5857_v20 = vld [vmem:[#allocation15 + $0xdf0] sm:$0xff] }
0x1055   :  { %5501 = vmatprep.subr.mxu1 %v5462_v51  ;;  %5578 = vmatprep.subr.mxu0 %v5464_v21  ;;  %v5852_v51 = vld [vmem:[#allocation15 + $0xdc8] sm:$0xff]  ;;  %v5854_v21 = vld [vmem:[#allocation15 + $0xdd8] sm:$0xff] }
0x1056   :  { %5502 = vmatpush1.msra.mxu1 %v5461_v24  ;;  %5579 = vmatpush1.msra.mxu0 %v5463_v25  ;;  %v5851_v24 = vld [vmem:[#allocation15 + $0xdc0] sm:$0xff]  ;;  %v5853_v25 = vld [vmem:[#allocation15 + $0xdd0] sm:$0xff] }
0x1057   :  { %5503 = vmatprep.subr.mxu1 %v5458_v28  ;;  %5580 = vmatprep.subr.mxu0 %v5460_v30  ;;  %v5848_v28 = vld [vmem:[#allocation15 + $0xda8] sm:$0xff]  ;;  %v5850_v30 = vld [vmem:[#allocation15 + $0xdb8] sm:$0xff] }
0x1058   :  { %5504 = vmatpush1.msra.mxu1 %v5457_v31  ;;  %5581 = vmatpush1.msra.mxu0 %v5459_v32  ;;  %v5847_v31 = vld [vmem:[#allocation15 + $0xda0] sm:$0xff]  ;;  %v5849_v32 = vld [vmem:[#allocation15 + $0xdb0] sm:$0xff] }
0x1059   :  { %5505 = vmatprep.subr.mxu1 %v5454_v33  ;;  %5582 = vmatprep.subr.mxu0 %v5456_v34  ;;  %v5844_v33 = vld [vmem:[#allocation15 + $0xd88] sm:$0xff]  ;;  %v5846_v34 = vld [vmem:[#allocation15 + $0xd98] sm:$0xff] }
0x105a   :  { %5506 = vmatpush1.msra.mxu1 %v5453_v35  ;;  %5583 = vmatpush1.msra.mxu0 %v5455_v63  ;;  %v5843_v35 = vld [vmem:[#allocation15 + $0xd80] sm:$0xff]  ;;  %v5845_v63 = vld [vmem:[#allocation15 + $0xd90] sm:$0xff] }
0x105b   :  { %5507 = vmatprep.subr.mxu1 %v5450_v1  ;;  %5584 = vmatprep.subr.mxu0 %v5452_v4  ;;  %v5840_v1 = vld [vmem:[#allocation15 + $0xd68] sm:$0xff]  ;;  %v5842_v4 = vld [vmem:[#allocation15 + $0xd78] sm:$0xff] }
0x105c   :  { %5508 = vmatpush1.msra.mxu1 %v5449_v36  ;;  %5585 = vmatpush1.msra.mxu0 %v5451_v5  ;;  %v5839_v36 = vld [vmem:[#allocation15 + $0xd60] sm:$0xff]  ;;  %v5841_v5 = vld [vmem:[#allocation15 + $0xd70] sm:$0xff] }
0x105d   :  { %5509 = vmatprep.subr.mxu1 %v5446_v37  ;;  %5586 = vmatprep.subr.mxu0 %v5448_v38  ;;  %v5836_v37 = vld [vmem:[#allocation15 + $0xd48] sm:$0xff]  ;;  %v5838_v38 = vld [vmem:[#allocation15 + $0xd58] sm:$0xff] }
0x105e   :  { %5510 = vmatpush1.msra.mxu1 %v5445_v39  ;;  %5587 = vmatpush1.msra.mxu0 %v5447_v40  ;;  %v5835_v39 = vld [vmem:[#allocation15 + $0xd40] sm:$0xff]  ;;  %v5837_v40 = vld [vmem:[#allocation15 + $0xd50] sm:$0xff] }
0x105f   :  { %5511 = vmatprep.subr.mxu1 %v5442_v43  ;;  %5588 = vmatprep.subr.mxu0 %v5444_v44  ;;  %v5832_v43 = vld [vmem:[#allocation15 + $0xd28] sm:$0xff]  ;;  %v5834_v44 = vld [vmem:[#allocation15 + $0xd38] sm:$0xff] }
0x1060   :  { %5512 = vmatpush1.msra.mxu1 %v5441_v46  ;;  %5589 = vmatpush1.msra.mxu0 %v5443_v47  ;;  %v5831_v46 = vld [vmem:[#allocation15 + $0xd20] sm:$0xff]  ;;  %v5833_v47 = vld [vmem:[#allocation15 + $0xd30] sm:$0xff] }
0x1061   :  { %5513 = vmatprep.subr.mxu1 %v5438_v52  ;;  %5590 = vmatprep.subr.mxu0 %v5440_v53  ;;  %v5828_v52 = vld [vmem:[#allocation15 + $0xd08] sm:$0xff]  ;;  %v5830_v53 = vld [vmem:[#allocation15 + $0xd18] sm:$0xff] }
0x1062   :  { %5514 = vmatpush1.msra.mxu1 %v5437_v54  ;;  %5591 = vmatpush1.msra.mxu0 %v5439_v55  ;;  %v5827_v54 = vld [vmem:[#allocation15 + $0xd00] sm:$0xff]  ;;  %v5829_v55 = vld [vmem:[#allocation15 + $0xd10] sm:$0xff] }
0x1063   :  { %5515 = vmatprep.subr.mxu1 %v5434_v56  ;;  %5592 = vmatprep.subr.mxu0 %v5436_v57  ;;  %v5824_v56 = vld [vmem:[#allocation15 + $0xce8] sm:$0xff]  ;;  %v5826_v57 = vld [vmem:[#allocation15 + $0xcf8] sm:$0xff] }
0x1064   :  { %5516 = vmatpush1.msra.mxu1 %v5433_v58  ;;  %5593 = vmatpush1.msra.mxu0 %v5435_v22  ;;  %v5823_v58 = vld [vmem:[#allocation15 + $0xce0] sm:$0xff]  ;;  %v5825_v22 = vld [vmem:[#allocation15 + $0xcf0] sm:$0xff] }
0x1065   :  { %5517 = vmatprep.subr.mxu1 %v5430_v23  ;;  %5594 = vmatprep.subr.mxu0 %v5432_v26  ;;  %v5820_v23 = vld [vmem:[#allocation15 + $0xcc8] sm:$0xff]  ;;  %v5822_v26 = vld [vmem:[#allocation15 + $0xcd8] sm:$0xff] }
0x1066   :  { %5518 = vmatpush1.msra.mxu1 %v5429_v59  ;;  %5595 = vmatpush1.msra.mxu0 %v5431_v27  ;;  %v5819_v59 = vld [vmem:[#allocation15 + $0xcc0] sm:$0xff]  ;;  %v5821_v27 = vld [vmem:[#allocation15 + $0xcd0] sm:$0xff] }
0x1067   :  { %5519 = vmatprep.subr.mxu1 %v5426_v60  ;;  %5596 = vmatprep.subr.mxu0 %v5428_v61  ;;  %v5816_v60 = vld [vmem:[#allocation15 + $0xca8] sm:$0xff]  ;;  %v5818_v61 = vld [vmem:[#allocation15 + $0xcb8] sm:$0xff] }
0x1068   :  { %5520 = vmatpush1.msra.mxu1 %v5425_v62  ;;  %5553 = vmatprep.mubr.f32.mxu1 %v7867_v0  ;;  %v5815_v62 = vld [vmem:[#allocation15 + $0xca0] sm:$0xff] }
0x1069   :  { %5597 = vmatpush1.msra.mxu0 %v5427_v2  ;;  %5630 = vmatprep.mubr.f32.mxu0 %v7867_v0  ;;  %v5817_v2 = vld [vmem:[#allocation15 + $0xcb0] sm:$0xff] }
0x106a   :  { %5554 = vmatmul.mubr.f32.vlgmr.msra.gmra.mxu1 %v8192_v29  ;;  %5631 = vmatmul.mubr.f32.vlgmr.msra.gmra.mxu0 %v8192_v29 }
0x106b   :  { %5559 = vmatprep.mubr.f32.mxu1 %v7867_v0  ;;  %5636 = vmatprep.mubr.f32.mxu0 %v7867_v0 }
0x106e   :  { %5560 = vmatmul.mubr.f32.gmra.mxu1 %v8196_v42  ;;  %5637 = vmatmul.mubr.f32.gmra.mxu0 %v8196_v42 }
0x106f   :  { %5712 = vmatprep.mubr.f32.mxu1 %v7867_v0  ;;  %5783 = vmatprep.mubr.f32.mxu0 %v7867_v0 }
0x1108   :  { %v5344_v3 = vpop.f32.mrf.mxu1  ;;  %v5415_v6 = vpop.f32.mrf.mxu0 }
0x1109   :  { %v8297_v7 = vadd.f32 %v5344_v3, %v8273_v41  ;;  %v8300_v8 = vadd.f32 %v5415_v6, %v8276_v45  ;;  %v5644_v45 = vld [vmem:[#allocation23 + $0x14] sm:$0x7]  ;;  %v5812_v3 = vld [vmem:[#allocation15 + $0xc88] sm:$0xff]  ;;  %v5814_v6 = vld [vmem:[#allocation15 + $0xc98] sm:$0xff] }
0x110a   :  { %v5346_v9 = vpop.f32.mrf.mxu1  ;;  %v5417_v10 = vpop.f32.mrf.mxu0 }
0x110b   :  { %v8303_v11 = vadd.f32 %v5346_v9, %v8279_v48  ;;  %v8306_v12 = vadd.f32 %v5417_v10, %v8282_v49  ;;  %v5856_v48 = vld [vmem:[#allocation15 + $0xde8] sm:$0xff]  ;;  %v5855_v49 = vld [vmem:[#allocation15 + $0xde0] sm:$0xff]  ;;  %v5813_v10 = vld [vmem:[#allocation15 + $0xc90] sm:$0xff] }
0x110c   :  { %v5811_v9 = vld [vmem:[#allocation15 + $0xc80] sm:$0xff] }
0x112a   :  { %v5555_v13 = vpop.f32.mrf.mxu1  ;;  %v5632_v14 = vpop.f32.mrf.mxu0 }
0x112c   :  { %v5557_v15 = vpop.f32.mrf.mxu1  ;;  %v5634_v16 = vpop.f32.mrf.mxu0 }
0x112e   :  { %v5561_v50 = vpop.f32.mrf.mxu1  ;;  %v5638_v17 = vpop.f32.mrf.mxu0 }
0x1130   :  { %v5563_v18 = vpop.f32.mrf.mxu1  ;;  %v5640_v41 = vpop.f32.mrf.mxu0 }
0x1131   :  { %5676 = vmatprep.subr.mxu1 %v5563_v18  ;;  %5747 = vmatprep.subr.mxu0 %v5640_v41  ;;  %v5803_v18 = vld [vmem:[#allocation15 + $0xc40] sm:$0xff]  ;;  %v5805_v41 = vld [vmem:[#allocation15 + $0xc50] sm:$0xff] }
0x1132   :  { %5677 = vmatpush1.msra.mxu1 %v5561_v50  ;;  %5748 = vmatpush1.msra.mxu0 %v5638_v17  ;;  %v5804_v50 = vld [vmem:[#allocation15 + $0xc48] sm:$0xff]  ;;  %v5806_v17 = vld [vmem:[#allocation15 + $0xc58] sm:$0xff] }
0x1133   :  { %5678 = vmatprep.subr.mxu1 %v5557_v15  ;;  %5749 = vmatprep.subr.mxu0 %v5634_v16  ;;  %v5807_v15 = vld [vmem:[#allocation15 + $0xc60] sm:$0xff]  ;;  %v5809_v16 = vld [vmem:[#allocation15 + $0xc70] sm:$0xff] }
0x1134   :  { %5679 = vmatpush1.msra.mxu1 %v5555_v13  ;;  %5750 = vmatpush1.msra.mxu0 %v5632_v14  ;;  %v5808_v13 = vld [vmem:[#allocation15 + $0xc68] sm:$0xff]  ;;  %v5810_v14 = vld [vmem:[#allocation15 + $0xc78] sm:$0xff] }
0x1135   :  { %7047 = vmatmul.mubr.msk.f32.vlgmr.msra.gmra.mxu1 %vm324_vm3, %v5644_v45  ;;  %7048 = vmatmul.mubr.msk.f32.vlgmr.msra.gmra.mxu0 %vm324_vm3, %v5644_v45  ;;  %v5800_v45 = vld [vmem:[#allocation15 + $0xc28] sm:$0xff] }
0x1136   :  { %5859 = vmatprep.subr.mxu1 %v5856_v48  ;;  %5936 = vmatprep.subr.mxu0 %v5858_v19  ;;  %v5802_v48 = vld [vmem:[#allocation15 + $0xc38] sm:$0xff]  ;;  %v5799_v19 = vld [vmem:[#allocation15 + $0xc20] sm:$0xff] }
0x1137   :  { %5860 = vmatpush1.msra.mxu1 %v5855_v49  ;;  %5937 = vmatpush1.msra.mxu0 %v5857_v20  ;;  %v5801_v49 = vld [vmem:[#allocation15 + $0xc30] sm:$0xff]  ;;  %v5796_v20 = vld [vmem:[#allocation15 + $0xc08] sm:$0xff] }
0x1138   :  { %5861 = vmatprep.subr.mxu1 %v5852_v51  ;;  %5938 = vmatprep.subr.mxu0 %v5854_v21  ;;  %v5798_v51 = vld [vmem:[#allocation15 + $0xc18] sm:$0xff]  ;;  %v5795_v21 = vld [vmem:[#allocation15 + $0xc00] sm:$0xff] }
0x1139   :  { %5862 = vmatpush1.msra.mxu1 %v5851_v24  ;;  %5939 = vmatpush1.msra.mxu0 %v5853_v25  ;;  %v5797_v24 = vld [vmem:[#allocation15 + $0xc10] sm:$0xff] }
0x113a   :  { %5863 = vmatprep.subr.mxu1 %v5848_v28  ;;  %5940 = vmatprep.subr.mxu0 %v5850_v30 }
0x113b   :  { %5864 = vmatpush1.msra.mxu1 %v5847_v31  ;;  %5941 = vmatpush1.msra.mxu0 %v5849_v32 }
0x113c   :  { %5865 = vmatprep.subr.mxu1 %v5844_v33  ;;  %5942 = vmatprep.subr.mxu0 %v5846_v34 }
0x113d   :  { %5866 = vmatpush1.msra.mxu1 %v5843_v35  ;;  %5943 = vmatpush1.msra.mxu0 %v5845_v63 }
0x113e   :  { %5867 = vmatprep.subr.mxu1 %v5840_v1  ;;  %5944 = vmatprep.subr.mxu0 %v5842_v4 }
0x113f   :  { %5868 = vmatpush1.msra.mxu1 %v5839_v36  ;;  %5945 = vmatpush1.msra.mxu0 %v5841_v5 }
0x1140   :  { %5869 = vmatprep.subr.mxu1 %v5836_v37  ;;  %5946 = vmatprep.subr.mxu0 %v5838_v38 }
0x1141   :  { %5870 = vmatpush1.msra.mxu1 %v5835_v39  ;;  %5947 = vmatpush1.msra.mxu0 %v5837_v40  ;;  %v6228_v39 = vld [vmem:[#allocation15 + $0xff8] sm:$0xff]  ;;  %v6227_v40 = vld [vmem:[#allocation15 + $0xff0] sm:$0xff] }
0x1142   :  { %5871 = vmatprep.subr.mxu1 %v5832_v43  ;;  %5948 = vmatprep.subr.mxu0 %v5834_v44  ;;  %v6222_v43 = vld [vmem:[#allocation15 + $0xfc8] sm:$0xff]  ;;  %v6224_v44 = vld [vmem:[#allocation15 + $0xfd8] sm:$0xff] }
0x1143   :  { %5872 = vmatpush1.msra.mxu1 %v5831_v46  ;;  %5949 = vmatpush1.msra.mxu0 %v5833_v47  ;;  %v6221_v46 = vld [vmem:[#allocation15 + $0xfc0] sm:$0xff]  ;;  %v6223_v47 = vld [vmem:[#allocation15 + $0xfd0] sm:$0xff] }
0x1144   :  { %5873 = vmatprep.subr.mxu1 %v5828_v52  ;;  %5950 = vmatprep.subr.mxu0 %v5830_v53  ;;  %v6218_v52 = vld [vmem:[#allocation15 + $0xfa8] sm:$0xff]  ;;  %v6220_v53 = vld [vmem:[#allocation15 + $0xfb8] sm:$0xff] }
0x1145   :  { %5874 = vmatpush1.msra.mxu1 %v5827_v54  ;;  %5951 = vmatpush1.msra.mxu0 %v5829_v55  ;;  %v6217_v54 = vld [vmem:[#allocation15 + $0xfa0] sm:$0xff]  ;;  %v6219_v55 = vld [vmem:[#allocation15 + $0xfb0] sm:$0xff] }
0x1146   :  { %5875 = vmatprep.subr.mxu1 %v5824_v56  ;;  %5952 = vmatprep.subr.mxu0 %v5826_v57  ;;  %v6214_v56 = vld [vmem:[#allocation15 + $0xf88] sm:$0xff]  ;;  %v6216_v57 = vld [vmem:[#allocation15 + $0xf98] sm:$0xff] }
0x1147   :  { %5876 = vmatpush1.msra.mxu1 %v5823_v58  ;;  %5953 = vmatpush1.msra.mxu0 %v5825_v22  ;;  %v6213_v58 = vld [vmem:[#allocation15 + $0xf80] sm:$0xff]  ;;  %v6215_v22 = vld [vmem:[#allocation15 + $0xf90] sm:$0xff] }
0x1148   :  { %5877 = vmatprep.subr.mxu1 %v5820_v23  ;;  %5954 = vmatprep.subr.mxu0 %v5822_v26  ;;  %v6210_v23 = vld [vmem:[#allocation15 + $0xf68] sm:$0xff]  ;;  %v6212_v26 = vld [vmem:[#allocation15 + $0xf78] sm:$0xff] }
0x1149   :  { %5878 = vmatpush1.msra.mxu1 %v5819_v59  ;;  %5955 = vmatpush1.msra.mxu0 %v5821_v27  ;;  %v6209_v59 = vld [vmem:[#allocation15 + $0xf60] sm:$0xff]  ;;  %v6211_v27 = vld [vmem:[#allocation15 + $0xf70] sm:$0xff] }
0x114a   :  { %5879 = vmatprep.subr.mxu1 %v5816_v60  ;;  %5956 = vmatprep.subr.mxu0 %v5818_v61  ;;  %v6206_v60 = vld [vmem:[#allocation15 + $0xf48] sm:$0xff]  ;;  %v6208_v61 = vld [vmem:[#allocation15 + $0xf58] sm:$0xff] }
0x114b   :  { %5880 = vmatpush1.msra.mxu1 %v5815_v62  ;;  %5957 = vmatpush1.msra.mxu0 %v5817_v2  ;;  %v6205_v62 = vld [vmem:[#allocation15 + $0xf40] sm:$0xff]  ;;  %v6207_v2 = vld [vmem:[#allocation15 + $0xf50] sm:$0xff] }
0x114c   :  { %5881 = vmatprep.subr.mxu1 %v5812_v3  ;;  %5958 = vmatprep.subr.mxu0 %v5814_v6  ;;  %v6202_v3 = vld [vmem:[#allocation15 + $0xf28] sm:$0xff]  ;;  %v6204_v6 = vld [vmem:[#allocation15 + $0xf38] sm:$0xff] }
0x114d   :  { %5882 = vmatpush1.msra.mxu1 %v5811_v9  ;;  %5959 = vmatpush1.msra.mxu0 %v5813_v10  ;;  %v6201_v9 = vld [vmem:[#allocation15 + $0xf20] sm:$0xff]  ;;  %v6203_v10 = vld [vmem:[#allocation15 + $0xf30] sm:$0xff] }
0x114e   :  { %5883 = vmatprep.subr.mxu1 %v5808_v13  ;;  %5960 = vmatprep.subr.mxu0 %v5810_v14  ;;  %v6198_v13 = vld [vmem:[#allocation15 + $0xf08] sm:$0xff]  ;;  %v6200_v14 = vld [vmem:[#allocation15 + $0xf18] sm:$0xff] }
0x114f   :  { %5884 = vmatpush1.msra.mxu1 %v5807_v15  ;;  %5961 = vmatpush1.msra.mxu0 %v5809_v16  ;;  %v6197_v15 = vld [vmem:[#allocation15 + $0xf00] sm:$0xff]  ;;  %v6199_v16 = vld [vmem:[#allocation15 + $0xf10] sm:$0xff] }
0x1150   :  { %5885 = vmatprep.subr.mxu1 %v5804_v50  ;;  %5962 = vmatprep.subr.mxu0 %v5806_v17  ;;  %v6194_v50 = vld [vmem:[#allocation15 + $0xee8] sm:$0xff]  ;;  %v6196_v17 = vld [vmem:[#allocation15 + $0xef8] sm:$0xff] }
0x1151   :  { %5886 = vmatpush1.msra.mxu1 %v5803_v18  ;;  %5963 = vmatpush1.msra.mxu0 %v5805_v41  ;;  %v6193_v18 = vld [vmem:[#allocation15 + $0xee0] sm:$0xff]  ;;  %v6195_v41 = vld [vmem:[#allocation15 + $0xef0] sm:$0xff] }
0x1152   :  { %5887 = vmatprep.subr.mxu1 %v5800_v45  ;;  %5964 = vmatprep.subr.mxu0 %v5802_v48  ;;  %v6190_v45 = vld [vmem:[#allocation15 + $0xec8] sm:$0xff]  ;;  %v6192_v48 = vld [vmem:[#allocation15 + $0xed8] sm:$0xff] }
0x1153   :  { %5888 = vmatpush1.msra.mxu1 %v5799_v19  ;;  %5965 = vmatpush1.msra.mxu0 %v5801_v49  ;;  %v6189_v19 = vld [vmem:[#allocation15 + $0xec0] sm:$0xff]  ;;  %v6191_v49 = vld [vmem:[#allocation15 + $0xed0] sm:$0xff] }
0x1154   :  { %5889 = vmatprep.subr.mxu1 %v5796_v20  ;;  %5966 = vmatprep.subr.mxu0 %v5798_v51  ;;  %v6186_v20 = vld [vmem:[#allocation15 + $0xea8] sm:$0xff]  ;;  %v6188_v51 = vld [vmem:[#allocation15 + $0xeb8] sm:$0xff] }
0x1155   :  { %5890 = vmatpush1.msra.mxu1 %v5795_v21  ;;  %5923 = vmatprep.mubr.f32.mxu1 %v7867_v0  ;;  %v6185_v21 = vld [vmem:[#allocation15 + $0xea0] sm:$0xff] }
0x1156   :  { %5967 = vmatpush1.msra.mxu0 %v5797_v24  ;;  %6000 = vmatprep.mubr.f32.mxu0 %v7867_v0  ;;  %v6187_v24 = vld [vmem:[#allocation15 + $0xeb0] sm:$0xff] }
0x1157   :  { %5924 = vmatmul.mubr.f32.vlgmr.msra.gmra.mxu1 %v8192_v29  ;;  %6001 = vmatmul.mubr.f32.vlgmr.msra.gmra.mxu0 %v8192_v29 }
0x1158   :  { %5929 = vmatprep.mubr.f32.mxu1 %v7867_v0  ;;  %6006 = vmatprep.mubr.f32.mxu0 %v7867_v0 }
0x115b   :  { %5930 = vmatmul.mubr.f32.gmra.mxu1 %v8196_v42  ;;  %6007 = vmatmul.mubr.f32.gmra.mxu0 %v8196_v42 }
0x115c   :  { %6082 = vmatprep.mubr.f32.mxu1 %v7867_v0  ;;  %6153 = vmatprep.mubr.f32.mxu0 %v7867_v0 }
0x11f5   :  { %v5714_v25 = vpop.f32.mrf.mxu1  ;;  %v5785_v28 = vpop.f32.mrf.mxu0 }
0x11f6   :  { %v8321_v30 = vadd.f32 %v5714_v25, %v8297_v7  ;;  %v8324_v31 = vadd.f32 %v5785_v28, %v8300_v8  ;;  %v6014_v8 = vld [vmem:[#allocation23 + $0x18] sm:$0x7]  ;;  %v6182_v25 = vld [vmem:[#allocation15 + $0xe88] sm:$0xff] }
0x11f7   :  { %v5716_v32 = vpop.f32.mrf.mxu1  ;;  %v5787_v33 = vpop.f32.mrf.mxu0  ;;  %v6184_v28 = vld [vmem:[#allocation15 + $0xe98] sm:$0xff] }
0x11f8   :  { %v8327_v34 = vadd.f32 %v5716_v32, %v8303_v11  ;;  %v8330_v35 = vadd.f32 %v5787_v33, %v8306_v12  ;;  %v6226_v11 = vld [vmem:[#allocation15 + $0xfe8] sm:$0xff]  ;;  %v6225_v12 = vld [vmem:[#allocation15 + $0xfe0] sm:$0xff]  ;;  %v6183_v33 = vld [vmem:[#allocation15 + $0xe90] sm:$0xff] }
0x11f9   :  { %v6181_v32 = vld [vmem:[#allocation15 + $0xe80] sm:$0xff] }
0x1217   :  { %v5925_v63 = vpop.f32.mrf.mxu1  ;;  %v6002_v1 = vpop.f32.mrf.mxu0 }
0x1219   :  { %v5927_v4 = vpop.f32.mrf.mxu1  ;;  %v6004_v36 = vpop.f32.mrf.mxu0 }
0x121b   :  { %v5931_v5 = vpop.f32.mrf.mxu1  ;;  %v6008_v37 = vpop.f32.mrf.mxu0 }
0x121d   :  { %v5933_v38 = vpop.f32.mrf.mxu1  ;;  %v6010_v7 = vpop.f32.mrf.mxu0 }
0x121e   :  { %6046 = vmatprep.subr.mxu1 %v5933_v38  ;;  %6117 = vmatprep.subr.mxu0 %v6010_v7  ;;  %v6173_v38 = vld [vmem:[#allocation15 + $0xe40] sm:$0xff]  ;;  %v6175_v7 = vld [vmem:[#allocation15 + $0xe50] sm:$0xff] }
0x121f   :  { %6047 = vmatpush1.msra.mxu1 %v5931_v5  ;;  %6118 = vmatpush1.msra.mxu0 %v6008_v37  ;;  %v6174_v5 = vld [vmem:[#allocation15 + $0xe48] sm:$0xff]  ;;  %v6176_v37 = vld [vmem:[#allocation15 + $0xe58] sm:$0xff] }
0x1220   :  { %6048 = vmatprep.subr.mxu1 %v5927_v4  ;;  %6119 = vmatprep.subr.mxu0 %v6004_v36  ;;  %v6177_v4 = vld [vmem:[#allocation15 + $0xe60] sm:$0xff]  ;;  %v6179_v36 = vld [vmem:[#allocation15 + $0xe70] sm:$0xff] }
0x1221   :  { %6049 = vmatpush1.msra.mxu1 %v5925_v63  ;;  %6120 = vmatpush1.msra.mxu0 %v6002_v1  ;;  %v6178_v63 = vld [vmem:[#allocation15 + $0xe68] sm:$0xff]  ;;  %v6180_v1 = vld [vmem:[#allocation15 + $0xe78] sm:$0xff] }
0x1222   :  { %7049 = vmatmul.mubr.msk.f32.vlgmr.msra.gmra.mxu1 %vm324_vm3, %v6014_v8  ;;  %7050 = vmatmul.mubr.msk.f32.vlgmr.msra.gmra.mxu0 %vm324_vm3, %v6014_v8  ;;  %v6170_v8 = vld [vmem:[#allocation15 + $0xe28] sm:$0xff] }
0x1223   :  { %6229 = vmatprep.subr.mxu1 %v6226_v11  ;;  %6306 = vmatprep.subr.mxu0 %v6228_v39  ;;  %v6172_v11 = vld [vmem:[#allocation15 + $0xe38] sm:$0xff]  ;;  %v6169_v39 = vld [vmem:[#allocation15 + $0xe20] sm:$0xff] }
0x1224   :  { %6230 = vmatpush1.msra.mxu1 %v6225_v12  ;;  %6307 = vmatpush1.msra.mxu0 %v6227_v40  ;;  %v6171_v12 = vld [vmem:[#allocation15 + $0xe30] sm:$0xff]  ;;  %v6166_v40 = vld [vmem:[#allocation15 + $0xe08] sm:$0xff] }
0x1225   :  { %6231 = vmatprep.subr.mxu1 %v6222_v43  ;;  %6308 = vmatprep.subr.mxu0 %v6224_v44  ;;  %v6168_v43 = vld [vmem:[#allocation15 + $0xe18] sm:$0xff]  ;;  %v6165_v44 = vld [vmem:[#allocation15 + $0xe00] sm:$0xff] }
0x1226   :  { %6232 = vmatpush1.msra.mxu1 %v6221_v46  ;;  %6309 = vmatpush1.msra.mxu0 %v6223_v47  ;;  %v6167_v46 = vld [vmem:[#allocation15 + $0xe10] sm:$0xff] }
0x1227   :  { %6233 = vmatprep.subr.mxu1 %v6218_v52  ;;  %6310 = vmatprep.subr.mxu0 %v6220_v53 }
0x1228   :  { %6234 = vmatpush1.msra.mxu1 %v6217_v54  ;;  %6311 = vmatpush1.msra.mxu0 %v6219_v55 }
0x1229   :  { %6235 = vmatprep.subr.mxu1 %v6214_v56  ;;  %6312 = vmatprep.subr.mxu0 %v6216_v57 }
0x122a   :  { %6236 = vmatpush1.msra.mxu1 %v6213_v58  ;;  %6313 = vmatpush1.msra.mxu0 %v6215_v22 }
0x122b   :  { %6237 = vmatprep.subr.mxu1 %v6210_v23  ;;  %6314 = vmatprep.subr.mxu0 %v6212_v26 }
0x122c   :  { %6238 = vmatpush1.msra.mxu1 %v6209_v59  ;;  %6315 = vmatpush1.msra.mxu0 %v6211_v27 }
0x122d   :  { %6239 = vmatprep.subr.mxu1 %v6206_v60  ;;  %6316 = vmatprep.subr.mxu0 %v6208_v61 }
0x122e   :  { %6240 = vmatpush1.msra.mxu1 %v6205_v62  ;;  %6317 = vmatpush1.msra.mxu0 %v6207_v2  ;;  %v6598_v62 = vld [vmem:[#allocation15 + $0x11f8] sm:$0xff]  ;;  %v6597_v2 = vld [vmem:[#allocation15 + $0x11f0] sm:$0xff] }
0x122f   :  { %6241 = vmatprep.subr.mxu1 %v6202_v3  ;;  %6318 = vmatprep.subr.mxu0 %v6204_v6  ;;  %v6592_v3 = vld [vmem:[#allocation15 + $0x11c8] sm:$0xff]  ;;  %v6594_v6 = vld [vmem:[#allocation15 + $0x11d8] sm:$0xff] }
0x1230   :  { %6242 = vmatpush1.msra.mxu1 %v6201_v9  ;;  %6319 = vmatpush1.msra.mxu0 %v6203_v10  ;;  %v6591_v9 = vld [vmem:[#allocation15 + $0x11c0] sm:$0xff]  ;;  %v6593_v10 = vld [vmem:[#allocation15 + $0x11d0] sm:$0xff] }
0x1231   :  { %6243 = vmatprep.subr.mxu1 %v6198_v13  ;;  %6320 = vmatprep.subr.mxu0 %v6200_v14  ;;  %v6588_v13 = vld [vmem:[#allocation15 + $0x11a8] sm:$0xff]  ;;  %v6590_v14 = vld [vmem:[#allocation15 + $0x11b8] sm:$0xff] }
0x1232   :  { %6244 = vmatpush1.msra.mxu1 %v6197_v15  ;;  %6321 = vmatpush1.msra.mxu0 %v6199_v16  ;;  %v6587_v15 = vld [vmem:[#allocation15 + $0x11a0] sm:$0xff]  ;;  %v6589_v16 = vld [vmem:[#allocation15 + $0x11b0] sm:$0xff] }
0x1233   :  { %6245 = vmatprep.subr.mxu1 %v6194_v50  ;;  %6322 = vmatprep.subr.mxu0 %v6196_v17  ;;  %v6584_v50 = vld [vmem:[#allocation15 + $0x1188] sm:$0xff]  ;;  %v6586_v17 = vld [vmem:[#allocation15 + $0x1198] sm:$0xff] }
0x1234   :  { %6246 = vmatpush1.msra.mxu1 %v6193_v18  ;;  %6323 = vmatpush1.msra.mxu0 %v6195_v41  ;;  %v6583_v18 = vld [vmem:[#allocation15 + $0x1180] sm:$0xff]  ;;  %v6585_v41 = vld [vmem:[#allocation15 + $0x1190] sm:$0xff] }
0x1235   :  { %6247 = vmatprep.subr.mxu1 %v6190_v45  ;;  %6324 = vmatprep.subr.mxu0 %v6192_v48  ;;  %v6580_v45 = vld [vmem:[#allocation15 + $0x1168] sm:$0xff]  ;;  %v6582_v48 = vld [vmem:[#allocation15 + $0x1178] sm:$0xff] }
0x1236   :  { %6248 = vmatpush1.msra.mxu1 %v6189_v19  ;;  %6325 = vmatpush1.msra.mxu0 %v6191_v49  ;;  %v6579_v19 = vld [vmem:[#allocation15 + $0x1160] sm:$0xff]  ;;  %v6581_v49 = vld [vmem:[#allocation15 + $0x1170] sm:$0xff] }
0x1237   :  { %6249 = vmatprep.subr.mxu1 %v6186_v20  ;;  %6326 = vmatprep.subr.mxu0 %v6188_v51  ;;  %v6576_v20 = vld [vmem:[#allocation15 + $0x1148] sm:$0xff]  ;;  %v6578_v51 = vld [vmem:[#allocation15 + $0x1158] sm:$0xff] }
0x1238   :  { %6250 = vmatpush1.msra.mxu1 %v6185_v21  ;;  %6327 = vmatpush1.msra.mxu0 %v6187_v24  ;;  %v6575_v21 = vld [vmem:[#allocation15 + $0x1140] sm:$0xff]  ;;  %v6577_v24 = vld [vmem:[#allocation15 + $0x1150] sm:$0xff] }
0x1239   :  { %6251 = vmatprep.subr.mxu1 %v6182_v25  ;;  %6328 = vmatprep.subr.mxu0 %v6184_v28  ;;  %v6572_v25 = vld [vmem:[#allocation15 + $0x1128] sm:$0xff]  ;;  %v6574_v28 = vld [vmem:[#allocation15 + $0x1138] sm:$0xff] }
0x123a   :  { %6252 = vmatpush1.msra.mxu1 %v6181_v32  ;;  %6329 = vmatpush1.msra.mxu0 %v6183_v33  ;;  %v6571_v32 = vld [vmem:[#allocation15 + $0x1120] sm:$0xff]  ;;  %v6573_v33 = vld [vmem:[#allocation15 + $0x1130] sm:$0xff] }
0x123b   :  { %6253 = vmatprep.subr.mxu1 %v6178_v63  ;;  %6330 = vmatprep.subr.mxu0 %v6180_v1  ;;  %v6568_v63 = vld [vmem:[#allocation15 + $0x1108] sm:$0xff]  ;;  %v6570_v1 = vld [vmem:[#allocation15 + $0x1118] sm:$0xff] }
0x123c   :  { %6254 = vmatpush1.msra.mxu1 %v6177_v4  ;;  %6331 = vmatpush1.msra.mxu0 %v6179_v36  ;;  %v6567_v4 = vld [vmem:[#allocation15 + $0x1100] sm:$0xff]  ;;  %v6569_v36 = vld [vmem:[#allocation15 + $0x1110] sm:$0xff] }
0x123d   :  { %6255 = vmatprep.subr.mxu1 %v6174_v5  ;;  %6332 = vmatprep.subr.mxu0 %v6176_v37  ;;  %v6564_v5 = vld [vmem:[#allocation15 + $0x10e8] sm:$0xff]  ;;  %v6566_v37 = vld [vmem:[#allocation15 + $0x10f8] sm:$0xff] }
0x123e   :  { %6256 = vmatpush1.msra.mxu1 %v6173_v38  ;;  %6333 = vmatpush1.msra.mxu0 %v6175_v7  ;;  %v6563_v38 = vld [vmem:[#allocation15 + $0x10e0] sm:$0xff]  ;;  %v6565_v7 = vld [vmem:[#allocation15 + $0x10f0] sm:$0xff] }
0x123f   :  { %6257 = vmatprep.subr.mxu1 %v6170_v8  ;;  %6334 = vmatprep.subr.mxu0 %v6172_v11  ;;  %v6560_v8 = vld [vmem:[#allocation15 + $0x10c8] sm:$0xff]  ;;  %v6562_v11 = vld [vmem:[#allocation15 + $0x10d8] sm:$0xff] }
0x1240   :  { %6258 = vmatpush1.msra.mxu1 %v6169_v39  ;;  %6335 = vmatpush1.msra.mxu0 %v6171_v12  ;;  %v6559_v39 = vld [vmem:[#allocation15 + $0x10c0] sm:$0xff]  ;;  %v6561_v12 = vld [vmem:[#allocation15 + $0x10d0] sm:$0xff] }
0x1241   :  { %6259 = vmatprep.subr.mxu1 %v6166_v40  ;;  %6336 = vmatprep.subr.mxu0 %v6168_v43  ;;  %v6556_v40 = vld [vmem:[#allocation15 + $0x10a8] sm:$0xff]  ;;  %v6558_v43 = vld [vmem:[#allocation15 + $0x10b8] sm:$0xff] }
0x1242   :  { %6260 = vmatpush1.msra.mxu1 %v6165_v44  ;;  %6293 = vmatprep.mubr.f32.mxu1 %v7867_v0  ;;  %v6555_v44 = vld [vmem:[#allocation15 + $0x10a0] sm:$0xff] }
0x1243   :  { %6337 = vmatpush1.msra.mxu0 %v6167_v46  ;;  %6370 = vmatprep.mubr.f32.mxu0 %v7867_v0  ;;  %v6557_v46 = vld [vmem:[#allocation15 + $0x10b0] sm:$0xff] }
0x1244   :  { %6294 = vmatmul.mubr.f32.vlgmr.msra.gmra.mxu1 %v8192_v29  ;;  %6371 = vmatmul.mubr.f32.vlgmr.msra.gmra.mxu0 %v8192_v29 }
0x1245   :  { %6299 = vmatprep.mubr.f32.mxu1 %v7867_v0  ;;  %6376 = vmatprep.mubr.f32.mxu0 %v7867_v0 }
0x1248   :  { %6300 = vmatmul.mubr.f32.gmra.mxu1 %v8196_v42  ;;  %6377 = vmatmul.mubr.f32.gmra.mxu0 %v8196_v42 }
0x1249   :  { %6452 = vmatprep.mubr.f32.mxu1 %v7867_v0  ;;  %6523 = vmatprep.mubr.f32.mxu0 %v7867_v0 }
0x12e2   :  { %v6084_v47 = vpop.f32.mrf.mxu1  ;;  %v6155_v52 = vpop.f32.mrf.mxu0 }
0x12e3   :  { %v8345_v53 = vadd.f32 %v6084_v47, %v8321_v30  ;;  %v8348_v54 = vadd.f32 %v6155_v52, %v8324_v31  ;;  %v6384_v31 = vld [vmem:[#allocation23 + $0x1c] sm:$0x7]  ;;  %v6552_v47 = vld [vmem:[#allocation15 + $0x1088] sm:$0xff] }
0x12e4   :  { %v6086_v55 = vpop.f32.mrf.mxu1  ;;  %v6157_v56 = vpop.f32.mrf.mxu0  ;;  %v6554_v52 = vld [vmem:[#allocation15 + $0x1098] sm:$0xff] }
0x12e5   :  { %v8351_v57 = vadd.f32 %v6086_v55, %v8327_v34  ;;  %v8354_v58 = vadd.f32 %v6157_v56, %v8330_v35  ;;  %v6596_v34 = vld [vmem:[#allocation15 + $0x11e8] sm:$0xff]  ;;  %v6595_v35 = vld [vmem:[#allocation15 + $0x11e0] sm:$0xff]  ;;  %v6553_v56 = vld [vmem:[#allocation15 + $0x1090] sm:$0xff] }
0x12e6   :  { %v6551_v55 = vld [vmem:[#allocation15 + $0x1080] sm:$0xff] }
0x1304   :  { %v6295_v22 = vpop.f32.mrf.mxu1  ;;  %v6372_v23 = vpop.f32.mrf.mxu0 }
0x1306   :  { %v6297_v26 = vpop.f32.mrf.mxu1  ;;  %v6374_v59 = vpop.f32.mrf.mxu0 }
0x1308   :  { %v6301_v27 = vpop.f32.mrf.mxu1  ;;  %v6378_v60 = vpop.f32.mrf.mxu0 }
0x130a   :  { %v6303_v61 = vpop.f32.mrf.mxu1  ;;  %v6380_v30 = vpop.f32.mrf.mxu0 }
0x130b   :  { %6416 = vmatprep.subr.mxu1 %v6303_v61  ;;  %6487 = vmatprep.subr.mxu0 %v6380_v30  ;;  %v6543_v61 = vld [vmem:[#allocation15 + $0x1040] sm:$0xff]  ;;  %v6545_v30 = vld [vmem:[#allocation15 + $0x1050] sm:$0xff] }
0x130c   :  { %6417 = vmatpush1.msra.mxu1 %v6301_v27  ;;  %6488 = vmatpush1.msra.mxu0 %v6378_v60  ;;  %v6544_v27 = vld [vmem:[#allocation15 + $0x1048] sm:$0xff]  ;;  %v6546_v60 = vld [vmem:[#allocation15 + $0x1058] sm:$0xff] }
0x130d   :  { %6418 = vmatprep.subr.mxu1 %v6297_v26  ;;  %6489 = vmatprep.subr.mxu0 %v6374_v59  ;;  %v6547_v26 = vld [vmem:[#allocation15 + $0x1060] sm:$0xff]  ;;  %v6549_v59 = vld [vmem:[#allocation15 + $0x1070] sm:$0xff] }
0x130e   :  { %6419 = vmatpush1.msra.mxu1 %v6295_v22  ;;  %6490 = vmatpush1.msra.mxu0 %v6372_v23  ;;  %v6548_v22 = vld [vmem:[#allocation15 + $0x1068] sm:$0xff]  ;;  %v6550_v23 = vld [vmem:[#allocation15 + $0x1078] sm:$0xff] }
0x130f   :  { %7051 = vmatmul.mubr.msk.f32.vlgmr.msra.gmra.mxu1 %vm324_vm3, %v6384_v31  ;;  %7052 = vmatmul.mubr.msk.f32.vlgmr.msra.gmra.mxu0 %vm324_vm3, %v6384_v31  ;;  %v6540_v31 = vld [vmem:[#allocation15 + $0x1028] sm:$0xff] }
0x1310   :  { %6599 = vmatprep.subr.mxu1 %v6596_v34  ;;  %6676 = vmatprep.subr.mxu0 %v6598_v62  ;;  %v6542_v34 = vld [vmem:[#allocation15 + $0x1038] sm:$0xff]  ;;  %v6539_v62 = vld [vmem:[#allocation15 + $0x1020] sm:$0xff] }
0x1311   :  { %6600 = vmatpush1.msra.mxu1 %v6595_v35  ;;  %6677 = vmatpush1.msra.mxu0 %v6597_v2  ;;  %v6541_v35 = vld [vmem:[#allocation15 + $0x1030] sm:$0xff]  ;;  %v6536_v2 = vld [vmem:[#allocation15 + $0x1008] sm:$0xff] }
0x1312   :  { %6601 = vmatprep.subr.mxu1 %v6592_v3  ;;  %6678 = vmatprep.subr.mxu0 %v6594_v6  ;;  %v6538_v3 = vld [vmem:[#allocation15 + $0x1018] sm:$0xff]  ;;  %v6535_v6 = vld [vmem:[#allocation15 + $0x1000] sm:$0xff] }
0x1313   :  { %6602 = vmatpush1.msra.mxu1 %v6591_v9  ;;  %6679 = vmatpush1.msra.mxu0 %v6593_v10  ;;  %v6537_v9 = vld [vmem:[#allocation15 + $0x1010] sm:$0xff] }
0x1314   :  { %6603 = vmatprep.subr.mxu1 %v6588_v13  ;;  %6680 = vmatprep.subr.mxu0 %v6590_v14 }
0x1315   :  { %6604 = vmatpush1.msra.mxu1 %v6587_v15  ;;  %6681 = vmatpush1.msra.mxu0 %v6589_v16 }
0x1316   :  { %6605 = vmatprep.subr.mxu1 %v6584_v50  ;;  %6682 = vmatprep.subr.mxu0 %v6586_v17 }
0x1317   :  { %6606 = vmatpush1.msra.mxu1 %v6583_v18  ;;  %6683 = vmatpush1.msra.mxu0 %v6585_v41 }
0x1318   :  { %6607 = vmatprep.subr.mxu1 %v6580_v45  ;;  %6684 = vmatprep.subr.mxu0 %v6582_v48 }
0x1319   :  { %6608 = vmatpush1.msra.mxu1 %v6579_v19  ;;  %6685 = vmatpush1.msra.mxu0 %v6581_v49 }
0x131a   :  { %6609 = vmatprep.subr.mxu1 %v6576_v20  ;;  %6686 = vmatprep.subr.mxu0 %v6578_v51 }
0x131b   :  { %6610 = vmatpush1.msra.mxu1 %v6575_v21  ;;  %6687 = vmatpush1.msra.mxu0 %v6577_v24 }
0x131c   :  { %6611 = vmatprep.subr.mxu1 %v6572_v25  ;;  %6688 = vmatprep.subr.mxu0 %v6574_v28 }
0x131d   :  { %6612 = vmatpush1.msra.mxu1 %v6571_v32  ;;  %6689 = vmatpush1.msra.mxu0 %v6573_v33 }
0x131e   :  { %6613 = vmatprep.subr.mxu1 %v6568_v63  ;;  %6690 = vmatprep.subr.mxu0 %v6570_v1 }
0x131f   :  { %6614 = vmatpush1.msra.mxu1 %v6567_v4  ;;  %6691 = vmatpush1.msra.mxu0 %v6569_v36 }
0x1320   :  { %6615 = vmatprep.subr.mxu1 %v6564_v5  ;;  %6692 = vmatprep.subr.mxu0 %v6566_v37 }
0x1321   :  { %6616 = vmatpush1.msra.mxu1 %v6563_v38  ;;  %6693 = vmatpush1.msra.mxu0 %v6565_v7 }
0x1322   :  { %6617 = vmatprep.subr.mxu1 %v6560_v8  ;;  %6694 = vmatprep.subr.mxu0 %v6562_v11 }
0x1323   :  { %6618 = vmatpush1.msra.mxu1 %v6559_v39  ;;  %6695 = vmatpush1.msra.mxu0 %v6561_v12 }
0x1324   :  { %6619 = vmatprep.subr.mxu1 %v6556_v40  ;;  %6696 = vmatprep.subr.mxu0 %v6558_v43 }
0x1325   :  { %6620 = vmatpush1.msra.mxu1 %v6555_v44  ;;  %6697 = vmatpush1.msra.mxu0 %v6557_v46 }
0x1326   :  { %6621 = vmatprep.subr.mxu1 %v6552_v47  ;;  %6698 = vmatprep.subr.mxu0 %v6554_v52 }
0x1327   :  { %6622 = vmatpush1.msra.mxu1 %v6551_v55  ;;  %6699 = vmatpush1.msra.mxu0 %v6553_v56 }
0x1328   :  { %6623 = vmatprep.subr.mxu1 %v6548_v22  ;;  %6700 = vmatprep.subr.mxu0 %v6550_v23 }
0x1329   :  { %6624 = vmatpush1.msra.mxu1 %v6547_v26  ;;  %6701 = vmatpush1.msra.mxu0 %v6549_v59 }
0x132a   :  { %6625 = vmatprep.subr.mxu1 %v6544_v27  ;;  %6702 = vmatprep.subr.mxu0 %v6546_v60 }
0x132b   :  { %6626 = vmatpush1.msra.mxu1 %v6543_v61  ;;  %6703 = vmatpush1.msra.mxu0 %v6545_v30 }
0x132c   :  { %6627 = vmatprep.subr.mxu1 %v6540_v31  ;;  %6704 = vmatprep.subr.mxu0 %v6542_v34 }
0x132d   :  { %6628 = vmatpush1.msra.mxu1 %v6539_v62  ;;  %6705 = vmatpush1.msra.mxu0 %v6541_v35 }
0x132e   :  { %6629 = vmatprep.subr.mxu1 %v6536_v2  ;;  %6706 = vmatprep.subr.mxu0 %v6538_v3 }
0x132f   :  { %6630 = vmatpush1.msra.mxu1 %v6535_v6  ;;  %6663 = vmatprep.mubr.f32.mxu1 %v7867_v0 }
0x1330   :  { %6707 = vmatpush1.msra.mxu0 %v6537_v9  ;;  %6740 = vmatprep.mubr.f32.mxu0 %v7867_v0 }
0x1331   :  { %6664 = vmatmul.mubr.f32.vlgmr.msra.gmra.mxu1 %v8192_v29  ;;  %6741 = vmatmul.mubr.f32.vlgmr.msra.gmra.mxu0 %v8192_v29 }
0x1332   :  { %6669 = vmatprep.mubr.f32.mxu1 %v7867_v0  ;;  %6746 = vmatprep.mubr.f32.mxu0 %v7867_v0 }
0x1335   :  { %6670 = vmatmul.mubr.f32.gmra.mxu1 %v8196_v42  ;;  %6747 = vmatmul.mubr.f32.gmra.mxu0 %v8196_v42 }
0x1336   :  { %6822 = vmatprep.mubr.f32.mxu1 %v7867_v0  ;;  %6893 = vmatprep.mubr.f32.mxu0 %v7867_v0 }
0x13cf   :  { %v6454_v10 = vpop.f32.mrf.mxu1  ;;  %v6525_v13 = vpop.f32.mrf.mxu0 }
0x13d0   :  { %v6530_v14 = vadd.f32 %v6454_v10, %v8345_v53  ;;  %v6532_v15 = vadd.f32 %v6525_v13, %v8348_v54  ;;  %v6754_v53 = vld [vmem:[#allocation23 + $0x20] sm:$0x7] }
0x13d1   :  { %v6456_v16 = vpop.f32.mrf.mxu1  ;;  %v6527_v29 = vpop.f32.mrf.mxu0 }
0x13d2   :  { %v6531_v50 = vadd.f32 %v6456_v16, %v8351_v57  ;;  %v6533_v17 = vadd.f32 %v6527_v29, %v8354_v58  ;;  %v6908_v58 = vpop.permute.xlu1 %6907 }
0x13f1   :  { %v6665_v18 = vpop.f32.mrf.mxu1  ;;  %v6742_v41 = vpop.f32.mrf.mxu0 }
0x13f3   :  { %v6667_v45 = vpop.f32.mrf.mxu1  ;;  %v6744_v42 = vpop.f32.mrf.mxu0 }
0x13f5   :  { %v6671_v48 = vpop.f32.mrf.mxu1  ;;  %v6748_v19 = vpop.f32.mrf.mxu0 }
0x13f7   :  { %v6673_v49 = vpop.f32.mrf.mxu1  ;;  %v6750_v0 = vpop.f32.mrf.mxu0 }
0x13f8   :  { %6786 = vmatprep.subr.mxu1 %v6673_v49  ;;  %6857 = vmatprep.subr.mxu0 %v6750_v0 }
0x13f9   :  { %6787 = vmatpush1.msra.mxu1 %v6671_v48  ;;  %6858 = vmatpush1.msra.mxu0 %v6748_v19 }
0x13fa   :  { %6788 = vmatprep.subr.mxu1 %v6667_v45  ;;  %6859 = vmatprep.subr.mxu0 %v6744_v42 }
0x13fb   :  { %6789 = vmatpush1.msra.mxu1 %v6665_v18  ;;  %6860 = vmatpush1.msra.mxu0 %v6742_v41 }
0x13fc   :  { %7053 = vmatmul.mubr.msk.f32.vlgmr.msra.gmra.mxu1 %vm324_vm3, %v6754_v53  ;;  %7054 = vmatmul.mubr.msk.f32.vlgmr.msra.gmra.mxu0 %vm324_vm3, %v6754_v53 }
0x14bc   :  { %v6824_v54 = vpop.f32.mrf.mxu1  ;;  %v6895_v57 = vpop.f32.mrf.mxu0 }
0x14bd   :  { %v6900_v20 = vadd.f32 %v6824_v54, %v6530_v14  ;;  %v6902_v51 = vadd.f32 %v6895_v57, %v6532_v15 }
0x14be   :  { %v6826_v21 = vpop.f32.mrf.mxu1  ;;  %v6897_v24 = vpop.f32.mrf.mxu0 }
0x14bf   :  { %v6910_v25 = vadd.f32 %v6908_v58, %v6900_v20  ;;  %v6912_v28 = vadd.f32 %v6908_v58, %v6902_v51  ;;  %v6901_v32 = vadd.f32 %v6826_v21, %v6531_v50  ;;  %v6903_v33 = vadd.f32 %v6897_v24, %v6533_v17 }
0x14c1   :  { %v6914_v63 = vsub.f32 0.0, %v6910_v25  ;;  %v6916_v1 = vsub.f32 0.0, %v6912_v28  ;;  %v6911_v4 = vadd.f32 %v6908_v58, %v6901_v32  ;;  %v6913_v36 = vadd.f32 %v6908_v58, %v6903_v33 }
0x14c3   :  { %v6918_v5 = vmul.f32 1.442695, %v6914_v63  ;;  %v6922_v37 = vmul.f32 1.442695, %v6916_v1  ;;  %v6915_v38 = vsub.f32 0.0, %v6911_v4  ;;  %v6917_v7 = vsub.f32 0.0, %v6913_v36 }
0x14c5   :  { %7535 = vpow2.f32 %v6918_v5  ;;  %v6920_v8 = vmul.f32 1.442695, %v6915_v38  ;;  %v6924_v11 = vmul.f32 1.442695, %v6917_v7 }
0x14c6   :  { %7537 = vpow2.f32 %v6922_v37 }
0x14c7   :  { %7539 = vpow2.f32 %v6920_v8 }
0x14c8   :  { %7541 = vpow2.f32 %v6924_v11 }
0x14d2   :  { %v7536_v39 = vpop.eup %7535 }
0x14d3   :  { %v7538_v12 = vpop.eup %7537  ;;  %v6926_v40 = vadd.f32 1.0, %v7536_v39 }
0x14d4   :  { %v7540_v43 = vpop.eup %7539  ;;  %v6928_v44 = vadd.f32 1.0, %v7538_v12 }
0x14d5   :  { %v7542_v46 = vpop.eup %7541  ;;  %7543 = vrcp.f32 %v6926_v40  ;;  %v6927_v47 = vadd.f32 1.0, %v7540_v43 }
0x14d6   :  { %7545 = vrcp.f32 %v6928_v44  ;;  %v6929_v52 = vadd.f32 1.0, %v7542_v46 }
0x14d7   :  { %7547 = vrcp.f32 %v6927_v47 }
0x14d8   :  { %7549 = vrcp.f32 %v6929_v52 }
0x14e2   :  { %v7544_v55 = vpop.eup %7543 }
0x14e3   :  { %v7546_v56 = vpop.eup %7545  ;;  %v6934_v26 = vmin.f32 %v7544_v55, 1.0 }
0x14e4   :  { %v7548_v22 = vpop.eup %7547  ;;  %v6936_v27 = vmin.f32 %v7546_v56, 1.0 }
0x14e5   :  { %v7550_v23 = vpop.eup %7549  ;;  %v6935_v59 = vmin.f32 %v7548_v22, 1.0 }
0x14e6   :  { %v6937_v60 = vmin.f32 %v7550_v23, 1.0 }
0x14e7   :  { %v6942_v61 = vcombine.low %v6934_v26, %v6935_v59 }
0x14e8   :  { %v6943_v30 = vcombine.low %v6936_v27, %v6937_v60 }
0x14e9   :  { %6946 = vst [vmem:[%s8394_s14] sm:$0x77] %v6942_v61 }
0x14ea   :  { %6947 = vst [vmem:[%s8394_s14 + $0x8] sm:$0x77] %v6943_v30 }
0x14eb   :  { %6952 = vsyncpa [#allocation5], 1 }
0x14ec   :  { %6953 = vsyncpa [#allocation7], 1 }
0x14ed   :  { %6954 = vsyncpa [#allocation10], 1 }
0x14ee   :  { %6955 = vsyncpa [#allocation13], 1 }
0x14ef   :  { %6956 = vsyncpa [#allocation16], 1 }
0x14f0   :  { %6957 = vsyncpa [#allocation19], 1 }
0x14f1   :  { %6958 = vsyncpa [#allocation22], 1 }
0x14f2   :  { %6959 = vsyncpa [#allocation25], 1 }

</bundles_post_ra>
